<compile_context>
chip_gen: v6e
topology: v6e:2x2x1
jax: 0.10.0
libtpu: 0.0.40
codegen_flags: <defaults>
</compile_context>

<pallas_src>
import numpy as np
import jax
import jax.numpy as jnp
from jax import lax
from jax.experimental import pallas as pl
from jax.experimental.pallas import tpu as pltpu


# -----------------------------------------------------------------------------
# Fused Pallas kernel: one grid step == one batch element, everything in VMEM.
# -----------------------------------------------------------------------------
def _inception_aux_kernel(x_ref, p_ref, w0_ref, s0_ref, b0_ref,
                          w1_ref, s1_ref, b1_ref, wfc_ref, bfc_ref,
                          out_ref, y0_scr, y0flat_scr):
    """Shapes (per grid step):
      x_ref     : (1, H*W, Cin)      bf16   spatially-flattened NHWC input
      p_ref     : (P, H*W)           bf16   avg-pool-as-matmul matrix (P = 25 pooled pixels)
      w0_ref    : (Cin, 128)         bf16   1x1 conv weight
      s0/b0     : (1, 128)           f32    folded BN scale / bias for conv0
      w1_ref    : (P*128, 768)       bf16   5x5 conv weight flattened (kh, kw, Cin) -> rows
      s1/b1     : (1, 768)           f32    folded BN scale / bias for conv1
      wfc_ref   : (768, NCp)         bf16   fc weight, padded to lane-dense NCp
      bfc_ref   : (1, NCp)           f32    fc bias, padded
      out_ref   : (1, 1, NCp)        f32
      y0_scr    : (P, 128)           f32    VMEM scratch (conv0 output)
      y0flat_scr: (1, P*128)         f32    VMEM scratch (flattened conv0 output)
    """
    n_pool, c0 = y0_scr.shape

    x = x_ref[0]                                                   # (H*W, Cin) bf16

    # --- avg_pool2d(kernel=5, stride=3) as one MXU matmul (contraction H*W) --
    pooled = jnp.dot(p_ref[...], x,
                     preferred_element_type=jnp.float32)           # (P, Cin) f32

    # --- conv0: 1x1 conv + BN + ReLU (f32 epilogue) --------------------------
    y0 = jnp.dot(pooled.astype(jnp.bfloat16), w0_ref[...],
                 preferred_element_type=jnp.float32)               # (P, 128) f32
    y0 = jnp.maximum(y0 * s0_ref[...] + b0_ref[...], 0.0)

    # --- conv1: 5x5 VALID conv on the 5x5 map == ONE matmul, contraction P*128
    # Flatten (P, 128) -> (1, P*128) through VMEM with static loads/stores.
    y0_scr[...] = y0
    for p in range(n_pool):                                        # static, unrolled
        y0flat_scr[:, pl.ds(p * c0, c0)] = y0_scr[pl.ds(p, 1), :]
    y1 = jnp.dot(y0flat_scr[...].astype(jnp.bfloat16), w1_ref[...],
                 preferred_element_type=jnp.float32)               # (1, 768) f32
    y1 = jnp.maximum(y1 * s1_ref[...] + b1_ref[...], 0.0)

    # --- fc -------------------------------------------------------------------
    out = jnp.dot(y1.astype(jnp.bfloat16), wfc_ref[...],
                  preferred_element_type=jnp.float32) + bfc_ref[...]   # (1, NCp)
    out_ref[0] = out.astype(out_ref.dtype)


# -----------------------------------------------------------------------------
# Wrapper helpers (weight re-layout, BN folding, pooling matrix)
# -----------------------------------------------------------------------------
def _avg_pool_matrix(H, W, k, s):
    """avg_pool2d(k, s, pad=0) expressed as a (Hout*Wout, H*W) matrix (trace-time const)."""
    Hp = (H - k) // s + 1
    Wp = (W - k) // s + 1
    P = np.zeros((Hp * Wp, H * W), np.float32)
    inv = 1.0 / (k * k)
    for i in range(Hp):
        for j in range(Wp):
            r = i * Wp + j
            for dy in range(k):
                for dx in range(k):
                    P[r, (i * s + dy) * W + (j * s + dx)] += inv
    return P, Hp, Wp


def _fold_bn(p, eps=1e-3):
    inv_std = 1.0 / jnp.sqrt(p["var"] + eps)
    scale = p["gamma"] * inv_std
    bias = p["beta"] - p["mean"] * scale
    return scale, bias


@jax.jit
def inception_aux_forward(x_nchw, params):
    N, Cin, H, W = x_nchw.shape
    Pmat_np, Hp, Wp = _avg_pool_matrix(H, W, 5, 3)
    n_pool = Hp * Wp
    # The torch module flattens conv1's output into fc(768), so the pooled map must be
    # exactly 5x5 (-> 1x1 after the 5x5 VALID conv). e.g. 17x17 input.
    assert Hp == 5 and Wp == 5, "InceptionAux needs a 5x5 map after avg_pool (use 17x17 input)"

    c0p, c1p = params["conv0"], params["conv1"]
    C0_OUT = c0p["w"].shape[0]            # 128
    C1_OUT = c1p["w"].shape[0]            # 768
    num_classes = params["fc_w"].shape[0]
    NCp = max(128, ((num_classes + 127) // 128) * 128)   # lane-dense padded fc output

    # ---- fold / re-layout parameters (compiled once under jit) --------------
    w0 = jnp.transpose(c0p["w"][:, :, 0, 0], (1, 0)).astype(jnp.bfloat16)      # (Cin, 128)
    s0, b0 = _fold_bn(c0p)
    s0 = s0.reshape(1, C0_OUT)
    b0 = b0.reshape(1, C0_OUT)
    # (Cout, Cin, kh, kw) -> (kh, kw, Cin, Cout) -> (kh*kw*Cin, Cout)
    w1 = jnp.transpose(c1p["w"], (2, 3, 1, 0)).reshape(n_pool * C0_OUT, C1_OUT)
    w1 = w1.astype(jnp.bfloat16)
    s1, b1 = _fold_bn(c1p)
    s1 = s1.reshape(1, C1_OUT)
    b1 = b1.reshape(1, C1_OUT)
    wfc = jnp.zeros((C1_OUT, NCp), jnp.float32).at[:, :num_classes].set(params["fc_w"].T)
    wfc = wfc.astype(jnp.bfloat16)
    bfc = jnp.zeros((1, NCp), jnp.float32).at[0, :num_classes].set(params["fc_b"])
    Pmat = jnp.asarray(Pmat_np).astype(jnp.bfloat16)                            # (25, H*W)

    # ---- input: NCHW -> NHWC, flatten spatial, cast to bf16 ------------------
    x = jnp.transpose(x_nchw, (0, 2, 3, 1)).reshape(N, H * W, Cin).astype(jnp.bfloat16)

    out_padded = pl.pallas_call(
        _inception_aux_kernel,
        out_shape=jax.ShapeDtypeStruct((N, 1, NCp), jnp.float32),
        grid=(N,),
        in_specs=[
            pl.BlockSpec((1, H * W, Cin), lambda n: (n, 0, 0)),     # x
            pl.BlockSpec((n_pool, H * W), lambda n: (0, 0)),        # pooling matrix
            pl.BlockSpec((Cin, C0_OUT), lambda n: (0, 0)),          # w0
            pl.BlockSpec((1, C0_OUT), lambda n: (0, 0)),            # s0
            pl.BlockSpec((1, C0_OUT), lambda n: (0, 0)),            # b0
            pl.BlockSpec((n_pool * C0_OUT, C1_OUT), lambda n: (0, 0)),  # w1 (3200, 768)
            pl.BlockSpec((1, C1_OUT), lambda n: (0, 0)),            # s1
            pl.BlockSpec((1, C1_OUT), lambda n: (0, 0)),            # b1
            pl.BlockSpec((C1_OUT, NCp), lambda n: (0, 0)),          # wfc
            pl.BlockSpec((1, NCp), lambda n: (0, 0)),               # bfc
        ],
        out_specs=pl.BlockSpec((1, 1, NCp), lambda n: (n, 0, 0)),
        scratch_shapes=[
            pltpu.VMEM((n_pool, C0_OUT), jnp.float32),              # y0
            pltpu.VMEM((1, n_pool * C0_OUT), jnp.float32),          # y0 flattened
        ],
        compiler_params=pltpu.CompilerParams(dimension_semantics=("parallel",)),
    )(x, Pmat, w0, s0, b0, w1, s1, b1, wfc, bfc)

    return out_padded.reshape(N, NCp)[:, :num_classes]


# -----------------------------------------------------------------------------
# Pure-JAX reference (independent path: reduce_window + conv_general_dilated)
# -----------------------------------------------------------------------------
def _reference_forward(x_nchw, params, eps=1e-3):
    x = jnp.transpose(x_nchw, (0, 2, 3, 1)).astype(jnp.float32)      # NHWC
    pooled = lax.reduce_window(x, 0.0, lax.add,
                               (1, 5, 5, 1), (1, 3, 3, 1), "VALID") / 25.0

    def conv_bn_relu(h, p):
        w = jnp.transpose(p["w"], (2, 3, 1, 0))                      # OIHW -> HWIO
        y = lax.conv_general_dilated(h, w, (1, 1), "VALID",
                                     dimension_numbers=("NHWC", "HWIO", "NHWC"))
        scale = p["gamma"] / jnp.sqrt(p["var"] + eps)
        bias = p["beta"] - p["mean"] * scale
        return jnp.maximum(y * scale + bias, 0.0)

    h = conv_bn_relu(pooled, params["conv0"])
    h = conv_bn_relu(h, params["conv1"])
    h = h.reshape(h.shape[0], -1)                                    # (N, 768) since 1x1 map
    return h @ params["fc_w"].T + params["fc_b"]


# -----------------------------------------------------------------------------
# Parameter init (mirrors the PyTorch module structure)
# -----------------------------------------------------------------------------
def init_params(key, in_channels, num_classes):
    ks = jax.random.split(key, 6)

    def bn(key, c):
        k1, k2, k3, k4 = jax.random.split(key, 4)
        return dict(
            gamma=1.0 + 0.1 * jax.random.normal(k1, (c,), jnp.float32),
            beta=0.1 * jax.random.normal(k2, (c,), jnp.float32),
            mean=0.1 * jax.random.normal(k3, (c,), jnp.float32),
            var=1.0 + 0.2 * jax.random.uniform(k4, (c,), jnp.float32),
        )

    return dict(
        conv0=dict(w=0.5 * jax.random.normal(ks[0], (128, in_channels, 1, 1), jnp.float32),
                   **bn(ks[1], 128)),
        conv1=dict(w=0.05 * jax.random.normal(ks[2], (768, 128, 5, 5), jnp.float32),
                   **bn(ks[3], 768)),
        fc_w=0.05 * jax.random.normal(ks[4], (num_classes, 768), jnp.float32),
        fc_b=0.1 * jax.random.normal(ks[5], (num_classes,), jnp.float32),
    )


# -----------------------------------------------------------------------------
if __name__ == "__main__":
    key = jax.random.PRNGKey(0)
    k_x, k_p = jax.random.split(key)

    # 17x17 input: avg_pool(5,3) -> 5x5 -> 5x5 conv (VALID) -> 1x1, so fc(768) is consistent.
    N, in_channels, H, W = 2, 4, 17, 17
    num_classes = 10

    x = jax.random.normal(k_x, (N, in_channels, H, W), jnp.float32)
    params = init_params(k_p, in_channels, num_classes)

    out = inception_aux_forward(x, params)
    out = jax.block_until_ready(out)

    assert out.shape == (N, num_classes), out.shape
    assert out.dtype == jnp.float32
    assert bool(jnp.all(jnp.isfinite(out)))

    ref = _reference_forward(x, params)
    np.testing.assert_allclose(np.asarray(out), np.asarray(ref), rtol=1e-1, atol=1e-1)

    print("KERNEL_OK")
</pallas_src>

<mosaic_0001>
module attributes {stable_mosaic.version = 11 : i64} {
  func.func @_inception_aux_kernel(%arg0: i32, %arg1: memref<1x289x4xbf16, #tpu.memory_space<vmem>>, %arg2: memref<25x289xbf16, #tpu.memory_space<vmem>>, %arg3: memref<4x128xbf16, #tpu.memory_space<vmem>>, %arg4: memref<1x128xf32, #tpu.memory_space<vmem>>, %arg5: memref<1x128xf32, #tpu.memory_space<vmem>>, %arg6: memref<3200x768xbf16, #tpu.memory_space<vmem>>, %arg7: memref<1x768xf32, #tpu.memory_space<vmem>>, %arg8: memref<1x768xf32, #tpu.memory_space<vmem>>, %arg9: memref<768x128xbf16, #tpu.memory_space<vmem>>, %arg10: memref<1x128xf32, #tpu.memory_space<vmem>>, %arg11: memref<1x1x128xf32, #tpu.memory_space<vmem>>, %arg12: memref<25x128xf32, #tpu.memory_space<vmem>>, %arg13: memref<1x3200xf32, #tpu.memory_space<vmem>>) attributes {dimension_semantics = [#tpu.dimension_semantics<parallel>], iteration_bounds = array<i64: 2>, scalar_prefetch = 0 : i64, scratch_operands = 2 : i64, tpu.core_type = #tpu.core_type<tc>, window_params = [{transform_indices = @transform_0, window_bounds = array<i64: 1, 289, 4>}, {pipeline_mode = #tpu.pipeline_mode<synchronous>, transform_indices = @transform_1, window_bounds = array<i64: 25, 289>}, {pipeline_mode = #tpu.pipeline_mode<synchronous>, transform_indices = @transform_2, window_bounds = array<i64: 4, 128>}, {pipeline_mode = #tpu.pipeline_mode<synchronous>, transform_indices = @transform_3, window_bounds = array<i64: 1, 128>}, {pipeline_mode = #tpu.pipeline_mode<synchronous>, transform_indices = @transform_4, window_bounds = array<i64: 1, 128>}, {pipeline_mode = #tpu.pipeline_mode<synchronous>, transform_indices = @transform_5, window_bounds = array<i64: 3200, 768>}, {pipeline_mode = #tpu.pipeline_mode<synchronous>, transform_indices = @transform_6, window_bounds = array<i64: 1, 768>}, {pipeline_mode = #tpu.pipeline_mode<synchronous>, transform_indices = @transform_7, window_bounds = array<i64: 1, 768>}, {pipeline_mode = #tpu.pipeline_mode<synchronous>, transform_indices = @transform_8, window_bounds = array<i64: 768, 128>}, {pipeline_mode = #tpu.pipeline_mode<synchronous>, transform_indices = @transform_9, window_bounds = array<i64: 1, 128>}, {transform_indices = @transform_10, window_bounds = array<i64: 1, 1, 128>}]} {
    %c0 = arith.constant 0 : index
    %c0_0 = arith.constant 0 : index
    %c0_1 = arith.constant 0 : index
    %0 = vector.load %arg1[%c0, %c0_0, %c0_1] : memref<1x289x4xbf16, #tpu.memory_space<vmem>>, vector<1x289x4xbf16>
    %1 = vector.shape_cast %0 : vector<1x289x4xbf16> to vector<289x4xbf16>
    %c0_2 = arith.constant 0 : index
    %c0_3 = arith.constant 0 : index
    %2 = vector.load %arg2[%c0_2, %c0_3] : memref<25x289xbf16, #tpu.memory_space<vmem>>, vector<25x289xbf16>
    %cst = arith.constant dense<0.000000e+00> : vector<25x4xf32>
    %3 = tpu.matmul %2, %1, %cst {dimension_numbers = #tpu.dot_dimension_numbers<[1], [0], [0], [1], [0, 0, 1, 1], [], []>} : vector<25x289xbf16>, vector<289x4xbf16>, vector<25x4xf32> -> vector<25x4xf32>
    %4 = arith.truncf %3 : vector<25x4xf32> to vector<25x4xbf16>
    %c0_4 = arith.constant 0 : index
    %c0_5 = arith.constant 0 : index
    %5 = vector.load %arg3[%c0_4, %c0_5] : memref<4x128xbf16, #tpu.memory_space<vmem>>, vector<4x128xbf16>
    %cst_6 = arith.constant dense<0.000000e+00> : vector<25x128xf32>
    %6 = tpu.matmul %4, %5, %cst_6 {dimension_numbers = #tpu.dot_dimension_numbers<[1], [0], [0], [1], [0, 0, 1, 1], [], []>} : vector<25x4xbf16>, vector<4x128xbf16>, vector<25x128xf32> -> vector<25x128xf32>
    %c0_7 = arith.constant 0 : index
    %c0_8 = arith.constant 0 : index
    %7 = vector.load %arg4[%c0_7, %c0_8] : memref<1x128xf32, #tpu.memory_space<vmem>>, vector<1x128xf32>
    %8 = vector.broadcast %7 : vector<1x128xf32> to vector<25x128xf32>
    %9 = arith.mulf %6, %8 : vector<25x128xf32>
    %c0_9 = arith.constant 0 : index
    %c0_10 = arith.constant 0 : index
    %10 = vector.load %arg5[%c0_9, %c0_10] : memref<1x128xf32, #tpu.memory_space<vmem>>, vector<1x128xf32>
    %11 = vector.broadcast %10 : vector<1x128xf32> to vector<25x128xf32>
    %12 = arith.addf %9, %11 : vector<25x128xf32>
    %cst_11 = arith.constant 0.000000e+00 : f32
    %13 = vector.broadcast %cst_11 : f32 to vector<25x128xf32>
    %14 = arith.maximumf %12, %13 : vector<25x128xf32>
    %c0_12 = arith.constant 0 : index
    %c0_13 = arith.constant 0 : index
    %15 = vector.load %arg12[%c0_12, %c0_13] : memref<25x128xf32, #tpu.memory_space<vmem>>, vector<25x128xf32>
    tpu.vector_store %arg12[%c0_12, %c0_13], %14 {strides = array<i32>} : memref<25x128xf32, #tpu.memory_space<vmem>>, vector<25x128xf32>,
    %c0_14 = arith.constant 0 : index
    %c0_15 = arith.constant 0 : index
    %16 = vector.load %arg12[%c0_14, %c0_15] : memref<25x128xf32, #tpu.memory_space<vmem>>, vector<1x128xf32>
    %c0_16 = arith.constant 0 : index
    %c0_17 = arith.constant 0 : index
    %17 = vector.load %arg13[%c0_16, %c0_17] : memref<1x3200xf32, #tpu.memory_space<vmem>>, vector<1x128xf32>
    tpu.vector_store %arg13[%c0_16, %c0_17], %16 {strides = array<i32>} : memref<1x3200xf32, #tpu.memory_space<vmem>>, vector<1x128xf32>,
    %c1 = arith.constant 1 : index
    %c0_18 = arith.constant 0 : index
    %18 = vector.load %arg12[%c1, %c0_18] : memref<25x128xf32, #tpu.memory_space<vmem>>, vector<1x128xf32>
    %c0_19 = arith.constant 0 : index
    %c128 = arith.constant 128 : index
    %19 = vector.load %arg13[%c0_19, %c128] : memref<1x3200xf32, #tpu.memory_space<vmem>>, vector<1x128xf32>
    tpu.vector_store %arg13[%c0_19, %c128], %18 {strides = array<i32>} : memref<1x3200xf32, #tpu.memory_space<vmem>>, vector<1x128xf32>,
    %c2 = arith.constant 2 : index
    %c0_20 = arith.constant 0 : index
    %20 = vector.load %arg12[%c2, %c0_20] : memref<25x128xf32, #tpu.memory_space<vmem>>, vector<1x128xf32>
    %c0_21 = arith.constant 0 : index
    %c256 = arith.constant 256 : index
    %21 = vector.load %arg13[%c0_21, %c256] : memref<1x3200xf32, #tpu.memory_space<vmem>>, vector<1x128xf32>
    tpu.vector_store %arg13[%c0_21, %c256], %20 {strides = array<i32>} : memref<1x3200xf32, #tpu.memory_space<vmem>>, vector<1x128xf32>,
    %c3 = arith.constant 3 : index
    %c0_22 = arith.constant 0 : index
    %22 = vector.load %arg12[%c3, %c0_22] : memref<25x128xf32, #tpu.memory_space<vmem>>, vector<1x128xf32>
    %c0_23 = arith.constant 0 : index
    %c384 = arith.constant 384 : index
    %23 = vector.load %arg13[%c0_23, %c384] : memref<1x3200xf32, #tpu.memory_space<vmem>>, vector<1x128xf32>
    tpu.vector_store %arg13[%c0_23, %c384], %22 {strides = array<i32>} : memref<1x3200xf32, #tpu.memory_space<vmem>>, vector<1x128xf32>,
    %c4 = arith.constant 4 : index
    %c0_24 = arith.constant 0 : index
    %24 = vector.load %arg12[%c4, %c0_24] : memref<25x128xf32, #tpu.memory_space<vmem>>, vector<1x128xf32>
    %c0_25 = arith.constant 0 : index
    %c512 = arith.constant 512 : index
    %25 = vector.load %arg13[%c0_25, %c512] : memref<1x3200xf32, #tpu.memory_space<vmem>>, vector<1x128xf32>
    tpu.vector_store %arg13[%c0_25, %c512], %24 {strides = array<i32>} : memref<1x3200xf32, #tpu.memory_space<vmem>>, vector<1x128xf32>,
    %c5 = arith.constant 5 : index
    %c0_26 = arith.constant 0 : index
    %26 = vector.load %arg12[%c5, %c0_26] : memref<25x128xf32, #tpu.memory_space<vmem>>, vector<1x128xf32>
    %c0_27 = arith.constant 0 : index
    %c640 = arith.constant 640 : index
    %27 = vector.load %arg13[%c0_27, %c640] : memref<1x3200xf32, #tpu.memory_space<vmem>>, vector<1x128xf32>
    tpu.vector_store %arg13[%c0_27, %c640], %26 {strides = array<i32>} : memref<1x3200xf32, #tpu.memory_space<vmem>>, vector<1x128xf32>,
    %c6 = arith.constant 6 : index
    %c0_28 = arith.constant 0 : index
    %28 = vector.load %arg12[%c6, %c0_28] : memref<25x128xf32, #tpu.memory_space<vmem>>, vector<1x128xf32>
    %c0_29 = arith.constant 0 : index
    %c768 = arith.constant 768 : index
    %29 = vector.load %arg13[%c0_29, %c768] : memref<1x3200xf32, #tpu.memory_space<vmem>>, vector<1x128xf32>
    tpu.vector_store %arg13[%c0_29, %c768], %28 {strides = array<i32>} : memref<1x3200xf32, #tpu.memory_space<vmem>>, vector<1x128xf32>,
    %c7 = arith.constant 7 : index
    %c0_30 = arith.constant 0 : index
    %30 = vector.load %arg12[%c7, %c0_30] : memref<25x128xf32, #tpu.memory_space<vmem>>, vector<1x128xf32>
    %c0_31 = arith.constant 0 : index
    %c896 = arith.constant 896 : index
    %31 = vector.load %arg13[%c0_31, %c896] : memref<1x3200xf32, #tpu.memory_space<vmem>>, vector<1x128xf32>
    tpu.vector_store %arg13[%c0_31, %c896], %30 {strides = array<i32>} : memref<1x3200xf32, #tpu.memory_space<vmem>>, vector<1x128xf32>,
    %c8 = arith.constant 8 : index
    %c0_32 = arith.constant 0 : index
    %32 = vector.load %arg12[%c8, %c0_32] : memref<25x128xf32, #tpu.memory_space<vmem>>, vector<1x128xf32>
    %c0_33 = arith.constant 0 : index
    %c1024 = arith.constant 1024 : index
    %33 = vector.load %arg13[%c0_33, %c1024] : memref<1x3200xf32, #tpu.memory_space<vmem>>, vector<1x128xf32>
    tpu.vector_store %arg13[%c0_33, %c1024], %32 {strides = array<i32>} : memref<1x3200xf32, #tpu.memory_space<vmem>>, vector<1x128xf32>,
    %c9 = arith.constant 9 : index
    %c0_34 = arith.constant 0 : index
    %34 = vector.load %arg12[%c9, %c0_34] : memref<25x128xf32, #tpu.memory_space<vmem>>, vector<1x128xf32>
    %c0_35 = arith.constant 0 : index
    %c1152 = arith.constant 1152 : index
    %35 = vector.load %arg13[%c0_35, %c1152] : memref<1x3200xf32, #tpu.memory_space<vmem>>, vector<1x128xf32>
    tpu.vector_store %arg13[%c0_35, %c1152], %34 {strides = array<i32>} : memref<1x3200xf32, #tpu.memory_space<vmem>>, vector<1x128xf32>,
    %c10 = arith.constant 10 : index
    %c0_36 = arith.constant 0 : index
    %36 = vector.load %arg12[%c10, %c0_36] : memref<25x128xf32, #tpu.memory_space<vmem>>, vector<1x128xf32>
    %c0_37 = arith.constant 0 : index
    %c1280 = arith.constant 1280 : index
    %37 = vector.load %arg13[%c0_37, %c1280] : memref<1x3200xf32, #tpu.memory_space<vmem>>, vector<1x128xf32>
    tpu.vector_store %arg13[%c0_37, %c1280], %36 {strides = array<i32>} : memref<1x3200xf32, #tpu.memory_space<vmem>>, vector<1x128xf32>,
    %c11 = arith.constant 11 : index
    %c0_38 = arith.constant 0 : index
    %38 = vector.load %arg12[%c11, %c0_38] : memref<25x128xf32, #tpu.memory_space<vmem>>, vector<1x128xf32>
    %c0_39 = arith.constant 0 : index
    %c1408 = arith.constant 1408 : index
    %39 = vector.load %arg13[%c0_39, %c1408] : memref<1x3200xf32, #tpu.memory_space<vmem>>, vector<1x128xf32>
    tpu.vector_store %arg13[%c0_39, %c1408], %38 {strides = array<i32>} : memref<1x3200xf32, #tpu.memory_space<vmem>>, vector<1x128xf32>,
    %c12 = arith.constant 12 : index
    %c0_40 = arith.constant 0 : index
    %40 = vector.load %arg12[%c12, %c0_40] : memref<25x128xf32, #tpu.memory_space<vmem>>, vector<1x128xf32>
    %c0_41 = arith.constant 0 : index
    %c1536 = arith.constant 1536 : index
    %41 = vector.load %arg13[%c0_41, %c1536] : memref<1x3200xf32, #tpu.memory_space<vmem>>, vector<1x128xf32>
    tpu.vector_store %arg13[%c0_41, %c1536], %40 {strides = array<i32>} : memref<1x3200xf32, #tpu.memory_space<vmem>>, vector<1x128xf32>,
    %c13 = arith.constant 13 : index
    %c0_42 = arith.constant 0 : index
    %42 = vector.load %arg12[%c13, %c0_42] : memref<25x128xf32, #tpu.memory_space<vmem>>, vector<1x128xf32>
    %c0_43 = arith.constant 0 : index
    %c1664 = arith.constant 1664 : index
    %43 = vector.load %arg13[%c0_43, %c1664] : memref<1x3200xf32, #tpu.memory_space<vmem>>, vector<1x128xf32>
    tpu.vector_store %arg13[%c0_43, %c1664], %42 {strides = array<i32>} : memref<1x3200xf32, #tpu.memory_space<vmem>>, vector<1x128xf32>,
    %c14 = arith.constant 14 : index
    %c0_44 = arith.constant 0 : index
    %44 = vector.load %arg12[%c14, %c0_44] : memref<25x128xf32, #tpu.memory_space<vmem>>, vector<1x128xf32>
    %c0_45 = arith.constant 0 : index
    %c1792 = arith.constant 1792 : index
    %45 = vector.load %arg13[%c0_45, %c1792] : memref<1x3200xf32, #tpu.memory_space<vmem>>, vector<1x128xf32>
    tpu.vector_store %arg13[%c0_45, %c1792], %44 {strides = array<i32>} : memref<1x3200xf32, #tpu.memory_space<vmem>>, vector<1x128xf32>,
    %c15 = arith.constant 15 : index
    %c0_46 = arith.constant 0 : index
    %46 = vector.load %arg12[%c15, %c0_46] : memref<25x128xf32, #tpu.memory_space<vmem>>, vector<1x128xf32>
    %c0_47 = arith.constant 0 : index
    %c1920 = arith.constant 1920 : index
    %47 = vector.load %arg13[%c0_47, %c1920] : memref<1x3200xf32, #tpu.memory_space<vmem>>, vector<1x128xf32>
    tpu.vector_store %arg13[%c0_47, %c1920], %46 {strides = array<i32>} : memref<1x3200xf32, #tpu.memory_space<vmem>>, vector<1x128xf32>,
    %c16 = arith.constant 16 : index
    %c0_48 = arith.constant 0 : index
    %48 = vector.load %arg12[%c16, %c0_48] : memref<25x128xf32, #tpu.memory_space<vmem>>, vector<1x128xf32>
    %c0_49 = arith.constant 0 : index
    %c2048 = arith.constant 2048 : index
    %49 = vector.load %arg13[%c0_49, %c2048] : memref<1x3200xf32, #tpu.memory_space<vmem>>, vector<1x128xf32>
    tpu.vector_store %arg13[%c0_49, %c2048], %48 {strides = array<i32>} : memref<1x3200xf32, #tpu.memory_space<vmem>>, vector<1x128xf32>,
    %c17 = arith.constant 17 : index
    %c0_50 = arith.constant 0 : index
    %50 = vector.load %arg12[%c17, %c0_50] : memref<25x128xf32, #tpu.memory_space<vmem>>, vector<1x128xf32>
    %c0_51 = arith.constant 0 : index
    %c2176 = arith.constant 2176 : index
    %51 = vector.load %arg13[%c0_51, %c2176] : memref<1x3200xf32, #tpu.memory_space<vmem>>, vector<1x128xf32>
    tpu.vector_store %arg13[%c0_51, %c2176], %50 {strides = array<i32>} : memref<1x3200xf32, #tpu.memory_space<vmem>>, vector<1x128xf32>,
    %c18 = arith.constant 18 : index
    %c0_52 = arith.constant 0 : index
    %52 = vector.load %arg12[%c18, %c0_52] : memref<25x128xf32, #tpu.memory_space<vmem>>, vector<1x128xf32>
    %c0_53 = arith.constant 0 : index
    %c2304 = arith.constant 2304 : index
    %53 = vector.load %arg13[%c0_53, %c2304] : memref<1x3200xf32, #tpu.memory_space<vmem>>, vector<1x128xf32>
    tpu.vector_store %arg13[%c0_53, %c2304], %52 {strides = array<i32>} : memref<1x3200xf32, #tpu.memory_space<vmem>>, vector<1x128xf32>,
    %c19 = arith.constant 19 : index
    %c0_54 = arith.constant 0 : index
    %54 = vector.load %arg12[%c19, %c0_54] : memref<25x128xf32, #tpu.memory_space<vmem>>, vector<1x128xf32>
    %c0_55 = arith.constant 0 : index
    %c2432 = arith.constant 2432 : index
    %55 = vector.load %arg13[%c0_55, %c2432] : memref<1x3200xf32, #tpu.memory_space<vmem>>, vector<1x128xf32>
    tpu.vector_store %arg13[%c0_55, %c2432], %54 {strides = array<i32>} : memref<1x3200xf32, #tpu.memory_space<vmem>>, vector<1x128xf32>,
    %c20 = arith.constant 20 : index
    %c0_56 = arith.constant 0 : index
    %56 = vector.load %arg12[%c20, %c0_56] : memref<25x128xf32, #tpu.memory_space<vmem>>, vector<1x128xf32>
    %c0_57 = arith.constant 0 : index
    %c2560 = arith.constant 2560 : index
    %57 = vector.load %arg13[%c0_57, %c2560] : memref<1x3200xf32, #tpu.memory_space<vmem>>, vector<1x128xf32>
    tpu.vector_store %arg13[%c0_57, %c2560], %56 {strides = array<i32>} : memref<1x3200xf32, #tpu.memory_space<vmem>>, vector<1x128xf32>,
    %c21 = arith.constant 21 : index
    %c0_58 = arith.constant 0 : index
    %58 = vector.load %arg12[%c21, %c0_58] : memref<25x128xf32, #tpu.memory_space<vmem>>, vector<1x128xf32>
    %c0_59 = arith.constant 0 : index
    %c2688 = arith.constant 2688 : index
    %59 = vector.load %arg13[%c0_59, %c2688] : memref<1x3200xf32, #tpu.memory_space<vmem>>, vector<1x128xf32>
    tpu.vector_store %arg13[%c0_59, %c2688], %58 {strides = array<i32>} : memref<1x3200xf32, #tpu.memory_space<vmem>>, vector<1x128xf32>,
    %c22 = arith.constant 22 : index
    %c0_60 = arith.constant 0 : index
    %60 = vector.load %arg12[%c22, %c0_60] : memref<25x128xf32, #tpu.memory_space<vmem>>, vector<1x128xf32>
    %c0_61 = arith.constant 0 : index
    %c2816 = arith.constant 2816 : index
    %61 = vector.load %arg13[%c0_61, %c2816] : memref<1x3200xf32, #tpu.memory_space<vmem>>, vector<1x128xf32>
    tpu.vector_store %arg13[%c0_61, %c2816], %60 {strides = array<i32>} : memref<1x3200xf32, #tpu.memory_space<vmem>>, vector<1x128xf32>,
    %c23 = arith.constant 23 : index
    %c0_62 = arith.constant 0 : index
    %62 = vector.load %arg12[%c23, %c0_62] : memref<25x128xf32, #tpu.memory_space<vmem>>, vector<1x128xf32>
    %c0_63 = arith.constant 0 : index
    %c2944 = arith.constant 2944 : index
    %63 = vector.load %arg13[%c0_63, %c2944] : memref<1x3200xf32, #tpu.memory_space<vmem>>, vector<1x128xf32>
    tpu.vector_store %arg13[%c0_63, %c2944], %62 {strides = array<i32>} : memref<1x3200xf32, #tpu.memory_space<vmem>>, vector<1x128xf32>,
    %c24 = arith.constant 24 : index
    %c0_64 = arith.constant 0 : index
    %64 = vector.load %arg12[%c24, %c0_64] : memref<25x128xf32, #tpu.memory_space<vmem>>, vector<1x128xf32>
    %c0_65 = arith.constant 0 : index
    %c3072 = arith.constant 3072 : index
    %65 = vector.load %arg13[%c0_65, %c3072] : memref<1x3200xf32, #tpu.memory_space<vmem>>, vector<1x128xf32>
    tpu.vector_store %arg13[%c0_65, %c3072], %64 {strides = array<i32>} : memref<1x3200xf32, #tpu.memory_space<vmem>>, vector<1x128xf32>,
    %c0_66 = arith.constant 0 : index
    %c0_67 = arith.constant 0 : index
    %66 = vector.load %arg13[%c0_66, %c0_67] : memref<1x3200xf32, #tpu.memory_space<vmem>>, vector<1x3200xf32>
    %67 = arith.truncf %66 : vector<1x3200xf32> to vector<1x3200xbf16>
    %c0_68 = arith.constant 0 : index
    %c0_69 = arith.constant 0 : index
    %68 = vector.load %arg6[%c0_68, %c0_69] : memref<3200x768xbf16, #tpu.memory_space<vmem>>, vector<3200x768xbf16>
    %cst_70 = arith.constant dense<0.000000e+00> : vector<1x768xf32>
    %69 = tpu.matmul %67, %68, %cst_70 {dimension_numbers = #tpu.dot_dimension_numbers<[1], [0], [0], [1], [0, 0, 1, 1], [], []>} : vector<1x3200xbf16>, vector<3200x768xbf16>, vector<1x768xf32> -> vector<1x768xf32>
    %c0_71 = arith.constant 0 : index
    %c0_72 = arith.constant 0 : index
    %70 = vector.load %arg7[%c0_71, %c0_72] : memref<1x768xf32, #tpu.memory_space<vmem>>, vector<1x768xf32>
    %71 = arith.mulf %69, %70 : vector<1x768xf32>
    %c0_73 = arith.constant 0 : index
    %c0_74 = arith.constant 0 : index
    %72 = vector.load %arg8[%c0_73, %c0_74] : memref<1x768xf32, #tpu.memory_space<vmem>>, vector<1x768xf32>
    %73 = arith.addf %71, %72 : vector<1x768xf32>
    %cst_75 = arith.constant 0.000000e+00 : f32
    %74 = vector.broadcast %cst_75 : f32 to vector<1x768xf32>
    %75 = arith.maximumf %73, %74 : vector<1x768xf32>
    %76 = arith.truncf %75 : vector<1x768xf32> to vector<1x768xbf16>
    %c0_76 = arith.constant 0 : index
    %c0_77 = arith.constant 0 : index
    %77 = vector.load %arg9[%c0_76, %c0_77] : memref<768x128xbf16, #tpu.memory_space<vmem>>, vector<768x128xbf16>
    %cst_78 = arith.constant dense<0.000000e+00> : vector<1x128xf32>
    %78 = tpu.matmul %76, %77, %cst_78 {dimension_numbers = #tpu.dot_dimension_numbers<[1], [0], [0], [1], [0, 0, 1, 1], [], []>} : vector<1x768xbf16>, vector<768x128xbf16>, vector<1x128xf32> -> vector<1x128xf32>
    %c0_79 = arith.constant 0 : index
    %c0_80 = arith.constant 0 : index
    %79 = vector.load %arg10[%c0_79, %c0_80] : memref<1x128xf32, #tpu.memory_space<vmem>>, vector<1x128xf32>
    %80 = arith.addf %78, %79 : vector<1x128xf32>
    %c0_81 = arith.constant 0 : index
    %c0_82 = arith.constant 0 : index
    %c0_83 = arith.constant 0 : index
    %81 = vector.load %arg11[%c0_81, %c0_82, %c0_83] : memref<1x1x128xf32, #tpu.memory_space<vmem>>, vector<1x1x128xf32>
    %82 = vector.shape_cast %81 : vector<1x1x128xf32> to vector<1x128xf32>
    %83 = vector.shape_cast %80 : vector<1x128xf32> to vector<1x1x128xf32>
    tpu.vector_store %arg11[%c0_81, %c0_82, %c0_83], %83 {strides = array<i32>} : memref<1x1x128xf32, #tpu.memory_space<vmem>>, vector<1x1x128xf32>,
    return
  }
  func.func @transform_0(%arg0: i32) -> (i32, i32, i32) {
    %c0_i32 = arith.constant 0 : i32
    %c0_i32_0 = arith.constant 0 : i32
    %c0_i32_1 = arith.constant 0 : i32
    return %arg0, %c0_i32, %c0_i32_0 : i32, i32, i32
  }
  func.func @transform_1(%arg0: i32) -> (i32, i32) {
    %c0_i32 = arith.constant 0 : i32
    %c0_i32_0 = arith.constant 0 : i32
    %c0_i32_1 = arith.constant 0 : i32
    return %c0_i32, %c0_i32_0 : i32, i32
  }
  func.func @transform_2(%arg0: i32) -> (i32, i32) {
    %c0_i32 = arith.constant 0 : i32
    %c0_i32_0 = arith.constant 0 : i32
    %c0_i32_1 = arith.constant 0 : i32
    return %c0_i32, %c0_i32_0 : i32, i32
  }
  func.func @transform_3(%arg0: i32) -> (i32, i32) {
    %c0_i32 = arith.constant 0 : i32
    %c0_i32_0 = arith.constant 0 : i32
    %c0_i32_1 = arith.constant 0 : i32
    return %c0_i32, %c0_i32_0 : i32, i32
  }
  func.func @transform_4(%arg0: i32) -> (i32, i32) {
    %c0_i32 = arith.constant 0 : i32
    %c0_i32_0 = arith.constant 0 : i32
    %c0_i32_1 = arith.constant 0 : i32
    return %c0_i32, %c0_i32_0 : i32, i32
  }
  func.func @transform_5(%arg0: i32) -> (i32, i32) {
    %c0_i32 = arith.constant 0 : i32
    %c0_i32_0 = arith.constant 0 : i32
    %c0_i32_1 = arith.constant 0 : i32
    return %c0_i32, %c0_i32_0 : i32, i32
  }
  func.func @transform_6(%arg0: i32) -> (i32, i32) {
    %c0_i32 = arith.constant 0 : i32
    %c0_i32_0 = arith.constant 0 : i32
    %c0_i32_1 = arith.constant 0 : i32
    return %c0_i32, %c0_i32_0 : i32, i32
  }
  func.func @transform_7(%arg0: i32) -> (i32, i32) {
    %c0_i32 = arith.constant 0 : i32
    %c0_i32_0 = arith.constant 0 : i32
    %c0_i32_1 = arith.constant 0 : i32
    return %c0_i32, %c0_i32_0 : i32, i32
  }
  func.func @transform_8(%arg0: i32) -> (i32, i32) {
    %c0_i32 = arith.constant 0 : i32
    %c0_i32_0 = arith.constant 0 : i32
    %c0_i32_1 = arith.constant 0 : i32
    return %c0_i32, %c0_i32_0 : i32, i32
  }
  func.func @transform_9(%arg0: i32) -> (i32, i32) {
    %c0_i32 = arith.constant 0 : i32
    %c0_i32_0 = arith.constant 0 : i32
    %c0_i32_1 = arith.constant 0 : i32
    return %c0_i32, %c0_i32_0 : i32, i32
  }
  func.func @transform_10(%arg0: i32) -> (i32, i32, i32) {
    %c0_i32 = arith.constant 0 : i32
    %c0_i32_0 = arith.constant 0 : i32
    %c0_i32_1 = arith.constant 0 : i32
    return %arg0, %c0_i32, %c0_i32_0 : i32, i32, i32
  }
}

</mosaic_0001>

<bundles_post_ra>
// kernel: inception_aux_forward.1
= control target key start
LH: loop header
LB: loop body
LE: loop exit
PB: predicated region body
PF: predicated region fallthrough
CT: control target
= control target key end

     0   :  { %15 = vsyncpa [#allocation5], 0  ;;  %s18191_s0 = inlined_call_operand.vmem [shape: bf16[2,289,4], index: 0, kind: input, shape index: {}]   ;;  %s18192_s1 = inlined_call_operand.vmem [shape: bf16[25,289], index: 1, kind: input, shape index: {}]   ;;  %s18193_s2 = inlined_call_operand.vmem [shape: bf16[4,128], index: 2, kind: input, shape index: {}]   ;;  %s18194_s3 = inlined_call_operand.vmem [shape: f32[1,128], index: 3, kind: input, shape index: {}]   ;;  %s18195_s4 = inlined_call_operand.vmem [shape: f32[1,128], index: 4, kind: input, shape index: {}]   ;;  %s18196_s5 = inlined_call_operand.vmem [shape: bf16[3200,768], index: 5, kind: input, shape index: {}]   ;;  %s18197_s6 = inlined_call_operand.vmem [shape: f32[1,768], index: 6, kind: input, shape index: {}]   ;;  %s18198_s7 = inlined_call_operand.vmem [shape: f32[1,768], index: 7, kind: input, shape index: {}]   ;;  %s18199_s8 = inlined_call_operand.vmem [shape: bf16[768,128], index: 8, kind: input, shape index: {}]   ;;  %s18200_s9 = inlined_call_operand.vmem [shape: f32[1,128], index: 9, kind: input, shape index: {}]   ;;  %s18201_s10 = inlined_call_operand.hbm [shape: f32[2,1,128], index: 10, kind: output, shape index: {}]  }
   0x1   :  { %17 = vsyncpa [#allocation5 + $0x1], 0  ;;  %s13865_s13 = smov 0   ;;  %s13867_s14 = smov 0  }
   0x2   :  { %s13869_s15 = smov 0   ;;  %s13871_s16 = smov 0  }
   0x3 LB: > { %s13886_s17 = sadd.s32 4294967295, %s13806_s16   ;;  %s10421_s18 = sadd.s32 4294967294, %s13806_s16   ;;  %s13806_s16 = sphi %s13871_s16, %s18209_s16   ;;  %s13802_s15 = sphi %s13869_s15, %s18208_s15   ;;  %s13798_s14 = sphi %s13867_s14, %s18207_s14   ;;  %s13794_s13 = sphi %s13865_s13, %s18206_s13  }
   0x4   : > { %s13890_s19 = sadd.s32 1, %s13806_s16   ;;  %s245_s20 = sadd.s32 1, %s13802_s15 }
   0x5   : > { %s242_s21 = ssub.s32 %s13806_s16, %s13890_s19  ;;  %p255_p0 = scmp.ne.s32.totalorder %s13802_s15, %s13798_s14 }
   0x6   : > { %p243_p1 = scmp.eq.s32.totalorder %s242_s21, 0  ;;  %p256_p2 = scmp.eq.s32.totalorder %s13886_s17, 1 }
   0x7   : > { %p261_p3 = scmp.ne.s32.totalorder %s13798_s14, %s13794_s13  ;;  %p262_p4 = scmp.eq.s32.totalorder %s10421_s18, 1 }
   0x8   : > { %s13901_s22 = scalar_select %p243_p1, %s13802_s15, %s245_s20  }
   0x9   : > { %p13903_p5 = por %p256_p2, %p255_p0  ;;  %p13907_p6 = por %p262_p4, %p261_p3 }
   0xa   : > { %p10424_p7 = scmp.ge.s32.totalorder %s13806_s16, 1  ;;  %p315_p8 = scmp.lt.s32.totalorder %s13806_s16, 3 }
   0xc   : > { %p316_p9 = pnand %p10424_p7, %p315_p8 }
   0xd   : > { %p352_p10 = scmp.lt.s32.totalorder (!%p316_p9), %s13886_s17, 1  ;;  %s350_s11 = sand.u32 (!%p316_p9), 1, %s13798_s14  }
   0xe   : > { %319 = sbr.rel (%p316_p9) target bundleno = 2069 (0x815), region = 60  ;;  %s11706_s12 = sshll.u32 (!%p316_p9), %s13886_s17, 4 }
   0xf   : > { %s18156_s26 = scalar_lea.hbm (!%p316_p9), %s18201_s10, %s11706_s12 }
  0x13   : > { %v11890_v0 = vld [vmem:[%s18192_s1 + $0x4] ss:$12 sps:$4 sm:$0xff]   ;;  %vm544_vm0 = vcmask 269312   ;;  %s353_s27 = scalar_select %p352_p10, %s13886_s17, 1  ;;  %v11891_v1 = vld [vmem:[%s18192_s1 + $0x8] ss:$12 sps:$4 sm:$0xff]  }
  0x14   : > { %589 = vmatprep.mubr.bf16.mxu0 %v11890_v0  ;;  %11817 = vmatprep.mubr.msk.bf16.mxu1 %vm544_vm0, %v11891_v1  ;;  %vm551_vm1 = vcmask 1040384   ;;  %v13808_v10 = vmov 0   ;;  %v11892_v23 = vld [vmem:[%s18192_s1 + $0x20] ss:$12 sps:$4 sm:$0x1f]   ;;  %vm665_vm2 = vcmask 1041408  }
  0x15   : > { %s11828_s30 = smul.u32 148, %s353_s27  ;;  %v553_v11 = vsel %vm551_vm1, 65535, %v13808_v10  ;;  %v11888_v25 = vld [vmem:[%s18192_s1] ss:$12 sps:$4 sm:$0xff]   ;;  %v11899_v31 = vld [vmem:[%s18196_s5 + $0x450] ss:$24 sps:$4 sm:$0xff]  }
  0x16   : > { %v11893_v26 = vld [vmem:[%s18192_s1 + $0x1c] ss:$12 sps:$4 sm:$0x1f]   ;;  %v11895_v27 = vld [vmem:[%s18192_s1 + $0x18] ss:$12 sps:$4 sm:$0x1f]  }
  0x17   : > { %s13925_s18 = scalar_lea.vmem %s18191_s0, %s11828_s30  ;;  %v657_v28 = vld [vmem:[%s18193_s2] sm:$0x3]  ;;  %v11898_v30 = vld [vmem:[%s18196_s5 + $0x154] ss:$24 sps:$4 sm:$0xff]   ;;  %v11907_v34 = vld [vmem:[%s18196_s5 + $0x424] ss:$24 sps:$4 sm:$0xff]  }
  0x18   : > { %v11869_v2 = vld [vmem:[%s13925_s18 + $0x78] sm:$0xff]   ;;  %v11871_v4 = vld [vmem:[%s13925_s18 + $0x70] sm:$0xff]   ;;  %v11873_v6 = vld [vmem:[%s13925_s18 + $0x68] sm:$0xff]   ;;  %v667_v29 = vsel %vm665_vm2, %v657_v28, 0  ;;  %vm658_vm3 = vcmask 31744   ;;  %s10354_s27 = scalar_lea.sflag [#allocation5], %s350_s11 }
  0x19   : > { %v11870_v3 = vld [vmem:[%s13925_s18 + $0x38] sm:$0xff]   ;;  %11709 = vmatprep.subr.bf16.mxu0 %v11869_v2  ;;  %v11872_v5 = vld [vmem:[%s13925_s18 + $0x30] sm:$0xff]   ;;  %v11874_v7 = vld [vmem:[%s13925_s18 + $0x28] sm:$0xff]   ;;  %s13809_s17 = smov [#allocation4]  }
  0x1a   : > { %11710 = vmatpush3.bf16.msra.mxu0 %v11870_v3  ;;  %v11875_v8 = vld [vmem:[%s13925_s18 + $0x60] sm:$0xff]   ;;  %v11877_v12 = vld [vmem:[%s13925_s18 + $0x58] sm:$0xff]   ;;  %v11881_v13 = vld [vmem:[%s13925_s18 + $0x90] ss:$0 sps:$4 sm:$0x11]   ;;  %s13750_s29 = sshll.u32 %s13809_s17, 4  ;;  %s13751_s29 = int_to_ptr.vmem [resolvable:$false] %s13750_s29 }
  0x1b   : > { %11711 = vmatprep.subr.bf16.mxu0 %v11871_v4  ;;  %v11876_v9 = vld [vmem:[%s13925_s18 + $0x20] sm:$0xff]   ;;  %v11878_v14 = vld [vmem:[%s13925_s18 + $0x18] sm:$0xff]   ;;  %v555_v15 = vand.u32 %v11881_v13, %v553_v11  ;;  %v11884_v16 = vld [vmem:[%s13925_s18 + $0x88] sm:$0xff]   ;;  %s13752_s30 = scalar_lea.vmem %s13751_s29, 32 }
  0x1c   : > { %v11879_v17 = vld [vmem:[%s13925_s18 + $0x50] sm:$0xff]   ;;  %v11882_v19 = vld [vmem:[%s13925_s18 + $0x48] sm:$0xff]   ;;  %v11887_v20 = vld [vmem:[%s13925_s18 + $0x80] sm:$0xff]  }
  0x1d   : > { %11811 = vmatprep.subr.bf16.mxu1 %v555_v15  ;;  %v11880_v18 = vld [vmem:[%s13925_s18 + $0x10] sm:$0xff]   ;;  %v11883_v21 = vld [vmem:[%s13925_s18 + $0x8] sm:$0xff]   ;;  %v11885_v22 = vld [vmem:[%s13925_s18 + $0x40] sm:$0xff]  }
  0x1e   : > { %11712 = vmatpush3.bf16.msra.mxu0 %v11872_v5  ;;  %11812 = vmatpush3.bf16.msra.mxu1 %v555_v15  ;;  %v11886_v24 = vld [vmem:[%s13925_s18] sm:$0xff]   ;;  %v11901_v32 = vld [vmem:[%s18196_s5 + $0x454] ss:$24 sps:$4 sm:$0xff]   ;;  %v11911_v35 = vld [vmem:[%s18196_s5 + $0x3f0] ss:$24 sps:$4 sm:$0xff]   ;;  %s351_s18 = scalar_lea.vmem [#allocation4], %s350_s11 }
  0x1f   : > { %11713 = vmatprep.subr.bf16.mxu0 %v11873_v6  ;;  %11813 = vmatprep.subr.bf16.mxu1 %v11884_v16  ;;  %v11905_v33 = vld [vmem:[%s18196_s5 + $0x420] ss:$24 sps:$4 sm:$0xff]   ;;  %v11913_v36 = vld [vmem:[%s18196_s5 + $0x3f4] ss:$24 sps:$4 sm:$0xff]   ;;  %v11919_v38 = vld [vmem:[%s18196_s5 + $0x3c4] ss:$24 sps:$4 sm:$0xff]  }
  0x20   : > { %v11917_v37 = vld [vmem:[%s18196_s5 + $0x3c0] ss:$24 sps:$4 sm:$0xff]   ;;  %v11923_v39 = vld [vmem:[%s18196_s5 + $0x390] ss:$24 sps:$4 sm:$0xff]   ;;  %v11925_v40 = vld [vmem:[%s18196_s5 + $0x394] ss:$24 sps:$4 sm:$0xff]  }
  0x21   : > { %v11929_v41 = vld [vmem:[%s18196_s5 + $0x360] ss:$24 sps:$4 sm:$0xff]   ;;  %v11931_v42 = vld [vmem:[%s18196_s5 + $0x364] ss:$24 sps:$4 sm:$0xff]   ;;  %v11935_v43 = vld [vmem:[%s18196_s5 + $0x330] ss:$24 sps:$4 sm:$0xff]  }
  0x22   : > { %11714 = vmatpush3.bf16.msra.mxu0 %v11874_v7  ;;  %11814 = vmatpush3.bf16.msra.mxu1 %v11884_v16  ;;  %v11937_v44 = vld [vmem:[%s18196_s5 + $0x334] ss:$24 sps:$4 sm:$0xff]   ;;  %v11941_v45 = vld [vmem:[%s18196_s5 + $0x300] ss:$24 sps:$4 sm:$0xff]   ;;  %v11943_v46 = vld [vmem:[%s18196_s5 + $0x304] ss:$24 sps:$4 sm:$0xff]  }
  0x23   : > { %11715 = vmatprep.subr.bf16.mxu0 %v11875_v8  ;;  %11815 = vmatprep.subr.bf16.mxu1 %v11887_v20  ;;  %v11947_v47 = vld [vmem:[%s18196_s5 + $0x5d0] ss:$24 sps:$4 sm:$0xff]   ;;  %v11949_v48 = vld [vmem:[%s18196_s5 + $0x5d4] ss:$24 sps:$4 sm:$0xff]   ;;  %v11904_v7 = vld [vmem:[%s18196_s5 + $0x124] ss:$24 sps:$4 sm:$0xff]  }
  0x24   : > { %v11896_v4 = vld [vmem:[%s18196_s5 + $0x150] ss:$24 sps:$4 sm:$0xff]   ;;  %v11910_v11 = vld [vmem:[%s18196_s5 + $0xf4] ss:$24 sps:$4 sm:$0xff]   ;;  %v11916_v13 = vld [vmem:[%s18196_s5 + $0xc4] ss:$24 sps:$4 sm:$0xff]  }
  0x25   : > { %v11922_v15 = vld [vmem:[%s18196_s5 + $0x94] ss:$24 sps:$4 sm:$0xff]   ;;  %v11920_v16 = vld [vmem:[%s18196_s5 + $0x90] ss:$24 sps:$4 sm:$0xff]   ;;  %s10366_s20 = sshll.u32 %s351_s18, 4  ;;  %s10367_s20 = int_to_ptr.vmem [resolvable:$true] %s10366_s20 }
  0x26   : > { %11716 = vmatpush3.bf16.msra.mxu0 %v11876_v9  ;;  %11816 = vmatpush3.bf16.msra.mxu1 %v11887_v20  ;;  %v11902_v9 = vld [vmem:[%s18196_s5 + $0x120] ss:$24 sps:$4 sm:$0xff]   ;;  %v11932_v20 = vld [vmem:[%s18196_s5 + $0x30] ss:$24 sps:$4 sm:$0xff]   ;;  %s13746_s28 = scalar_lea.vmem %s10367_s20, 16  ;;  %p13753_p0 = scmp.lt.s32.totalorder %s10367_s20, %s13751_s29 }
  0x27   : > { %11717 = vmatprep.subr.bf16.mxu0 %v11877_v12  ;;  %11827 = vmatprep.subr.msk.bf16.mxu1 %vm665_vm2, %v657_v28  ;;  %v11908_v12 = vld [vmem:[%s18196_s5 + $0xf0] ss:$24 sps:$4 sm:$0xff]   ;;  %v11953_v28 = vld [vmem:[%s18196_s5 + $0x5a0] ss:$24 sps:$4 sm:$0xff]   ;;  %p13747_p11 = scmp.ne.s32.totalorder %s10367_s20, %s13746_s28  ;;  %p13754_p1 = scmp.lt.s32.totalorder %s13752_s30, %s13746_s28 }
  0x29   : > { %11818 = vmatmul.mubr.msk.bf16.vlgmr.msra.gmra.mxu1 %vm544_vm0, %v11892_v23  ;;  %v11946_v23 = vld [vmem:[%s18196_s5 + $0x2d4] ss:$24 sps:$4 sm:$0xff]   ;;  %p13748_p12 = pnand %p13747_p11, %p13903_p5  ;;  %p13755_p2 = por %p13754_p1, %p13753_p0 }
  0x2a   : > { %11718 = vmatpush3.bf16.msra.mxu0 %v11878_v14  ;;  %11822 = vmatpush3.bf16.msra.mxu1 %v667_v29  ;;  %v11914_v14 = vld [vmem:[%s18196_s5 + $0xc0] ss:$24 sps:$4 sm:$0xff]   ;;  %v11958_v29 = vld [vmem:[%s18196_s5 + $0x274] ss:$24 sps:$4 sm:$0xff]  }
  0x2b   : > { %11719 = vmatprep.subr.bf16.mxu0 %v11879_v17  ;;  %8160 = vmatprep.subr.bf16.mxu1 %v11898_v30  ;;  %v11928_v17 = vld [vmem:[%s18196_s5 + $0x64] ss:$24 sps:$4 sm:$0xff]   ;;  %v11961_v30 = vld [vmem:[%s18196_s5 + $0x574] ss:$24 sps:$4 sm:$0xff]   ;;  %p13749_p13 = pneg %p13748_p12 }
  0x2d   : > { %p13756_p3 = pnand %p13755_p2, %p13749_p13 }
  0x2e   : > { %11720 = vmatpush3.bf16.msra.mxu0 %v11880_v18  ;;  %v11926_v18 = vld [vmem:[%s18196_s5 + $0x60] ss:$24 sps:$4 sm:$0xff]  }
  0x2f   : > { %11721 = vmatprep.subr.bf16.mxu0 %v11882_v19  ;;  %v11934_v19 = vld [vmem:[%s18196_s5 + $0x34] ss:$24 sps:$4 sm:$0xff]  }
  0x32   : > { %11722 = vmatpush3.bf16.msra.mxu0 %v11883_v21  ;;  %v11940_v21 = vld [vmem:[%s18196_s5 + $0x4] ss:$24 sps:$4 sm:$0xff]  }
  0x33   : > { %11723 = vmatprep.subr.bf16.mxu0 %v11885_v22  ;;  %v11938_v22 = vld [vmem:[%s18196_s5] ss:$24 sps:$4 sm:$0xff]  }
  0x36   : > { %11724 = vmatpush3.bf16.msra.mxu0 %v11886_v24  ;;  %v11944_v24 = vld [vmem:[%s18196_s5 + $0x2d0] ss:$24 sps:$4 sm:$0xff]  }
  0x37   : > { %8201 = vmatprep.subr.bf16.mxu0 %v11901_v32  ;;  %v11959_v32 = vld [vmem:[%s18196_s5 + $0x570] ss:$24 sps:$4 sm:$0xff]  }
  0x39   : > { %590 = vmatmul.mubr.bf16.vlgmr.msra.gmra.mxu0 %v11888_v25  ;;  %v11952_v25 = vld [vmem:[%s18196_s5 + $0x2a4] ss:$24 sps:$4 sm:$0xff]  }
  0x3a   : > { %597 = vmatprep.mubr.bf16.mxu0 %v11893_v26  ;;  %8202 = vmatpush1.bf16.msra.mxu0 %v11899_v31  ;;  %v11955_v26 = vld [vmem:[%s18196_s5 + $0x5a4] ss:$24 sps:$4 sm:$0xff]   ;;  %v11956_v31 = vld [vmem:[%s18196_s5 + $0x270] ss:$24 sps:$4 sm:$0xff]  }
  0x3b   : > { %8203 = vmatprep.subr.bf16.mxu0 %v11907_v34  ;;  %v11967_v34 = vld [vmem:[%s18196_s5 + $0x544] ss:$24 sps:$4 sm:$0xff]  }
  0x3e   : > { %8204 = vmatpush1.bf16.msra.mxu0 %v11905_v33  ;;  %v11964_v33 = vld [vmem:[%s18196_s5 + $0x244] ss:$24 sps:$4 sm:$0xff]  }
  0x3f   : > { %8205 = vmatprep.subr.bf16.mxu0 %v11913_v36  ;;  %v11965_v36 = vld [vmem:[%s18196_s5 + $0x540] ss:$24 sps:$4 sm:$0xff]  }
  0x41   : > { %598 = vmatmul.mubr.bf16.gmra.mxu0 %v11895_v27  ;;  %v11950_v27 = vld [vmem:[%s18196_s5 + $0x2a0] ss:$24 sps:$4 sm:$0xff]  }
  0x42   : > { %8206 = vmatpush1.bf16.msra.mxu0 %v11911_v35  ;;  %v11962_v35 = vld [vmem:[%s18196_s5 + $0x240] ss:$24 sps:$4 sm:$0xff]  }
  0x43   : > { %8207 = vmatprep.subr.bf16.mxu0 %v11919_v38  ;;  %v11973_v38 = vld [vmem:[%s18196_s5 + $0x514] ss:$24 sps:$4 sm:$0xff]  }
  0x46   : > { %8208 = vmatpush1.bf16.msra.mxu0 %v11917_v37  ;;  %v11970_v37 = vld [vmem:[%s18196_s5 + $0x214] ss:$24 sps:$4 sm:$0xff]  }
  0x47   : > { %8209 = vmatprep.subr.bf16.mxu0 %v11925_v40  ;;  %v11971_v40 = vld [vmem:[%s18196_s5 + $0x510] ss:$24 sps:$4 sm:$0xff]  }
  0x4a   : > { %8210 = vmatpush1.bf16.msra.mxu0 %v11923_v39  ;;  %v11968_v39 = vld [vmem:[%s18196_s5 + $0x210] ss:$24 sps:$4 sm:$0xff]  }
  0x4b   : > { %8211 = vmatprep.subr.bf16.mxu0 %v11931_v42  ;;  %v11979_v42 = vld [vmem:[%s18196_s5 + $0x4e4] ss:$24 sps:$4 sm:$0xff]  }
  0x4e   : > { %8212 = vmatpush1.bf16.msra.mxu0 %v11929_v41  ;;  %v11976_v41 = vld [vmem:[%s18196_s5 + $0x1e4] ss:$24 sps:$4 sm:$0xff]  }
  0x4f   : > { %8213 = vmatprep.subr.bf16.mxu0 %v11937_v44  ;;  %v11977_v44 = vld [vmem:[%s18196_s5 + $0x4e0] ss:$24 sps:$4 sm:$0xff]  }
  0x52   : > { %8214 = vmatpush1.bf16.msra.mxu0 %v11935_v43  ;;  %v11974_v43 = vld [vmem:[%s18196_s5 + $0x1e0] ss:$24 sps:$4 sm:$0xff]  }
  0x53   : > { %8215 = vmatprep.subr.bf16.mxu0 %v11943_v46  ;;  %v11985_v46 = vld [vmem:[%s18196_s5 + $0x4b4] ss:$24 sps:$4 sm:$0xff]  }
  0x56   : > { %8216 = vmatpush1.bf16.msra.mxu0 %v11941_v45  ;;  %v11982_v45 = vld [vmem:[%s18196_s5 + $0x1b4] ss:$24 sps:$4 sm:$0xff]  }
  0x57   : > { %8217 = vmatprep.subr.bf16.mxu0 %v11949_v48  ;;  %v11983_v48 = vld [vmem:[%s18196_s5 + $0x4b0] ss:$24 sps:$4 sm:$0xff]  }
  0x5a   : > { %8218 = vmatpush2.bf16.msra.mxu0 %v11947_v47  ;;  %v11980_v47 = vld [vmem:[%s18196_s5 + $0x1b0] ss:$24 sps:$4 sm:$0xff]  }
  0x5b   : > { %8219 = vmatprep.subr.bf16.mxu0 %v11955_v26 }
  0x5e   : > { %8220 = vmatpush2.bf16.msra.mxu0 %v11953_v28 }
  0x5f   : > { %8221 = vmatprep.subr.bf16.mxu0 %v11961_v30 }
  0x62   : > { %8222 = vmatpush2.bf16.msra.mxu0 %v11959_v32 }
  0x63   : > { %8223 = vmatprep.subr.bf16.mxu0 %v11967_v34 }
  0x66   : > { %8224 = vmatpush2.bf16.msra.mxu0 %v11965_v36 }
  0x67   : > { %8225 = vmatprep.subr.bf16.mxu0 %v11973_v38 }
  0x6a   : > { %8226 = vmatpush2.bf16.msra.mxu0 %v11971_v40 }
  0x6b   : > { %8227 = vmatprep.subr.bf16.mxu0 %v11979_v42 }
  0x6e   : > { %8228 = vmatpush2.bf16.msra.mxu0 %v11977_v44 }
  0x6f   : > { %8229 = vmatprep.subr.bf16.mxu0 %v11985_v46 }
  0x72   : > { %8230 = vmatpush2.bf16.msra.mxu0 %v11983_v48  ;;  %v11992_v48 = vld [vmem:[%s18196_s5 + $0x750] ss:$24 sps:$4 sm:$0xff]  }
  0xe9   : > { %v11819_v49 = vpop.f32.mrf.mxu1 }
  0xeb   : > { %v640_v50 = vpop.f32.mrf.mxu1 }
  0xed   : > { %v11820_v53 = vpop.f32.mrf.mxu1 }
  0xef   : > { %v643_v57 = vpop.f32.mrf.mxu1 }
  0xf9   : > { %v11725_v51 = vpop.f32.mrf.mxu0 }
  0xfb   : > { %v11726_v52 = vpop.f32.mrf.mxu0 }
  0xfc   : > { %v11727_v55 = vadd.f32 %v11726_v52, %v11725_v51  ;;  %v11991_v51 = vld [vmem:[%s18196_s5 + $0x484] ss:$24 sps:$4 sm:$0xff]   ;;  %v11989_v52 = vld [vmem:[%s18196_s5 + $0x480] ss:$24 sps:$4 sm:$0xff]  }
  0xfd   : > { %v11728_v54 = vpop.f32.mrf.mxu0  ;;  %8231 = vmatprep.subr.bf16.mxu0 %v11991_v51 }
  0xfe   : > { %v641_v60 = vadd.f32 %v11727_v55, %v640_v50  ;;  %v11988_v50 = vld [vmem:[%s18196_s5 + $0x184] ss:$24 sps:$4 sm:$0xff]   ;;  %8232 = vmatpush2.bf16.msra.mxu0 %v11989_v52  ;;  %v10455_v55 = vld [vmem:[%s18194_s3] ss:$0 sm:$0xff] }
  0xff   : > { %v11729_v56 = vpop.f32.mrf.mxu0 }
 0x100   : > { %v11730_v58 = vadd.f32 %v11729_v56, %v11728_v54  ;;  %v11997_v54 = vld [vmem:[%s18196_s5 + $0xa54] ss:$24 sps:$4 sm:$0xff]  }
 0x101   : > { %v11731_v59 = vpop.f32.mrf.mxu0  ;;  %8283 = vmatprep.subr.bf16.mxu0 %v11997_v54 }
 0x102   : > { %v644_v61 = vadd.f32 %v11730_v58, %v643_v57  ;;  %v10456_v57 = vld [vmem:[%s18195_s4] ss:$0 sm:$0xff] }
 0x103   : > { %v11732_v62 = vpop.f32.mrf.mxu0 }
 0x104   : > { %v655_v63 = vpack.c.bf16 %v644_v61, %v641_v60  ;;  %v11733_v1 = vadd.f32 %v11732_v62, %v11731_v59 }
 0x105   : > { %v11734_v0 = vpop.f32.mrf.mxu0 }
 0x106   : > { %11823 = vmatprep.mubr.msk.bf16.mxu1 %vm658_vm3, %v655_v63  ;;  %v649_v5 = vadd.f32 %v11819_v49, %v11733_v1  ;;  %v11986_v49 = vld [vmem:[%s18196_s5 + $0x180] ss:$24 sps:$4 sm:$0xff]  }
 0x107   : > { %v11735_v2 = vpop.f32.mrf.mxu0 }
 0x108   : > { %v11736_v3 = vadd.f32 %v11735_v2, %v11734_v0 }
 0x10a   : > { %v652_v6 = vadd.f32 %v11820_v53, %v11736_v3  ;;  %v11994_v53 = vld [vmem:[%s18196_s5 + $0x754] ss:$24 sps:$4 sm:$0xff]  }
 0x10c   : > { %v656_v8 = vpack.c.bf16 %v652_v6, %v649_v5  ;;  %v749_v6 = vlaneseq }
 0x10e   : > { %11824 = vmatmul.mubr.msk.bf16.vlgmr.msra.gmra.mxu1 %vm658_vm3, %v656_v8  ;;  %vm14167_vm4 = vcmp.lt.s32.totalorder %v749_v6, 128 }
 0x10f   : > { %8161 = vmatpush1.bf16.msra.mxu1 %v11896_v4 }
 0x110   : > { %8162 = vmatprep.subr.bf16.mxu1 %v11904_v7 }
 0x113   : > { %8163 = vmatpush1.bf16.msra.mxu1 %v11902_v9 }
 0x114   : > { %8164 = vmatprep.subr.bf16.mxu1 %v11910_v11  ;;  %v12012_v11 = vld [vmem:[%s18196_s5 + $0x6c4] ss:$24 sps:$4 sm:$0xff]  }
 0x117   : > { %8165 = vmatpush1.bf16.msra.mxu1 %v11908_v12 }
 0x118   : > { %8166 = vmatprep.subr.bf16.mxu1 %v11916_v13 }
 0x11b   : > { %8167 = vmatpush1.bf16.msra.mxu1 %v11914_v14 }
 0x11c   : > { %8168 = vmatprep.subr.bf16.mxu1 %v11922_v15 }
 0x11f   : > { %8169 = vmatpush1.bf16.msra.mxu1 %v11920_v16 }
 0x120   : > { %8170 = vmatprep.subr.bf16.mxu1 %v11928_v17 }
 0x123   : > { %8171 = vmatpush1.bf16.msra.mxu1 %v11926_v18 }
 0x124   : > { %8172 = vmatprep.subr.bf16.mxu1 %v11934_v19 }
 0x127   : > { %8173 = vmatpush1.bf16.msra.mxu1 %v11932_v20 }
 0x128   : > { %8174 = vmatprep.subr.bf16.mxu1 %v11940_v21 }
 0x12b   : > { %8175 = vmatpush1.bf16.msra.mxu1 %v11938_v22 }
 0x12c   : > { %8176 = vmatprep.subr.bf16.mxu1 %v11946_v23 }
 0x12f   : > { %8177 = vmatpush2.bf16.msra.mxu1 %v11944_v24 }
 0x130   : > { %8178 = vmatprep.subr.bf16.mxu1 %v11952_v25 }
 0x133   : > { %8179 = vmatpush2.bf16.msra.mxu1 %v11950_v27 }
 0x134   : > { %8180 = vmatprep.subr.bf16.mxu1 %v11958_v29 }
 0x137   : > { %8181 = vmatpush2.bf16.msra.mxu1 %v11956_v31 }
 0x138   : > { %8182 = vmatprep.subr.bf16.mxu1 %v11964_v33 }
 0x13b   : > { %8183 = vmatpush2.bf16.msra.mxu1 %v11962_v35 }
 0x13c   : > { %8184 = vmatprep.subr.bf16.mxu1 %v11970_v37  ;;  %v14217_v37 = vshrl.u32 %v749_v6, 7  ;;  %v12004_v6 = vld [vmem:[%s18196_s5 + $0x6f0] ss:$24 sps:$4 sm:$0xff]  }
 0x13e   : > { %v14224_v38 = vsub.s32 1, %v14217_v37  ;;  %v14230_v40 = vsub.s32 0, %v14217_v37  ;;  %v840_v44 = vsub.s32 7, %v14217_v37 }
 0x13f   : > { %8185 = vmatpush2.bf16.msra.mxu1 %v11968_v39  ;;  %v14227_v39 = vsub.s32 3, %v14217_v37 }
 0x140   : > { %8186 = vmatprep.subr.bf16.mxu1 %v11976_v41  ;;  %v14233_v41 = vsub.s32 2, %v14217_v37 }
 0x143   : > { %8187 = vmatpush2.bf16.msra.mxu1 %v11974_v43  ;;  %v14238_v43 = vsub.s32 5, %v14217_v37 }
 0x144   : > { %8188 = vmatprep.subr.bf16.mxu1 %v11982_v45  ;;  %v836_v45 = vsub.s32 6, %v14217_v37 }
 0x147   : > { %8189 = vmatpush2.bf16.msra.mxu1 %v11980_v47 }
 0x148   : > { %8190 = vmatprep.subr.bf16.mxu1 %v11988_v50 }
 0x14b   : > { %8191 = vmatpush2.bf16.msra.mxu1 %v11986_v49  ;;  %v11995_v49 = vld [vmem:[%s18196_s5 + $0xa50] ss:$24 sps:$4 sm:$0xff]  }
 0x14c   : > { %8242 = vmatprep.subr.bf16.mxu1 %v11994_v53 }
 0x1ce   : > { %v11825_v56 = vpop.f32.mrf.mxu1 }
 0x1cf   : > { %v727_v58 = vmul.f32 %v11825_v56, %v10455_v55 }
 0x1d0   : > { %v703_v59 = vpop.f32.mrf.mxu1 }
 0x1d1   : > { %v738_v60 = vadd.f32 %v10456_v57, %v727_v58  ;;  %v725_v61 = vmul.f32 %v10455_v55, %v703_v59  ;;  %v12000_v59 = vld [vmem:[%s18196_s5 + $0x724] ss:$24 sps:$4 sm:$0xff]  }
 0x1d2   : > { %v11826_v62 = vpop.f32.mrf.mxu1 }
 0x1d3   : > { %v742_v63 = vmax.f32 %v738_v60, 0.0  ;;  %v736_v0 = vadd.f32 %v10456_v57, %v725_v61  ;;  %v728_v1 = vmul.f32 %v11826_v62, %v10455_v55  ;;  %v11998_v61 = vld [vmem:[%s18196_s5 + $0x720] ss:$24 sps:$4 sm:$0xff]  }
 0x1d4   : > { %v706_v2 = vpop.f32.mrf.mxu1  ;;  %v12001_v62 = vld [vmem:[%s18196_s5 + $0xa20] ss:$24 sps:$4 sm:$0xff]  }
 0x1d5   : > { %746 = vst [vmem:[#allocation2 + $0x10] sm:$0xff] %v742_v63  ;;  %v740_v3 = vmax.f32 %v736_v0, 0.0  ;;  %v739_v4 = vadd.f32 %v10456_v57, %v728_v1  ;;  %v726_v5 = vmul.f32 %v10455_v55, %v706_v2  ;;  %v12003_v63 = vld [vmem:[%s18196_s5 + $0xa24] ss:$24 sps:$4 sm:$0xff]   ;;  %v12006_v2 = vld [vmem:[%s18196_s5 + $0x6f4] ss:$24 sps:$4 sm:$0xff]  }
 0x1d7   : > { %744 = vst [vmem:[#allocation2] sm:$0xff] %v740_v3  ;;  %v743_v7 = vmax.f32 %v739_v4, 0.0  ;;  %v737_v8 = vadd.f32 %v10456_v57, %v726_v5  ;;  %v12009_v3 = vld [vmem:[%s18196_s5 + $0x9f4] ss:$24 sps:$4 sm:$0xff]  }
 0x1d9   : > { %747 = vst [vmem:[#allocation2 + $0x18] sm:$0x1] %v743_v7  ;;  %v741_v9 = vmax.f32 %v737_v8, 0.0  ;;  %v12007_v8 = vld [vmem:[%s18196_s5 + $0x9f0] ss:$24 sps:$4 sm:$0xff]  }
 0x1db   : > { %745 = vst [vmem:[#allocation2 + $0x8] sm:$0xff] %v741_v9 }
 0x1dc   : > { %v784_v12 = vld [vmem:[#allocation2 + $0x10] sm:$0x1]  ;;  %v786_v13 = vld [vmem:[#allocation2 + $0x11] sm:$0x1]  ;;  %v788_v14 = vld [vmem:[#allocation2 + $0x12] sm:$0x1] }
 0x1dd   : > { %785 = vst.msk [vmem:[#allocation3 + $0x10] sm:$0x1] %vm14167_vm4, %v784_v12  ;;  %787 = vst.msk [vmem:[#allocation3 + $0x11] sm:$0x1] %vm14167_vm4, %v786_v13  ;;  %v790_v15 = vld [vmem:[#allocation2 + $0x13] sm:$0x1] }
 0x1de   : > { %789 = vst.msk [vmem:[#allocation3 + $0x12] sm:$0x1] %vm14167_vm4, %v788_v14  ;;  %v792_v16 = vld [vmem:[#allocation2 + $0x14] sm:$0x1]  ;;  %v794_v17 = vld [vmem:[#allocation2 + $0x15] sm:$0x1] }
 0x1df   : > { %791 = vst.msk [vmem:[#allocation3 + $0x13] sm:$0x1] %vm14167_vm4, %v790_v15  ;;  %793 = vst.msk [vmem:[#allocation3 + $0x14] sm:$0x1] %vm14167_vm4, %v792_v16  ;;  %v796_v18 = vld [vmem:[#allocation2 + $0x16] sm:$0x1] }
 0x1e0   : > { %795 = vst.msk [vmem:[#allocation3 + $0x15] sm:$0x1] %vm14167_vm4, %v794_v17  ;;  %v798_v19 = vld [vmem:[#allocation2 + $0x17] sm:$0x1]  ;;  %v748_v20 = vld [vmem:[#allocation2] sm:$0x1] }
 0x1e1   : > { %797 = vst.msk [vmem:[#allocation3 + $0x16] sm:$0x1] %vm14167_vm4, %v796_v18  ;;  %799 = vst.msk [vmem:[#allocation3 + $0x17] sm:$0x1] %vm14167_vm4, %v798_v19  ;;  %v754_v21 = vld [vmem:[#allocation2 + $0x1] sm:$0x1] }
 0x1e2   : > { %753 = vst.msk [vmem:[#allocation3] sm:$0x1] %vm14167_vm4, %v748_v20  ;;  %v756_v22 = vld [vmem:[#allocation2 + $0x2] sm:$0x1]  ;;  %v758_v23 = vld [vmem:[#allocation2 + $0x3] sm:$0x1] }
 0x1e3   : > { %755 = vst.msk [vmem:[#allocation3 + $0x1] sm:$0x1] %vm14167_vm4, %v754_v21  ;;  %757 = vst.msk [vmem:[#allocation3 + $0x2] sm:$0x1] %vm14167_vm4, %v756_v22  ;;  %v760_v24 = vld [vmem:[#allocation2 + $0x4] sm:$0x1] }
 0x1e4   : > { %759 = vst.msk [vmem:[#allocation3 + $0x3] sm:$0x1] %vm14167_vm4, %v758_v23  ;;  %v762_v25 = vld [vmem:[#allocation2 + $0x5] sm:$0x1]  ;;  %v764_v26 = vld [vmem:[#allocation2 + $0x6] sm:$0x1] }
 0x1e5   : > { %761 = vst.msk [vmem:[#allocation3 + $0x4] sm:$0x1] %vm14167_vm4, %v760_v24  ;;  %763 = vst.msk [vmem:[#allocation3 + $0x5] sm:$0x1] %vm14167_vm4, %v762_v25  ;;  %v766_v27 = vld [vmem:[#allocation2 + $0x7] sm:$0x1] }
 0x1e6   : > { %765 = vst.msk [vmem:[#allocation3 + $0x6] sm:$0x1] %vm14167_vm4, %v764_v26  ;;  %v800_v28 = vld [vmem:[#allocation2 + $0x18] sm:$0x1]  ;;  %767 = vst.msk [vmem:[#allocation3 + $0x7] sm:$0x1] %vm14167_vm4, %v766_v27 }
 0x1e7   : > { %801 = vst.msk [vmem:[#allocation3 + $0x18] sm:$0x1] %vm14167_vm4, %v800_v28  ;;  %v768_v29 = vld [vmem:[#allocation2 + $0x8] sm:$0x1]  ;;  %v770_v30 = vld [vmem:[#allocation2 + $0x9] sm:$0x1] }
 0x1e8   : > { %v772_v31 = vld [vmem:[#allocation2 + $0xa] sm:$0x1]  ;;  %769 = vst.msk [vmem:[#allocation3 + $0x8] sm:$0x1] %vm14167_vm4, %v768_v29  ;;  %771 = vst.msk [vmem:[#allocation3 + $0x9] sm:$0x1] %vm14167_vm4, %v770_v30 }
 0x1e9   : > { %773 = vst.msk [vmem:[#allocation3 + $0xa] sm:$0x1] %vm14167_vm4, %v772_v31  ;;  %v774_v32 = vld [vmem:[#allocation2 + $0xb] sm:$0x1]  ;;  %v776_v33 = vld [vmem:[#allocation2 + $0xc] sm:$0x1] }
 0x1ea   : > { %v778_v34 = vld [vmem:[#allocation2 + $0xd] sm:$0x1]  ;;  %775 = vst.msk [vmem:[#allocation3 + $0xb] sm:$0x1] %vm14167_vm4, %v774_v32  ;;  %777 = vst.msk [vmem:[#allocation3 + $0xc] sm:$0x1] %vm14167_vm4, %v776_v33 }
 0x1eb   : > { %779 = vst.msk [vmem:[#allocation3 + $0xd] sm:$0x1] %vm14167_vm4, %v778_v34  ;;  %v780_v35 = vld [vmem:[#allocation2 + $0xe] sm:$0x1]  ;;  %v782_v36 = vld [vmem:[#allocation2 + $0xf] sm:$0x1] }
 0x1ec   : > { %781 = vst.msk [vmem:[#allocation3 + $0xe] sm:$0x1] %vm14167_vm4, %v780_v35  ;;  %783 = vst.msk [vmem:[#allocation3 + $0xf] sm:$0x1] %vm14167_vm4, %v782_v36  ;;  %v804_v5 = vld [vmem:[#allocation3 + $0x10] sm:$0xff] }
 0x1ed   : > { %v14235_v42 = vld [vmem:[#allocation3] sm:$0xff]  ;;  %v14312_v9 = vrot.slane %v804_v5, %v840_v44  ;;  %v14320_v13 = vrot.slane %v804_v5, %v836_v45  ;;  %v12018_v16 = vld [vmem:[%s18196_s5 + $0x694] ss:$24 sps:$4 sm:$0xff]   ;;  %v12016_v18 = vld [vmem:[%s18196_s5 + $0x690] ss:$24 sps:$4 sm:$0xff]  }
 0x1ee   : > { %v817_v46 = vrot.slane %v14235_v42, %v14224_v38  ;;  %v825_v47 = vrot.slane %v14235_v42, %v14227_v39  ;;  %v813_v50 = vrot.slane %v14235_v42, %v14230_v40  ;;  %v821_v51 = vrot.slane %v14235_v42, %v14233_v41  ;;  %v12015_v12 = vld [vmem:[%s18196_s5 + $0x9c4] ss:$24 sps:$4 sm:$0xff]   ;;  %v12010_v14 = vld [vmem:[%s18196_s5 + $0x6c0] ss:$24 sps:$4 sm:$0xff]   ;;  %v12021_v17 = vld [vmem:[%s18196_s5 + $0x994] ss:$24 sps:$4 sm:$0xff]  }
 0x1ef   : > { %v833_v52 = vrot.slane %v14235_v42, %v14238_v43  ;;  %v841_v53 = vrot.slane %v14235_v42, %v840_v44  ;;  %v14260_v54 = vrot.slane %v14235_v42, %v836_v45  ;;  %v12013_v15 = vld [vmem:[%s18196_s5 + $0x9c0] ss:$24 sps:$4 sm:$0xff]   ;;  %v12019_v19 = vld [vmem:[%s18196_s5 + $0x990] ss:$24 sps:$4 sm:$0xff]   ;;  %v12024_v20 = vld [vmem:[%s18196_s5 + $0x664] ss:$24 sps:$4 sm:$0xff]  }
 0x1f0   : > { %v14262_v55 = vpack.c.bf16 %v817_v46, %v817_v46  ;;  %v14264_v56 = vpack.c.bf16 %v825_v47, %v825_v47  ;;  %v14266_v57 = vpack.c.bf16 %v813_v50, %v813_v50  ;;  %v14268_v58 = vpack.c.bf16 %v821_v51, %v821_v51  ;;  %v12027_v21 = vld [vmem:[%s18196_s5 + $0x964] ss:$24 sps:$4 sm:$0xff]   ;;  %v12022_v22 = vld [vmem:[%s18196_s5 + $0x660] ss:$24 sps:$4 sm:$0xff]   ;;  %v12030_v24 = vld [vmem:[%s18196_s5 + $0x634] ss:$24 sps:$4 sm:$0xff]  }
 0x1f1   : > { %v14288_v0 = vpack.c.bf16 %v833_v52, %v833_v52  ;;  %v14290_v1 = vpack.c.bf16 %v841_v53, %v841_v53  ;;  %v12025_v23 = vld [vmem:[%s18196_s5 + $0x960] ss:$24 sps:$4 sm:$0xff]   ;;  %v12033_v25 = vld [vmem:[%s18196_s5 + $0x934] ss:$24 sps:$4 sm:$0xff]   ;;  %v12028_v26 = vld [vmem:[%s18196_s5 + $0x630] ss:$24 sps:$4 sm:$0xff]  }
 0x1f2   : > { %8192 = vmatprep.mubr.bf16.mxu1 %v14262_v55  ;;  %8233 = vmatprep.mubr.bf16.mxu0 %v14264_v56  ;;  %v12031_v27 = vld [vmem:[%s18196_s5 + $0x930] ss:$24 sps:$4 sm:$0xff]   ;;  %v12036_v28 = vld [vmem:[%s18196_s5 + $0x604] ss:$24 sps:$4 sm:$0xff]   ;;  %v12034_v30 = vld [vmem:[%s18196_s5 + $0x600] ss:$24 sps:$4 sm:$0xff]  }
 0x1f3   : > { %v14273_v60 = vld [vmem:[#allocation3 + $0x8] sm:$0xff]  ;;  %8193 = vmatmul.mubr.bf16.vlgmr.msra.gmra.mxu1 %v14266_v57  ;;  %8234 = vmatmul.mubr.bf16.vlgmr.msra.gmra.mxu0 %v14268_v58  ;;  %v12039_v29 = vld [vmem:[%s18196_s5 + $0x904] ss:$24 sps:$4 sm:$0xff]   ;;  %v12037_v31 = vld [vmem:[%s18196_s5 + $0x900] ss:$24 sps:$4 sm:$0xff]  }
 0x1f4   : > { %v14299_v4 = vrot.slane %v14273_v60, %v840_v44  ;;  %8243 = vmatpush1.bf16.msra.mxu1 %v11992_v48  ;;  %8284 = vmatpush1.bf16.msra.mxu0 %v11995_v49  ;;  %v14307_v7 = vrot.slane %v14273_v60, %v836_v45  ;;  %v12042_v32 = vld [vmem:[%s18196_s5 + $0x8d4] ss:$24 sps:$4 sm:$0xff]   ;;  %v12040_v34 = vld [vmem:[%s18196_s5 + $0x8d0] ss:$24 sps:$4 sm:$0xff]   ;;  %v12048_v36 = vld [vmem:[%s18196_s5 + $0x8a4] ss:$24 sps:$4 sm:$0xff]  }
 0x1f5   : > { %8274 = vmatprep.mubr.bf16.mxu1 %v14288_v0  ;;  %8315 = vmatprep.mubr.bf16.mxu0 %v14290_v1  ;;  %v12045_v33 = vld [vmem:[%s18196_s5 + $0xbd4] ss:$24 sps:$4 sm:$0xff]   ;;  %v12043_v35 = vld [vmem:[%s18196_s5 + $0xbd0] ss:$24 sps:$4 sm:$0xff]   ;;  %v12051_v44 = vld [vmem:[%s18196_s5 + $0xba4] ss:$24 sps:$4 sm:$0xff]  }
 0x1f6   : > { %8244 = vmatprep.subr.bf16.mxu1 %v12000_v59  ;;  %8285 = vmatprep.subr.bf16.mxu0 %v12003_v63  ;;  %v12046_v45 = vld [vmem:[%s18196_s5 + $0x8a0] ss:$24 sps:$4 sm:$0xff]   ;;  %v12054_v47 = vld [vmem:[%s18196_s5 + $0x874] ss:$24 sps:$4 sm:$0xff]   ;;  %v12052_v49 = vld [vmem:[%s18196_s5 + $0x870] ss:$24 sps:$4 sm:$0xff]  }
 0x1f7   : > { %v12049_v46 = vld [vmem:[%s18196_s5 + $0xba0] ss:$24 sps:$4 sm:$0xff]   ;;  %v12057_v48 = vld [vmem:[%s18196_s5 + $0xb74] ss:$24 sps:$4 sm:$0xff]   ;;  %v12055_v50 = vld [vmem:[%s18196_s5 + $0xb70] ss:$24 sps:$4 sm:$0xff]  }
 0x1f8   : > { %8245 = vmatpush1.bf16.msra.mxu1 %v11998_v61  ;;  %8286 = vmatpush1.bf16.msra.mxu0 %v12001_v62  ;;  %v12060_v51 = vld [vmem:[%s18196_s5 + $0x844] ss:$24 sps:$4 sm:$0xff]   ;;  %v12058_v53 = vld [vmem:[%s18196_s5 + $0x840] ss:$24 sps:$4 sm:$0xff]   ;;  %v12066_v61 = vld [vmem:[%s18196_s5 + $0x814] ss:$24 sps:$4 sm:$0xff]  }
 0x1f9   : > { %8246 = vmatprep.subr.bf16.mxu1 %v12006_v2  ;;  %8287 = vmatprep.subr.bf16.mxu0 %v12009_v3  ;;  %v12063_v52 = vld [vmem:[%s18196_s5 + $0xb44] ss:$24 sps:$4 sm:$0xff]   ;;  %v12061_v59 = vld [vmem:[%s18196_s5 + $0xb40] ss:$24 sps:$4 sm:$0xff]   ;;  %v12069_v62 = vld [vmem:[%s18196_s5 + $0xb14] ss:$24 sps:$4 sm:$0xff]  }
 0x1fa   : > { %v12064_v63 = vld [vmem:[%s18196_s5 + $0x810] ss:$24 sps:$4 sm:$0xff]   ;;  %v12072_v3 = vld [vmem:[%s18196_s5 + $0x7e4] ss:$24 sps:$4 sm:$0xff]  }
 0x1fb   : > { %v12067_v2 = vld [vmem:[%s18196_s5 + $0xb10] ss:$24 sps:$4 sm:$0xff]   ;;  %v12075_v5 = vld [vmem:[%s18196_s5 + $0xae4] ss:$24 sps:$4 sm:$0xff]  }
 0x1fc   : > { %8247 = vmatpush1.bf16.msra.mxu1 %v12004_v6  ;;  %8288 = vmatpush1.bf16.msra.mxu0 %v12007_v8  ;;  %v12070_v6 = vld [vmem:[%s18196_s5 + $0x7e0] ss:$24 sps:$4 sm:$0xff]  }
 0x1fd   : > { %8248 = vmatprep.subr.bf16.mxu1 %v12012_v11  ;;  %8289 = vmatprep.subr.bf16.mxu0 %v12015_v12  ;;  %v12073_v8 = vld [vmem:[%s18196_s5 + $0xae0] ss:$24 sps:$4 sm:$0xff]   ;;  %v12078_v11 = vld [vmem:[%s18196_s5 + $0x7b4] ss:$24 sps:$4 sm:$0xff]  }
 0x1fe   : > { %v12081_v12 = vld [vmem:[%s18196_s5 + $0xab4] ss:$24 sps:$4 sm:$0xff]  }
 0x200   : > { %8249 = vmatpush1.bf16.msra.mxu1 %v12010_v14  ;;  %8290 = vmatpush1.bf16.msra.mxu0 %v12013_v15  ;;  %v12076_v14 = vld [vmem:[%s18196_s5 + $0x7b0] ss:$24 sps:$4 sm:$0xff]  }
 0x201   : > { %8250 = vmatprep.subr.bf16.mxu1 %v12018_v16  ;;  %8291 = vmatprep.subr.bf16.mxu0 %v12021_v17  ;;  %v12079_v15 = vld [vmem:[%s18196_s5 + $0xab0] ss:$24 sps:$4 sm:$0xff]   ;;  %v12084_v16 = vld [vmem:[%s18196_s5 + $0x784] ss:$24 sps:$4 sm:$0xff]  }
 0x202   : > { %v12087_v17 = vld [vmem:[%s18196_s5 + $0xa84] ss:$24 sps:$4 sm:$0xff]  }
 0x204   : > { %8251 = vmatpush1.bf16.msra.mxu1 %v12016_v18  ;;  %8292 = vmatpush1.bf16.msra.mxu0 %v12019_v19  ;;  %v14467_v18 = vsub.s32 4, %v14217_v37  ;;  %v12082_v19 = vld [vmem:[%s18196_s5 + $0x780] ss:$24 sps:$4 sm:$0xff]   ;;  %v12090_v37 = vld [vmem:[%s18196_s5 + $0xd54] ss:$24 sps:$4 sm:$0xff]  }
 0x205   : > { %8252 = vmatprep.subr.bf16.mxu1 %v12024_v20  ;;  %8293 = vmatprep.subr.bf16.mxu0 %v12027_v21  ;;  %v12085_v20 = vld [vmem:[%s18196_s5 + $0xa80] ss:$24 sps:$4 sm:$0xff]  }
 0x206   : > { %v829_v21 = vrot.slane %v14235_v42, %v14467_v18  ;;  %v857_v42 = vrot.slane %v14273_v60, %v14227_v39 }
 0x208   : > { %8253 = vmatpush1.bf16.msra.mxu1 %v12022_v22  ;;  %8294 = vmatpush1.bf16.msra.mxu0 %v12025_v23  ;;  %v12093_v22 = vld [vmem:[%s18196_s5 + $0x1054] ss:$24 sps:$4 sm:$0xff]   ;;  %v12088_v23 = vld [vmem:[%s18196_s5 + $0xd50] ss:$24 sps:$4 sm:$0xff]  }
 0x209   : > { %8254 = vmatprep.subr.bf16.mxu1 %v12030_v24  ;;  %8295 = vmatprep.subr.bf16.mxu0 %v12033_v25  ;;  %v849_v24 = vrot.slane %v14273_v60, %v14224_v38  ;;  %v12091_v25 = vld [vmem:[%s18196_s5 + $0x1050] ss:$24 sps:$4 sm:$0xff]  }
 0x20c   : > { %8255 = vmatpush1.bf16.msra.mxu1 %v12028_v26  ;;  %8296 = vmatpush1.bf16.msra.mxu0 %v12031_v27  ;;  %v12096_v26 = vld [vmem:[%s18196_s5 + $0xd24] ss:$24 sps:$4 sm:$0xff]  }
 0x20d   : > { %8256 = vmatprep.subr.bf16.mxu1 %v12036_v28  ;;  %8297 = vmatprep.subr.bf16.mxu0 %v12039_v29  ;;  %v12099_v27 = vld [vmem:[%s18196_s5 + $0x1024] ss:$24 sps:$4 sm:$0xff]   ;;  %v14499_v28 = vpack.c.bf16 %v829_v21, %v829_v21  ;;  %v14503_v29 = vpack.c.bf16 %v14260_v54, %v14260_v54  ;;  %v12097_v54 = vld [vmem:[%s18196_s5 + $0x1020] ss:$24 sps:$4 sm:$0xff]  }
 0x20e   : > { %v12145_v21 = vld [vmem:[%s18196_s5 + $0x11a0] ss:$24 sps:$4 sm:$0xff]  }
 0x210   : > { %8257 = vmatpush1.bf16.msra.mxu1 %v12034_v30  ;;  %8298 = vmatpush1.bf16.msra.mxu0 %v12037_v31  ;;  %v14505_v30 = vpack.c.bf16 %v849_v24, %v849_v24  ;;  %v14509_v31 = vpack.c.bf16 %v857_v42, %v857_v42  ;;  %v12151_v24 = vld [vmem:[%s18196_s5 + $0x1170] ss:$24 sps:$4 sm:$0xff]   ;;  %v12159_v42 = vld [vmem:[%s18196_s5 + $0x1144] ss:$24 sps:$4 sm:$0xff]  }
 0x211   : > { %8258 = vmatprep.subr.bf16.mxu1 %v12042_v32  ;;  %8299 = vmatprep.subr.bf16.mxu0 %v12045_v33  ;;  %v12094_v32 = vld [vmem:[%s18196_s5 + $0xd20] ss:$24 sps:$4 sm:$0xff]   ;;  %v12102_v33 = vld [vmem:[%s18196_s5 + $0xcf4] ss:$24 sps:$4 sm:$0xff]  }
 0x214   : > { %8259 = vmatpush2.bf16.msra.mxu1 %v12040_v34  ;;  %8300 = vmatpush2.bf16.msra.mxu0 %v12043_v35  ;;  %v12105_v34 = vld [vmem:[%s18196_s5 + $0xff4] ss:$24 sps:$4 sm:$0xff]   ;;  %v12100_v35 = vld [vmem:[%s18196_s5 + $0xcf0] ss:$24 sps:$4 sm:$0xff]  }
 0x215   : > { %8260 = vmatprep.subr.bf16.mxu1 %v12048_v36  ;;  %8301 = vmatprep.subr.bf16.mxu0 %v12051_v44  ;;  %v12103_v36 = vld [vmem:[%s18196_s5 + $0xff0] ss:$24 sps:$4 sm:$0xff]   ;;  %v12108_v44 = vld [vmem:[%s18196_s5 + $0xcc4] ss:$24 sps:$4 sm:$0xff]  }
 0x218   : > { %8261 = vmatpush2.bf16.msra.mxu1 %v12046_v45  ;;  %8302 = vmatpush2.bf16.msra.mxu0 %v12049_v46  ;;  %v12106_v45 = vld [vmem:[%s18196_s5 + $0xcc0] ss:$24 sps:$4 sm:$0xff]   ;;  %v12111_v46 = vld [vmem:[%s18196_s5 + $0xfc4] ss:$24 sps:$4 sm:$0xff]  }
 0x219   : > { %8262 = vmatprep.subr.bf16.mxu1 %v12054_v47  ;;  %8303 = vmatprep.subr.bf16.mxu0 %v12057_v48  ;;  %v12109_v47 = vld [vmem:[%s18196_s5 + $0xfc0] ss:$24 sps:$4 sm:$0xff]   ;;  %v12114_v48 = vld [vmem:[%s18196_s5 + $0xc94] ss:$24 sps:$4 sm:$0xff]  }
 0x21c   : > { %8263 = vmatpush2.bf16.msra.mxu1 %v12052_v49  ;;  %8304 = vmatpush2.bf16.msra.mxu0 %v12055_v50  ;;  %v12112_v49 = vld [vmem:[%s18196_s5 + $0xc90] ss:$24 sps:$4 sm:$0xff]   ;;  %v12117_v50 = vld [vmem:[%s18196_s5 + $0xf94] ss:$24 sps:$4 sm:$0xff]  }
 0x21d   : > { %8264 = vmatprep.subr.bf16.mxu1 %v12060_v51  ;;  %8305 = vmatprep.subr.bf16.mxu0 %v12063_v52  ;;  %v12115_v51 = vld [vmem:[%s18196_s5 + $0xf90] ss:$24 sps:$4 sm:$0xff]   ;;  %v12120_v52 = vld [vmem:[%s18196_s5 + $0xc64] ss:$24 sps:$4 sm:$0xff]  }
 0x220   : > { %8265 = vmatpush2.bf16.msra.mxu1 %v12058_v53  ;;  %8306 = vmatpush2.bf16.msra.mxu0 %v12061_v59  ;;  %v12123_v53 = vld [vmem:[%s18196_s5 + $0xf64] ss:$24 sps:$4 sm:$0xff]   ;;  %v12118_v59 = vld [vmem:[%s18196_s5 + $0xc60] ss:$24 sps:$4 sm:$0xff]  }
 0x221   : > { %8266 = vmatprep.subr.bf16.mxu1 %v12066_v61  ;;  %8307 = vmatprep.subr.bf16.mxu0 %v12069_v62  ;;  %v12121_v61 = vld [vmem:[%s18196_s5 + $0xf60] ss:$24 sps:$4 sm:$0xff]   ;;  %v12126_v62 = vld [vmem:[%s18196_s5 + $0xc34] ss:$24 sps:$4 sm:$0xff]  }
 0x224   : > { %8267 = vmatpush2.bf16.msra.mxu1 %v12064_v63  ;;  %8308 = vmatpush2.bf16.msra.mxu0 %v12067_v2  ;;  %v12129_v63 = vld [vmem:[%s18196_s5 + $0xf34] ss:$24 sps:$4 sm:$0xff]   ;;  %v12124_v2 = vld [vmem:[%s18196_s5 + $0xc30] ss:$24 sps:$4 sm:$0xff]  }
 0x225   : > { %8268 = vmatprep.subr.bf16.mxu1 %v12072_v3  ;;  %8309 = vmatprep.subr.bf16.mxu0 %v12075_v5  ;;  %v12127_v3 = vld [vmem:[%s18196_s5 + $0xf30] ss:$24 sps:$4 sm:$0xff]   ;;  %v12132_v5 = vld [vmem:[%s18196_s5 + $0xc04] ss:$24 sps:$4 sm:$0xff]  }
 0x228   : > { %8269 = vmatpush2.bf16.msra.mxu1 %v12070_v6  ;;  %8310 = vmatpush2.bf16.msra.mxu0 %v12073_v8  ;;  %v12135_v6 = vld [vmem:[%s18196_s5 + $0xf04] ss:$24 sps:$4 sm:$0xff]   ;;  %v12130_v8 = vld [vmem:[%s18196_s5 + $0xc00] ss:$24 sps:$4 sm:$0xff]  }
 0x229   : > { %8270 = vmatprep.subr.bf16.mxu1 %v12078_v11  ;;  %8311 = vmatprep.subr.bf16.mxu0 %v12081_v12  ;;  %v12133_v11 = vld [vmem:[%s18196_s5 + $0xf00] ss:$24 sps:$4 sm:$0xff]   ;;  %v12138_v12 = vld [vmem:[%s18196_s5 + $0xed4] ss:$24 sps:$4 sm:$0xff]  }
 0x22c   : > { %8271 = vmatpush2.bf16.msra.mxu1 %v12076_v14  ;;  %8312 = vmatpush2.bf16.msra.mxu0 %v12079_v15  ;;  %v12141_v14 = vld [vmem:[%s18196_s5 + $0x11d4] ss:$24 sps:$4 sm:$0xff]   ;;  %v12136_v15 = vld [vmem:[%s18196_s5 + $0xed0] ss:$24 sps:$4 sm:$0xff]  }
 0x22d   : > { %8272 = vmatprep.subr.bf16.mxu1 %v12084_v16  ;;  %8313 = vmatprep.subr.bf16.mxu0 %v12087_v17  ;;  %v12139_v16 = vld [vmem:[%s18196_s5 + $0x11d0] ss:$24 sps:$4 sm:$0xff]   ;;  %v12144_v17 = vld [vmem:[%s18196_s5 + $0xea4] ss:$24 sps:$4 sm:$0xff]  }
 0x230   : > { %8273 = vmatpush2.bf16.msra.mxu1 %v12082_v19  ;;  %8314 = vmatpush2.bf16.msra.mxu0 %v12085_v20  ;;  %v12147_v19 = vld [vmem:[%s18196_s5 + $0x11a4] ss:$24 sps:$4 sm:$0xff]   ;;  %v12142_v20 = vld [vmem:[%s18196_s5 + $0xea0] ss:$24 sps:$4 sm:$0xff]  }
 0x231   : > { %8324 = vmatprep.subr.bf16.mxu1 %v12090_v37  ;;  %8365 = vmatprep.subr.bf16.mxu0 %v12093_v22  ;;  %v12150_v37 = vld [vmem:[%s18196_s5 + $0xe74] ss:$24 sps:$4 sm:$0xff]  }
 0x232   : > { %v12153_v22 = vld [vmem:[%s18196_s5 + $0x1174] ss:$24 sps:$4 sm:$0xff]  }
 0x233   : > { %8275 = vmatmul.mubr.bf16.vlgmr.msra.gmra.mxu1 %v14499_v28  ;;  %8316 = vmatmul.mubr.bf16.vlgmr.msra.gmra.mxu0 %v14503_v29 }
 0x234   : > { %8325 = vmatpush1.bf16.msra.mxu1 %v12088_v23  ;;  %8356 = vmatprep.mubr.bf16.mxu1 %v14505_v30  ;;  %v12148_v23 = vld [vmem:[%s18196_s5 + $0xe70] ss:$24 sps:$4 sm:$0xff]  }
 0x235   : > { %8366 = vmatpush1.bf16.msra.mxu0 %v12091_v25  ;;  %8397 = vmatprep.mubr.bf16.mxu0 %v14509_v31  ;;  %v12156_v25 = vld [vmem:[%s18196_s5 + $0xe44] ss:$24 sps:$4 sm:$0xff]  }
 0x236   : > { %8326 = vmatprep.subr.bf16.mxu1 %v12096_v26  ;;  %8367 = vmatprep.subr.bf16.mxu0 %v12099_v27  ;;  %v12154_v26 = vld [vmem:[%s18196_s5 + $0xe40] ss:$24 sps:$4 sm:$0xff]  }
 0x237   : > { %v12157_v27 = vld [vmem:[%s18196_s5 + $0x1140] ss:$24 sps:$4 sm:$0xff]  }
 0x238   : > { %8327 = vmatpush1.bf16.msra.mxu1 %v12094_v32  ;;  %v12162_v32 = vld [vmem:[%s18196_s5 + $0xe14] ss:$24 sps:$4 sm:$0xff]  }
 0x239   : > { %8368 = vmatpush1.bf16.msra.mxu0 %v12097_v54  ;;  %8328 = vmatprep.subr.bf16.mxu1 %v12102_v33  ;;  %v12165_v54 = vld [vmem:[%s18196_s5 + $0x1114] ss:$24 sps:$4 sm:$0xff]   ;;  %v12160_v33 = vld [vmem:[%s18196_s5 + $0xe10] ss:$24 sps:$4 sm:$0xff]  }
 0x23a   : > { %8369 = vmatprep.subr.bf16.mxu0 %v12105_v34  ;;  %v12163_v34 = vld [vmem:[%s18196_s5 + $0x1110] ss:$24 sps:$4 sm:$0xff]  }
 0x23c   : > { %8329 = vmatpush1.bf16.msra.mxu1 %v12100_v35  ;;  %v12168_v35 = vld [vmem:[%s18196_s5 + $0xde4] ss:$24 sps:$4 sm:$0xff]  }
 0x23d   : > { %8370 = vmatpush1.bf16.msra.mxu0 %v12103_v36  ;;  %8330 = vmatprep.subr.bf16.mxu1 %v12108_v44  ;;  %v12171_v36 = vld [vmem:[%s18196_s5 + $0x10e4] ss:$24 sps:$4 sm:$0xff]   ;;  %v12166_v44 = vld [vmem:[%s18196_s5 + $0xde0] ss:$24 sps:$4 sm:$0xff]  }
 0x23e   : > { %8371 = vmatprep.subr.bf16.mxu0 %v12111_v46  ;;  %v12174_v46 = vld [vmem:[%s18196_s5 + $0xdb4] ss:$24 sps:$4 sm:$0xff]  }
 0x240   : > { %8331 = vmatpush1.bf16.msra.mxu1 %v12106_v45  ;;  %v12169_v45 = vld [vmem:[%s18196_s5 + $0x10e0] ss:$24 sps:$4 sm:$0xff]  }
 0x241   : > { %8372 = vmatpush1.bf16.msra.mxu0 %v12109_v47  ;;  %8332 = vmatprep.subr.bf16.mxu1 %v12114_v48  ;;  %v12177_v47 = vld [vmem:[%s18196_s5 + $0x10b4] ss:$24 sps:$4 sm:$0xff]   ;;  %v12172_v48 = vld [vmem:[%s18196_s5 + $0xdb0] ss:$24 sps:$4 sm:$0xff]  }
 0x242   : > { %8373 = vmatprep.subr.bf16.mxu0 %v12117_v50  ;;  %v12180_v50 = vld [vmem:[%s18196_s5 + $0xd84] ss:$24 sps:$4 sm:$0xff]  }
 0x244   : > { %8333 = vmatpush1.bf16.msra.mxu1 %v12112_v49  ;;  %v12175_v49 = vld [vmem:[%s18196_s5 + $0x10b0] ss:$24 sps:$4 sm:$0xff]  }
 0x245   : > { %8374 = vmatpush1.bf16.msra.mxu0 %v12115_v51  ;;  %8334 = vmatprep.subr.bf16.mxu1 %v12120_v52  ;;  %v12183_v51 = vld [vmem:[%s18196_s5 + $0x1084] ss:$24 sps:$4 sm:$0xff]   ;;  %v12178_v52 = vld [vmem:[%s18196_s5 + $0xd80] ss:$24 sps:$4 sm:$0xff]  }
 0x246   : > { %8375 = vmatprep.subr.bf16.mxu0 %v12123_v53  ;;  %v12181_v53 = vld [vmem:[%s18196_s5 + $0x1080] ss:$24 sps:$4 sm:$0xff]  }
 0x248   : > { %8335 = vmatpush1.bf16.msra.mxu1 %v12118_v59  ;;  %v845_v59 = vrot.slane %v14273_v60, %v14230_v40 }
 0x249   : > { %8376 = vmatpush1.bf16.msra.mxu0 %v12121_v61  ;;  %8336 = vmatprep.subr.bf16.mxu1 %v12126_v62  ;;  %v12186_v61 = vld [vmem:[%s18196_s5 + $0x1354] ss:$24 sps:$4 sm:$0xff]   ;;  %v853_v62 = vrot.slane %v14273_v60, %v14233_v41 }
 0x24a   : > { %8377 = vmatprep.subr.bf16.mxu0 %v12129_v63  ;;  %v12189_v63 = vld [vmem:[%s18196_s5 + $0x1654] ss:$24 sps:$4 sm:$0xff]  }
 0x24c   : > { %8337 = vmatpush1.bf16.msra.mxu1 %v12124_v2  ;;  %v865_v2 = vrot.slane %v14273_v60, %v14238_v43  ;;  %v12192_v60 = vld [vmem:[%s18196_s5 + $0x1324] ss:$24 sps:$4 sm:$0xff]  }
 0x24d   : > { %8378 = vmatpush1.bf16.msra.mxu0 %v12127_v3  ;;  %8338 = vmatprep.subr.bf16.mxu1 %v12132_v5  ;;  %v12184_v3 = vld [vmem:[%s18196_s5 + $0x1350] ss:$24 sps:$4 sm:$0xff]   ;;  %v14702_v5 = vpack.c.bf16 %v845_v59, %v845_v59  ;;  %v12243_v59 = vld [vmem:[%s18196_s5 + $0x17a4] ss:$24 sps:$4 sm:$0xff]  }
 0x24e   : > { %8379 = vmatprep.subr.bf16.mxu0 %v12135_v6  ;;  %v12187_v6 = vld [vmem:[%s18196_s5 + $0x1650] ss:$24 sps:$4 sm:$0xff]  }
 0x250   : > { %8339 = vmatpush1.bf16.msra.mxu1 %v12130_v8  ;;  %v14707_v8 = vpack.c.bf16 %v853_v62, %v853_v62  ;;  %v12241_v62 = vld [vmem:[%s18196_s5 + $0x17a0] ss:$24 sps:$4 sm:$0xff]  }
 0x251   : > { %8380 = vmatpush1.bf16.msra.mxu0 %v12133_v11  ;;  %8340 = vmatprep.subr.bf16.mxu1 %v12138_v12  ;;  %v14713_v11 = vpack.c.bf16 %v865_v2, %v865_v2  ;;  %v12195_v12 = vld [vmem:[%s18196_s5 + $0x1624] ss:$24 sps:$4 sm:$0xff]   ;;  %v12249_v2 = vld [vmem:[%s18196_s5 + $0x1774] ss:$24 sps:$4 sm:$0xff]  }
 0x252   : > { %8381 = vmatprep.subr.bf16.mxu0 %v12141_v14  ;;  %v14721_v14 = vpack.c.bf16 %v14299_v4, %v14299_v4  ;;  %v12201_v4 = vld [vmem:[%s18196_s5 + $0x15f4] ss:$24 sps:$4 sm:$0xff]  }
 0x254   : > { %8341 = vmatpush2.bf16.msra.mxu1 %v12136_v15  ;;  %v12190_v15 = vld [vmem:[%s18196_s5 + $0x1320] ss:$24 sps:$4 sm:$0xff]  }
 0x255   : > { %8382 = vmatpush2.bf16.msra.mxu0 %v12139_v16  ;;  %8342 = vmatprep.subr.bf16.mxu1 %v12144_v17  ;;  %v12193_v16 = vld [vmem:[%s18196_s5 + $0x1620] ss:$24 sps:$4 sm:$0xff]   ;;  %v12198_v17 = vld [vmem:[%s18196_s5 + $0x12f4] ss:$24 sps:$4 sm:$0xff]  }
 0x256   : > { %8383 = vmatprep.subr.bf16.mxu0 %v12147_v19  ;;  %v12196_v19 = vld [vmem:[%s18196_s5 + $0x12f0] ss:$24 sps:$4 sm:$0xff]  }
 0x258   : > { %8343 = vmatpush2.bf16.msra.mxu1 %v12142_v20  ;;  %v12199_v20 = vld [vmem:[%s18196_s5 + $0x15f0] ss:$24 sps:$4 sm:$0xff]  }
 0x259   : > { %8384 = vmatpush2.bf16.msra.mxu0 %v12145_v21  ;;  %8344 = vmatprep.subr.bf16.mxu1 %v12150_v37  ;;  %v12204_v21 = vld [vmem:[%s18196_s5 + $0x12c4] ss:$24 sps:$4 sm:$0xff]  }
 0x25a   : > { %8385 = vmatprep.subr.bf16.mxu0 %v12153_v22  ;;  %v12207_v37 = vld [vmem:[%s18196_s5 + $0x15c4] ss:$24 sps:$4 sm:$0xff]   ;;  %v12202_v22 = vld [vmem:[%s18196_s5 + $0x12c0] ss:$24 sps:$4 sm:$0xff]  }
 0x25c   : > { %8345 = vmatpush2.bf16.msra.mxu1 %v12148_v23  ;;  %v12205_v23 = vld [vmem:[%s18196_s5 + $0x15c0] ss:$24 sps:$4 sm:$0xff]  }
 0x25d   : > { %8386 = vmatpush2.bf16.msra.mxu0 %v12151_v24  ;;  %8346 = vmatprep.subr.bf16.mxu1 %v12156_v25  ;;  %v12210_v24 = vld [vmem:[%s18196_s5 + $0x1294] ss:$24 sps:$4 sm:$0xff]  }
 0x25e   : > { %8387 = vmatprep.subr.bf16.mxu0 %v12159_v42  ;;  %v12213_v25 = vld [vmem:[%s18196_s5 + $0x1594] ss:$24 sps:$4 sm:$0xff]   ;;  %v12208_v42 = vld [vmem:[%s18196_s5 + $0x1290] ss:$24 sps:$4 sm:$0xff]  }
 0x260   : > { %8347 = vmatpush2.bf16.msra.mxu1 %v12154_v26  ;;  %v12211_v26 = vld [vmem:[%s18196_s5 + $0x1590] ss:$24 sps:$4 sm:$0xff]  }
 0x261   : > { %8388 = vmatpush2.bf16.msra.mxu0 %v12157_v27  ;;  %8348 = vmatprep.subr.bf16.mxu1 %v12162_v32  ;;  %v12216_v27 = vld [vmem:[%s18196_s5 + $0x1264] ss:$24 sps:$4 sm:$0xff]  }
 0x262   : > { %8389 = vmatprep.subr.bf16.mxu0 %v12165_v54  ;;  %v12219_v32 = vld [vmem:[%s18196_s5 + $0x1564] ss:$24 sps:$4 sm:$0xff]   ;;  %v12214_v54 = vld [vmem:[%s18196_s5 + $0x1260] ss:$24 sps:$4 sm:$0xff]  }
 0x264   : > { %8349 = vmatpush2.bf16.msra.mxu1 %v12160_v33  ;;  %v12217_v33 = vld [vmem:[%s18196_s5 + $0x1560] ss:$24 sps:$4 sm:$0xff]  }
 0x265   : > { %8390 = vmatpush2.bf16.msra.mxu0 %v12163_v34  ;;  %8350 = vmatprep.subr.bf16.mxu1 %v12168_v35  ;;  %v12222_v34 = vld [vmem:[%s18196_s5 + $0x1234] ss:$24 sps:$4 sm:$0xff]  }
 0x266   : > { %8391 = vmatprep.subr.bf16.mxu0 %v12171_v36  ;;  %v12225_v35 = vld [vmem:[%s18196_s5 + $0x1534] ss:$24 sps:$4 sm:$0xff]   ;;  %v12220_v36 = vld [vmem:[%s18196_s5 + $0x1230] ss:$24 sps:$4 sm:$0xff]  }
 0x268   : > { %8351 = vmatpush2.bf16.msra.mxu1 %v12166_v44  ;;  %v12223_v44 = vld [vmem:[%s18196_s5 + $0x1530] ss:$24 sps:$4 sm:$0xff]  }
 0x269   : > { %8392 = vmatpush2.bf16.msra.mxu0 %v12169_v45  ;;  %8352 = vmatprep.subr.bf16.mxu1 %v12174_v46  ;;  %v12228_v45 = vld [vmem:[%s18196_s5 + $0x1204] ss:$24 sps:$4 sm:$0xff]  }
 0x26a   : > { %8393 = vmatprep.subr.bf16.mxu0 %v12177_v47  ;;  %v12231_v46 = vld [vmem:[%s18196_s5 + $0x1504] ss:$24 sps:$4 sm:$0xff]   ;;  %v12226_v47 = vld [vmem:[%s18196_s5 + $0x1200] ss:$24 sps:$4 sm:$0xff]  }
 0x26c   : > { %8353 = vmatpush2.bf16.msra.mxu1 %v12172_v48  ;;  %v12229_v48 = vld [vmem:[%s18196_s5 + $0x1500] ss:$24 sps:$4 sm:$0xff]  }
 0x26d   : > { %8394 = vmatpush2.bf16.msra.mxu0 %v12175_v49  ;;  %8354 = vmatprep.subr.bf16.mxu1 %v12180_v50  ;;  %v12234_v49 = vld [vmem:[%s18196_s5 + $0x14d4] ss:$24 sps:$4 sm:$0xff]  }
 0x26e   : > { %8395 = vmatprep.subr.bf16.mxu0 %v12183_v51  ;;  %v12237_v50 = vld [vmem:[%s18196_s5 + $0x17d4] ss:$24 sps:$4 sm:$0xff]   ;;  %v12232_v51 = vld [vmem:[%s18196_s5 + $0x14d0] ss:$24 sps:$4 sm:$0xff]  }
 0x270   : > { %8355 = vmatpush2.bf16.msra.mxu1 %v12178_v52  ;;  %v12235_v52 = vld [vmem:[%s18196_s5 + $0x17d0] ss:$24 sps:$4 sm:$0xff]  }
 0x271   : > { %8396 = vmatpush2.bf16.msra.mxu0 %v12181_v53  ;;  %8406 = vmatprep.subr.bf16.mxu1 %v12186_v61  ;;  %v12240_v53 = vld [vmem:[%s18196_s5 + $0x14a4] ss:$24 sps:$4 sm:$0xff]   ;;  %v12238_v61 = vld [vmem:[%s18196_s5 + $0x14a0] ss:$24 sps:$4 sm:$0xff]  }
 0x272   : > { %8447 = vmatprep.subr.bf16.mxu0 %v12189_v63  ;;  %v12246_v63 = vld [vmem:[%s18196_s5 + $0x1474] ss:$24 sps:$4 sm:$0xff]  }
 0x273   : > { %8357 = vmatmul.mubr.bf16.vlgmr.msra.gmra.mxu1 %v14702_v5 }
 0x274   : > { %8398 = vmatmul.mubr.bf16.vlgmr.msra.gmra.mxu0 %v14707_v8  ;;  %8407 = vmatpush1.bf16.msra.mxu1 %v12184_v3  ;;  %v12244_v3 = vld [vmem:[%s18196_s5 + $0x1470] ss:$24 sps:$4 sm:$0xff]  }
 0x275   : > { %8438 = vmatprep.mubr.bf16.mxu1 %v14713_v11  ;;  %8448 = vmatpush1.bf16.msra.mxu0 %v12187_v6  ;;  %v12247_v6 = vld [vmem:[%s18196_s5 + $0x1770] ss:$24 sps:$4 sm:$0xff]  }
 0x276   : > { %8479 = vmatprep.mubr.bf16.mxu0 %v14721_v14  ;;  %8408 = vmatprep.subr.bf16.mxu1 %v12192_v60  ;;  %v12252_v60 = vld [vmem:[%s18196_s5 + $0x1444] ss:$24 sps:$4 sm:$0xff]  }
 0x277   : > { %8449 = vmatprep.subr.bf16.mxu0 %v12195_v12  ;;  %v12255_v12 = vld [vmem:[%s18196_s5 + $0x1744] ss:$24 sps:$4 sm:$0xff]  }
 0x278   : > { %8409 = vmatpush1.bf16.msra.mxu1 %v12190_v15  ;;  %v12250_v15 = vld [vmem:[%s18196_s5 + $0x1440] ss:$24 sps:$4 sm:$0xff]  }
 0x279   : > { %8450 = vmatpush1.bf16.msra.mxu0 %v12193_v16  ;;  %8410 = vmatprep.subr.bf16.mxu1 %v12198_v17  ;;  %v12253_v16 = vld [vmem:[%s18196_s5 + $0x1740] ss:$24 sps:$4 sm:$0xff]   ;;  %v12258_v17 = vld [vmem:[%s18196_s5 + $0x1414] ss:$24 sps:$4 sm:$0xff]  }
 0x27a   : > { %8451 = vmatprep.subr.bf16.mxu0 %v12201_v4  ;;  %v12261_v4 = vld [vmem:[%s18196_s5 + $0x1714] ss:$24 sps:$4 sm:$0xff]  }
 0x27c   : > { %8411 = vmatpush1.bf16.msra.mxu1 %v12196_v19  ;;  %v12256_v19 = vld [vmem:[%s18196_s5 + $0x1410] ss:$24 sps:$4 sm:$0xff]  }
 0x27d   : > { %8452 = vmatpush1.bf16.msra.mxu0 %v12199_v20  ;;  %8412 = vmatprep.subr.bf16.mxu1 %v12204_v21  ;;  %v12259_v20 = vld [vmem:[%s18196_s5 + $0x1710] ss:$24 sps:$4 sm:$0xff]   ;;  %v12264_v21 = vld [vmem:[%s18196_s5 + $0x13e4] ss:$24 sps:$4 sm:$0xff]  }
 0x27e   : > { %8453 = vmatprep.subr.bf16.mxu0 %v12207_v37  ;;  %v12267_v37 = vld [vmem:[%s18196_s5 + $0x16e4] ss:$24 sps:$4 sm:$0xff]  }
 0x280   : > { %8413 = vmatpush1.bf16.msra.mxu1 %v12202_v22  ;;  %v12262_v22 = vld [vmem:[%s18196_s5 + $0x13e0] ss:$24 sps:$4 sm:$0xff]  }
 0x281   : > { %8454 = vmatpush1.bf16.msra.mxu0 %v12205_v23  ;;  %8414 = vmatprep.subr.bf16.mxu1 %v12210_v24  ;;  %v12265_v23 = vld [vmem:[%s18196_s5 + $0x16e0] ss:$24 sps:$4 sm:$0xff]   ;;  %v12270_v24 = vld [vmem:[%s18196_s5 + $0x13b4] ss:$24 sps:$4 sm:$0xff]  }
 0x282   : > { %8455 = vmatprep.subr.bf16.mxu0 %v12213_v25  ;;  %v12273_v25 = vld [vmem:[%s18196_s5 + $0x16b4] ss:$24 sps:$4 sm:$0xff]  }
 0x284   : > { %8415 = vmatpush1.bf16.msra.mxu1 %v12208_v42  ;;  %v12268_v42 = vld [vmem:[%s18196_s5 + $0x13b0] ss:$24 sps:$4 sm:$0xff]  }
 0x285   : > { %8456 = vmatpush1.bf16.msra.mxu0 %v12211_v26  ;;  %8416 = vmatprep.subr.bf16.mxu1 %v12216_v27  ;;  %v12271_v26 = vld [vmem:[%s18196_s5 + $0x16b0] ss:$24 sps:$4 sm:$0xff]   ;;  %v12276_v27 = vld [vmem:[%s18196_s5 + $0x1384] ss:$24 sps:$4 sm:$0xff]  }
 0x286   : > { %8457 = vmatprep.subr.bf16.mxu0 %v12219_v32  ;;  %v12279_v32 = vld [vmem:[%s18196_s5 + $0x1684] ss:$24 sps:$4 sm:$0xff]  }
 0x288   : > { %8417 = vmatpush1.bf16.msra.mxu1 %v12214_v54  ;;  %v12274_v54 = vld [vmem:[%s18196_s5 + $0x1380] ss:$24 sps:$4 sm:$0xff]  }
 0x289   : > { %8458 = vmatpush1.bf16.msra.mxu0 %v12217_v33  ;;  %8418 = vmatprep.subr.bf16.mxu1 %v12222_v34  ;;  %v12277_v33 = vld [vmem:[%s18196_s5 + $0x1680] ss:$24 sps:$4 sm:$0xff]   ;;  %v13744_v34 = vld [vmem:[#allocation3 + $0x8] sm:$0xff] }
 0x28a   : > { %8459 = vmatprep.subr.bf16.mxu0 %v12225_v35  ;;  %v861_v35 = vrot.slane %v13744_v34, %v14467_v18  ;;  %v12310_v34 = vld [vmem:[%s18196_s5 + $0x1860] ss:$24 sps:$4 sm:$0xff]  }
 0x28c   : > { %8419 = vmatpush1.bf16.msra.mxu1 %v12220_v36  ;;  %v12282_v36 = vld [vmem:[%s18196_s5 + $0x1954] ss:$24 sps:$4 sm:$0xff]  }
 0x28d   : > { %8460 = vmatpush1.bf16.msra.mxu0 %v12223_v44  ;;  %8420 = vmatprep.subr.bf16.mxu1 %v12228_v45  ;;  %v12285_v44 = vld [vmem:[%s18196_s5 + $0x1c54] ss:$24 sps:$4 sm:$0xff]  }
 0x28e   : > { %8461 = vmatprep.subr.bf16.mxu0 %v12231_v46  ;;  %v14906_v45 = vld [vmem:[#allocation3 + $0x10] sm:$0xff] }
 0x28f   : > { %v881_v46 = vrot.slane %v14906_v45, %v14224_v38 }
 0x290   : > { %8421 = vmatpush1.bf16.msra.mxu1 %v12226_v47  ;;  %v12280_v47 = vld [vmem:[%s18196_s5 + $0x1950] ss:$24 sps:$4 sm:$0xff]  }
 0x291   : > { %8462 = vmatpush1.bf16.msra.mxu0 %v12229_v48  ;;  %8422 = vmatprep.subr.bf16.mxu1 %v12234_v49  ;;  %v889_v48 = vrot.slane %v14906_v45, %v14227_v39  ;;  %v14915_v49 = vpack.c.bf16 %v861_v35, %v861_v35  ;;  %v12313_v35 = vld [vmem:[%s18196_s5 + $0x1b60] ss:$24 sps:$4 sm:$0xff]  }
 0x292   : > { %8463 = vmatprep.subr.bf16.mxu0 %v12237_v50  ;;  %v12283_v50 = vld [vmem:[%s18196_s5 + $0x1c50] ss:$24 sps:$4 sm:$0xff]  }
 0x294   : > { %8423 = vmatpush2.bf16.msra.mxu1 %v12232_v51  ;;  %v14922_v51 = vpack.c.bf16 %v14307_v7, %v14307_v7  ;;  %v14936_v7 = vpack.c.bf16 %v889_v48, %v889_v48  ;;  %v12324_v48 = vld [vmem:[%s18196_s5 + $0x1804] ss:$24 sps:$4 sm:$0xff]  }
 0x295   : > { %8464 = vmatpush2.bf16.msra.mxu0 %v12235_v52  ;;  %8424 = vmatprep.subr.bf16.mxu1 %v12240_v53  ;;  %v12288_v52 = vld [vmem:[%s18196_s5 + $0x1924] ss:$24 sps:$4 sm:$0xff]  }
 0x296   : > { %8465 = vmatprep.subr.bf16.mxu0 %v12243_v59 }
 0x298   : > { %8425 = vmatpush2.bf16.msra.mxu1 %v12238_v61  ;;  %v14928_v61 = vpack.c.bf16 %v881_v46, %v881_v46  ;;  %v12316_v46 = vld [vmem:[%s18196_s5 + $0x1830] ss:$24 sps:$4 sm:$0xff]  }
 0x299   : > { %8466 = vmatpush2.bf16.msra.mxu0 %v12241_v62  ;;  %8426 = vmatprep.subr.bf16.mxu1 %v12246_v63  ;;  %v12291_v62 = vld [vmem:[%s18196_s5 + $0x1c24] ss:$24 sps:$4 sm:$0xff]  }
 0x29a   : > { %8467 = vmatprep.subr.bf16.mxu0 %v12249_v2  ;;  %v12286_v2 = vld [vmem:[%s18196_s5 + $0x1920] ss:$24 sps:$4 sm:$0xff]  }
 0x29c   : > { %8427 = vmatpush2.bf16.msra.mxu1 %v12244_v3 }
 0x29d   : > { %8468 = vmatpush2.bf16.msra.mxu0 %v12247_v6  ;;  %8428 = vmatprep.subr.bf16.mxu1 %v12252_v60  ;;  %v12289_v60 = vld [vmem:[%s18196_s5 + $0x1c20] ss:$24 sps:$4 sm:$0xff]  }
 0x29e   : > { %8469 = vmatprep.subr.bf16.mxu0 %v12255_v12  ;;  %v12294_v12 = vld [vmem:[%s18196_s5 + $0x18f4] ss:$24 sps:$4 sm:$0xff]  }
 0x2a0   : > { %8429 = vmatpush2.bf16.msra.mxu1 %v12250_v15 }
 0x2a1   : > { %8470 = vmatpush2.bf16.msra.mxu0 %v12253_v16  ;;  %8430 = vmatprep.subr.bf16.mxu1 %v12258_v17  ;;  %v12297_v16 = vld [vmem:[%s18196_s5 + $0x1bf4] ss:$24 sps:$4 sm:$0xff]  }
 0x2a2   : > { %8471 = vmatprep.subr.bf16.mxu0 %v12261_v4 }
 0x2a4   : > { %8431 = vmatpush2.bf16.msra.mxu1 %v12256_v19  ;;  %v12292_v19 = vld [vmem:[%s18196_s5 + $0x18f0] ss:$24 sps:$4 sm:$0xff]  }
 0x2a5   : > { %8472 = vmatpush2.bf16.msra.mxu0 %v12259_v20  ;;  %8432 = vmatprep.subr.bf16.mxu1 %v12264_v21 }
 0x2a6   : > { %8473 = vmatprep.subr.bf16.mxu0 %v12267_v37  ;;  %v12295_v37 = vld [vmem:[%s18196_s5 + $0x1bf0] ss:$24 sps:$4 sm:$0xff]  }
 0x2a8   : > { %8433 = vmatpush2.bf16.msra.mxu1 %v12262_v22  ;;  %v12300_v22 = vld [vmem:[%s18196_s5 + $0x18c4] ss:$24 sps:$4 sm:$0xff]  }
 0x2a9   : > { %8474 = vmatpush2.bf16.msra.mxu0 %v12265_v23  ;;  %8434 = vmatprep.subr.bf16.mxu1 %v12270_v24  ;;  %v12303_v23 = vld [vmem:[%s18196_s5 + $0x1bc4] ss:$24 sps:$4 sm:$0xff]   ;;  %v12298_v24 = vld [vmem:[%s18196_s5 + $0x18c0] ss:$24 sps:$4 sm:$0xff]  }
 0x2aa   : > { %8475 = vmatprep.subr.bf16.mxu0 %v12273_v25  ;;  %v12301_v25 = vld [vmem:[%s18196_s5 + $0x1bc0] ss:$24 sps:$4 sm:$0xff]  }
 0x2ac   : > { %8435 = vmatpush2.bf16.msra.mxu1 %v12268_v42  ;;  %v12306_v42 = vld [vmem:[%s18196_s5 + $0x1894] ss:$24 sps:$4 sm:$0xff]  }
 0x2ad   : > { %8476 = vmatpush2.bf16.msra.mxu0 %v12271_v26  ;;  %8436 = vmatprep.subr.bf16.mxu1 %v12276_v27  ;;  %v12309_v26 = vld [vmem:[%s18196_s5 + $0x1b94] ss:$24 sps:$4 sm:$0xff]   ;;  %v12304_v27 = vld [vmem:[%s18196_s5 + $0x1890] ss:$24 sps:$4 sm:$0xff]  }
 0x2ae   : > { %8477 = vmatprep.subr.bf16.mxu0 %v12279_v32  ;;  %v12307_v32 = vld [vmem:[%s18196_s5 + $0x1b90] ss:$24 sps:$4 sm:$0xff]  }
 0x2b0   : > { %8437 = vmatpush2.bf16.msra.mxu1 %v12274_v54  ;;  %v12312_v54 = vld [vmem:[%s18196_s5 + $0x1864] ss:$24 sps:$4 sm:$0xff]  }
 0x2b1   : > { %8478 = vmatpush2.bf16.msra.mxu0 %v12277_v33  ;;  %8488 = vmatprep.subr.bf16.mxu1 %v12282_v36  ;;  %v12315_v33 = vld [vmem:[%s18196_s5 + $0x1b64] ss:$24 sps:$4 sm:$0xff]   ;;  %v12318_v36 = vld [vmem:[%s18196_s5 + $0x1834] ss:$24 sps:$4 sm:$0xff]  }
 0x2b2   : > { %8529 = vmatprep.subr.bf16.mxu0 %v12285_v44  ;;  %v12321_v44 = vld [vmem:[%s18196_s5 + $0x1b34] ss:$24 sps:$4 sm:$0xff]  }
 0x2b3   : > { %8439 = vmatmul.mubr.bf16.vlgmr.msra.gmra.mxu1 %v14915_v49  ;;  %v8194_v53 = vpop.f32.mrf.mxu1  ;;  %v8235_v59 = vpop.f32.mrf.mxu0 }
 0x2b4   : > { %8480 = vmatmul.mubr.bf16.vlgmr.msra.gmra.mxu0 %v14922_v51  ;;  %v14934_v63 = vadd.f32 %v8235_v59, %v8194_v53  ;;  %8489 = vmatpush1.bf16.msra.mxu1 %v12280_v47  ;;  %v12319_v47 = vld [vmem:[%s18196_s5 + $0x1b30] ss:$24 sps:$4 sm:$0xff]   ;;  %v12325_v53 = vld [vmem:[%s18196_s5 + $0x1b00] ss:$24 sps:$4 sm:$0xff]   ;;  %v12330_v59 = vld [vmem:[%s18196_s5 + $0x1ad4] ss:$24 sps:$4 sm:$0xff]  }
 0x2b5   : > { %8520 = vmatprep.mubr.bf16.mxu1 %v14928_v61  ;;  %8530 = vmatpush1.bf16.msra.mxu0 %v12283_v50  ;;  %v8196_v3 = vpop.f32.mrf.mxu1  ;;  %v8237_v6 = vpop.f32.mrf.mxu0  ;;  %v12327_v50 = vld [vmem:[%s18196_s5 + $0x1b04] ss:$24 sps:$4 sm:$0xff]  }
 0x2b6   : > { %8561 = vmatprep.mubr.bf16.mxu0 %v14936_v7  ;;  %v14949_v15 = vadd.f32 %v8237_v6, %v8196_v3  ;;  %8490 = vmatprep.subr.bf16.mxu1 %v12288_v52  ;;  %v12322_v52 = vld [vmem:[%s18196_s5 + $0x1800] ss:$24 sps:$4 sm:$0xff]   ;;  %v12331_v3 = vld [vmem:[%s18196_s5 + $0x1dd0] ss:$24 sps:$4 sm:$0xff]   ;;  %v12336_v6 = vld [vmem:[%s18196_s5 + $0x1aa4] ss:$24 sps:$4 sm:$0xff]  }
 0x2b7   : > { %8531 = vmatprep.subr.bf16.mxu0 %v12291_v62  ;;  %v8198_v17 = vpop.f32.mrf.mxu1  ;;  %v8239_v4 = vpop.f32.mrf.mxu0  ;;  %v12333_v62 = vld [vmem:[%s18196_s5 + $0x1dd4] ss:$24 sps:$4 sm:$0xff]  }
 0x2b8   : > { %8491 = vmatpush1.bf16.msra.mxu1 %v12286_v2  ;;  %v12328_v2 = vld [vmem:[%s18196_s5 + $0x1ad0] ss:$24 sps:$4 sm:$0xff]   ;;  %v12342_v17 = vld [vmem:[%s18196_s5 + $0x1a74] ss:$24 sps:$4 sm:$0xff]  }
 0x2b9   : > { %8532 = vmatpush1.bf16.msra.mxu0 %v12289_v60  ;;  %v8199_v20 = vpop.f32.mrf.mxu1  ;;  %v8240_v21 = vpop.f32.mrf.mxu0  ;;  %8492 = vmatprep.subr.bf16.mxu1 %v12294_v12  ;;  %v12339_v60 = vld [vmem:[%s18196_s5 + $0x1da4] ss:$24 sps:$4 sm:$0xff]   ;;  %v12334_v12 = vld [vmem:[%s18196_s5 + $0x1aa0] ss:$24 sps:$4 sm:$0xff]   ;;  %v12345_v4 = vld [vmem:[%s18196_s5 + $0x1d74] ss:$24 sps:$4 sm:$0xff]  }
 0x2ba   : > { %8533 = vmatprep.subr.bf16.mxu0 %v12297_v16  ;;  %v12337_v16 = vld [vmem:[%s18196_s5 + $0x1da0] ss:$24 sps:$4 sm:$0xff]   ;;  %v12343_v20 = vld [vmem:[%s18196_s5 + $0x1d70] ss:$24 sps:$4 sm:$0xff]   ;;  %v12348_v21 = vld [vmem:[%s18196_s5 + $0x1a44] ss:$24 sps:$4 sm:$0xff]  }
 0x2bc   : > { %8493 = vmatpush1.bf16.msra.mxu1 %v12292_v19  ;;  %v12340_v19 = vld [vmem:[%s18196_s5 + $0x1a70] ss:$24 sps:$4 sm:$0xff]  }
 0x2bd   : > { %8534 = vmatpush1.bf16.msra.mxu0 %v12295_v37  ;;  %8494 = vmatprep.subr.bf16.mxu1 %v12300_v22  ;;  %v12351_v37 = vld [vmem:[%s18196_s5 + $0x1d44] ss:$24 sps:$4 sm:$0xff]   ;;  %v12346_v22 = vld [vmem:[%s18196_s5 + $0x1a40] ss:$24 sps:$4 sm:$0xff]  }
 0x2be   : > { %8535 = vmatprep.subr.bf16.mxu0 %v12303_v23  ;;  %v12349_v23 = vld [vmem:[%s18196_s5 + $0x1d40] ss:$24 sps:$4 sm:$0xff]  }
 0x2c0   : > { %8495 = vmatpush1.bf16.msra.mxu1 %v12298_v24  ;;  %v12354_v24 = vld [vmem:[%s18196_s5 + $0x1a14] ss:$24 sps:$4 sm:$0xff]  }
 0x2c1   : > { %8536 = vmatpush1.bf16.msra.mxu0 %v12301_v25  ;;  %8496 = vmatprep.subr.bf16.mxu1 %v12306_v42  ;;  %v12357_v25 = vld [vmem:[%s18196_s5 + $0x1d14] ss:$24 sps:$4 sm:$0xff]   ;;  %v12352_v42 = vld [vmem:[%s18196_s5 + $0x1a10] ss:$24 sps:$4 sm:$0xff]  }
 0x2c2   : > { %8537 = vmatprep.subr.bf16.mxu0 %v12309_v26  ;;  %v12355_v26 = vld [vmem:[%s18196_s5 + $0x1d10] ss:$24 sps:$4 sm:$0xff]  }
 0x2c4   : > { %8497 = vmatpush1.bf16.msra.mxu1 %v12304_v27  ;;  %v12360_v27 = vld [vmem:[%s18196_s5 + $0x19e4] ss:$24 sps:$4 sm:$0xff]  }
 0x2c5   : > { %8538 = vmatpush1.bf16.msra.mxu0 %v12307_v32  ;;  %8498 = vmatprep.subr.bf16.mxu1 %v12312_v54  ;;  %v12363_v32 = vld [vmem:[%s18196_s5 + $0x1ce4] ss:$24 sps:$4 sm:$0xff]   ;;  %v12358_v54 = vld [vmem:[%s18196_s5 + $0x19e0] ss:$24 sps:$4 sm:$0xff]  }
 0x2c6   : > { %8539 = vmatprep.subr.bf16.mxu0 %v12315_v33  ;;  %v12361_v33 = vld [vmem:[%s18196_s5 + $0x1ce0] ss:$24 sps:$4 sm:$0xff]  }
 0x2c8   : > { %8499 = vmatpush1.bf16.msra.mxu1 %v12310_v34  ;;  %v12366_v34 = vld [vmem:[%s18196_s5 + $0x19b4] ss:$24 sps:$4 sm:$0xff]  }
 0x2c9   : > { %8540 = vmatpush1.bf16.msra.mxu0 %v12313_v35  ;;  %8500 = vmatprep.subr.bf16.mxu1 %v12318_v36  ;;  %v12369_v35 = vld [vmem:[%s18196_s5 + $0x1cb4] ss:$24 sps:$4 sm:$0xff]   ;;  %v12364_v36 = vld [vmem:[%s18196_s5 + $0x19b0] ss:$24 sps:$4 sm:$0xff]  }
 0x2ca   : > { %8541 = vmatprep.subr.bf16.mxu0 %v12321_v44  ;;  %v12367_v44 = vld [vmem:[%s18196_s5 + $0x1cb0] ss:$24 sps:$4 sm:$0xff]  }
 0x2cc   : > { %8501 = vmatpush1.bf16.msra.mxu1 %v12316_v46  ;;  %v12372_v46 = vld [vmem:[%s18196_s5 + $0x1984] ss:$24 sps:$4 sm:$0xff]  }
 0x2cd   : > { %8542 = vmatpush1.bf16.msra.mxu0 %v12319_v47  ;;  %8502 = vmatprep.subr.bf16.mxu1 %v12324_v48  ;;  %v12375_v47 = vld [vmem:[%s18196_s5 + $0x1c84] ss:$24 sps:$4 sm:$0xff]   ;;  %v12370_v48 = vld [vmem:[%s18196_s5 + $0x1980] ss:$24 sps:$4 sm:$0xff]  }
 0x2ce   : > { %8543 = vmatprep.subr.bf16.mxu0 %v12327_v50  ;;  %v12373_v50 = vld [vmem:[%s18196_s5 + $0x1c80] ss:$24 sps:$4 sm:$0xff]  }
 0x2d0   : > { %8503 = vmatpush1.bf16.msra.mxu1 %v12322_v52  ;;  %v877_v52 = vrot.slane %v14906_v45, %v14230_v40 }
 0x2d1   : > { %8544 = vmatpush1.bf16.msra.mxu0 %v12325_v53  ;;  %8504 = vmatprep.subr.bf16.mxu1 %v12330_v59  ;;  %v12378_v53 = vld [vmem:[%s18196_s5 + $0x1f54] ss:$24 sps:$4 sm:$0xff]   ;;  %v885_v59 = vrot.slane %v14906_v45, %v14233_v41 }
 0x2d2   : > { %8545 = vmatprep.subr.bf16.mxu0 %v12333_v62  ;;  %v12381_v62 = vld [vmem:[%s18196_s5 + $0x2254] ss:$24 sps:$4 sm:$0xff]  }
 0x2d4   : > { %8505 = vmatpush2.bf16.msra.mxu1 %v12328_v2  ;;  %v897_v2 = vrot.slane %v14906_v45, %v14238_v43 }
 0x2d5   : > { %8546 = vmatpush2.bf16.msra.mxu0 %v12331_v3  ;;  %8506 = vmatprep.subr.bf16.mxu1 %v12336_v6  ;;  %v12376_v3 = vld [vmem:[%s18196_s5 + $0x1f50] ss:$24 sps:$4 sm:$0xff]   ;;  %v15131_v6 = vpack.c.bf16 %v877_v52, %v877_v52 }
 0x2d6   : > { %8547 = vmatprep.subr.bf16.mxu0 %v12339_v60  ;;  %v12379_v60 = vld [vmem:[%s18196_s5 + $0x2250] ss:$24 sps:$4 sm:$0xff]  }
 0x2d7   : > { %v12400_v52 = vld [vmem:[%s18196_s5 + $0x1e90] ss:$24 sps:$4 sm:$0xff]  }
 0x2d8   : > { %8507 = vmatpush2.bf16.msra.mxu1 %v12334_v12  ;;  %v15136_v12 = vpack.c.bf16 %v885_v59, %v885_v59  ;;  %v12408_v59 = vld [vmem:[%s18196_s5 + $0x1e64] ss:$24 sps:$4 sm:$0xff]  }
 0x2d9   : > { %8548 = vmatpush2.bf16.msra.mxu0 %v12337_v16  ;;  %8508 = vmatprep.subr.bf16.mxu1 %v12342_v17  ;;  %v12384_v16 = vld [vmem:[%s18196_s5 + $0x1f24] ss:$24 sps:$4 sm:$0xff]  }
 0x2da   : > { %8549 = vmatprep.subr.bf16.mxu0 %v12345_v4 }
 0x2dc   : > { %8509 = vmatpush2.bf16.msra.mxu1 %v12340_v19  ;;  %v15142_v19 = vpack.c.bf16 %v897_v2, %v897_v2  ;;  %v12406_v2 = vld [vmem:[%s18196_s5 + $0x1e60] ss:$24 sps:$4 sm:$0xff]  }
 0x2dd   : > { %8550 = vmatpush2.bf16.msra.mxu0 %v12343_v20  ;;  %8510 = vmatprep.subr.bf16.mxu1 %v12348_v21  ;;  %v12387_v20 = vld [vmem:[%s18196_s5 + $0x2224] ss:$24 sps:$4 sm:$0xff]  }
 0x2de   : > { %8551 = vmatprep.subr.bf16.mxu0 %v12351_v37  ;;  %v15151_v37 = vpack.c.bf16 %v14312_v9, %v14312_v9 }
 0x2e0   : > { %8511 = vmatpush2.bf16.msra.mxu1 %v12346_v22  ;;  %v12382_v22 = vld [vmem:[%s18196_s5 + $0x1f20] ss:$24 sps:$4 sm:$0xff]  }
 0x2e1   : > { %8552 = vmatpush2.bf16.msra.mxu0 %v12349_v23  ;;  %8512 = vmatprep.subr.bf16.mxu1 %v12354_v24 }
 0x2e2   : > { %8553 = vmatprep.subr.bf16.mxu0 %v12357_v25  ;;  %v12390_v25 = vld [vmem:[%s18196_s5 + $0x1ef4] ss:$24 sps:$4 sm:$0xff]  }
 0x2e4   : > { %8513 = vmatpush2.bf16.msra.mxu1 %v12352_v42 }
 0x2e5   : > { %8554 = vmatpush2.bf16.msra.mxu0 %v12355_v26  ;;  %8514 = vmatprep.subr.bf16.mxu1 %v12360_v27  ;;  %v12393_v26 = vld [vmem:[%s18196_s5 + $0x21f4] ss:$24 sps:$4 sm:$0xff]  }
 0x2e6   : > { %8555 = vmatprep.subr.bf16.mxu0 %v12363_v32 }
 0x2e8   : > { %8515 = vmatpush2.bf16.msra.mxu1 %v12358_v54 }
 0x2e9   : > { %8556 = vmatpush2.bf16.msra.mxu0 %v12361_v33  ;;  %8516 = vmatprep.subr.bf16.mxu1 %v12366_v34  ;;  %v12388_v33 = vld [vmem:[%s18196_s5 + $0x1ef0] ss:$24 sps:$4 sm:$0xff]  }
 0x2ea   : > { %8557 = vmatprep.subr.bf16.mxu0 %v12369_v35 }
 0x2ec   : > { %8517 = vmatpush2.bf16.msra.mxu1 %v12364_v36  ;;  %v12396_v36 = vld [vmem:[%s18196_s5 + $0x1ec4] ss:$24 sps:$4 sm:$0xff]  }
 0x2ed   : > { %8558 = vmatpush2.bf16.msra.mxu0 %v12367_v44  ;;  %8518 = vmatprep.subr.bf16.mxu1 %v12372_v46  ;;  %v12399_v44 = vld [vmem:[%s18196_s5 + $0x21c4] ss:$24 sps:$4 sm:$0xff]   ;;  %v12394_v46 = vld [vmem:[%s18196_s5 + $0x1ec0] ss:$24 sps:$4 sm:$0xff]  }
 0x2ee   : > { %8559 = vmatprep.subr.bf16.mxu0 %v12375_v47  ;;  %v12397_v47 = vld [vmem:[%s18196_s5 + $0x21c0] ss:$24 sps:$4 sm:$0xff]  }
 0x2f0   : > { %8519 = vmatpush2.bf16.msra.mxu1 %v12370_v48  ;;  %v12402_v48 = vld [vmem:[%s18196_s5 + $0x1e94] ss:$24 sps:$4 sm:$0xff]  }
 0x2f1   : > { %8560 = vmatpush2.bf16.msra.mxu0 %v12373_v50  ;;  %8570 = vmatprep.subr.bf16.mxu1 %v12378_v53  ;;  %v12405_v50 = vld [vmem:[%s18196_s5 + $0x2194] ss:$24 sps:$4 sm:$0xff]   ;;  %v12403_v53 = vld [vmem:[%s18196_s5 + $0x2190] ss:$24 sps:$4 sm:$0xff]  }
 0x2f2   : > { %8611 = vmatprep.subr.bf16.mxu0 %v12381_v62  ;;  %v12411_v62 = vld [vmem:[%s18196_s5 + $0x2164] ss:$24 sps:$4 sm:$0xff]  }
 0x2f3   : > { %v8276_v17 = vpop.f32.mrf.mxu1  ;;  %v8317_v4 = vpop.f32.mrf.mxu0  ;;  %8521 = vmatmul.mubr.bf16.vlgmr.msra.gmra.mxu1 %v15131_v6 }
 0x2f4   : > { %v8277_v21 = vadd.f32 %v8276_v17, %v14934_v63  ;;  %8562 = vmatmul.mubr.bf16.vlgmr.msra.gmra.mxu0 %v15136_v12  ;;  %8571 = vmatpush1.bf16.msra.mxu1 %v12376_v3  ;;  %v12385_v63 = vld [vmem:[%s18196_s5 + $0x2220] ss:$24 sps:$4 sm:$0xff]   ;;  %v12412_v17 = vld [vmem:[%s18196_s5 + $0x1e30] ss:$24 sps:$4 sm:$0xff]  }
 0x2f5   : > { %8602 = vmatprep.mubr.bf16.mxu1 %v15142_v19  ;;  %8612 = vmatpush1.bf16.msra.mxu0 %v12379_v60  ;;  %v8278_v23 = vpop.f32.mrf.mxu1  ;;  %v8319_v24 = vpop.f32.mrf.mxu0  ;;  %v12409_v3 = vld [vmem:[%s18196_s5 + $0x2160] ss:$24 sps:$4 sm:$0xff]   ;;  %v12414_v60 = vld [vmem:[%s18196_s5 + $0x1e34] ss:$24 sps:$4 sm:$0xff]  }
 0x2f6   : > { %v15163_v42 = vadd.f32 %v8317_v4, %v8277_v21  ;;  %8643 = vmatprep.mubr.bf16.mxu0 %v15151_v37  ;;  %v8279_v9 = vadd.f32 %v8278_v23, %v14949_v15  ;;  %8572 = vmatprep.subr.bf16.mxu1 %v12384_v16  ;;  %v12391_v15 = vld [vmem:[%s18196_s5 + $0x21f0] ss:$24 sps:$4 sm:$0xff]   ;;  %v12417_v16 = vld [vmem:[%s18196_s5 + $0x2134] ss:$24 sps:$4 sm:$0xff]   ;;  %v12423_v21 = vld [vmem:[%s18196_s5 + $0x2104] ss:$24 sps:$4 sm:$0xff]  }
 0x2f7   : > { %v8280_v27 = vpop.f32.mrf.mxu1  ;;  %v8321_v32 = vpop.f32.mrf.mxu0  ;;  %8613 = vmatprep.subr.bf16.mxu0 %v12387_v20  ;;  %v12415_v4 = vld [vmem:[%s18196_s5 + $0x2130] ss:$24 sps:$4 sm:$0xff]   ;;  %v12420_v20 = vld [vmem:[%s18196_s5 + $0x1e04] ss:$24 sps:$4 sm:$0xff]   ;;  %v12421_v23 = vld [vmem:[%s18196_s5 + $0x2100] ss:$24 sps:$4 sm:$0xff]  }
 0x2f8   : > { %v15170_v54 = vadd.f32 %v8319_v24, %v8279_v9  ;;  %8573 = vmatpush1.bf16.msra.mxu1 %v12382_v22  ;;  %v12418_v22 = vld [vmem:[%s18196_s5 + $0x1e00] ss:$24 sps:$4 sm:$0xff]   ;;  %v12426_v24 = vld [vmem:[%s18196_s5 + $0x20d4] ss:$24 sps:$4 sm:$0xff]   ;;  %v12427_v9 = vld [vmem:[%s18196_s5 + $0x23d0] ss:$24 sps:$4 sm:$0xff]  }
 0x2f9   : > { %8614 = vmatpush1.bf16.msra.mxu0 %v12385_v63  ;;  %v8281_v34 = vpop.f32.mrf.mxu1  ;;  %v8322_v35 = vpop.f32.mrf.mxu0  ;;  %8574 = vmatprep.subr.bf16.mxu1 %v12390_v25  ;;  %v12429_v63 = vld [vmem:[%s18196_s5 + $0x23d4] ss:$24 sps:$4 sm:$0xff]   ;;  %v12424_v25 = vld [vmem:[%s18196_s5 + $0x20d0] ss:$24 sps:$4 sm:$0xff]   ;;  %v12435_v27 = vld [vmem:[%s18196_s5 + $0x23a4] ss:$24 sps:$4 sm:$0xff]  }
 0x2fa   : > { %8615 = vmatprep.subr.bf16.mxu0 %v12393_v26  ;;  %v12432_v26 = vld [vmem:[%s18196_s5 + $0x20a4] ss:$24 sps:$4 sm:$0xff]   ;;  %v12430_v32 = vld [vmem:[%s18196_s5 + $0x20a0] ss:$24 sps:$4 sm:$0xff]   ;;  %v12438_v34 = vld [vmem:[%s18196_s5 + $0x2074] ss:$24 sps:$4 sm:$0xff]  }
 0x2fb   : > { %v12441_v35 = vld [vmem:[%s18196_s5 + $0x2374] ss:$24 sps:$4 sm:$0xff]  }
 0x2fc   : > { %8575 = vmatpush1.bf16.msra.mxu1 %v12388_v33  ;;  %v12433_v33 = vld [vmem:[%s18196_s5 + $0x23a0] ss:$24 sps:$4 sm:$0xff]  }
 0x2fd   : > { %8616 = vmatpush1.bf16.msra.mxu0 %v12391_v15  ;;  %8576 = vmatprep.subr.bf16.mxu1 %v12396_v36  ;;  %v12436_v15 = vld [vmem:[%s18196_s5 + $0x2070] ss:$24 sps:$4 sm:$0xff]  }
 0x2fe   : > { %8617 = vmatprep.subr.bf16.mxu0 %v12399_v44  ;;  %v12439_v36 = vld [vmem:[%s18196_s5 + $0x2370] ss:$24 sps:$4 sm:$0xff]   ;;  %v12444_v44 = vld [vmem:[%s18196_s5 + $0x2044] ss:$24 sps:$4 sm:$0xff]  }
 0x300   : > { %8577 = vmatpush1.bf16.msra.mxu1 %v12394_v46  ;;  %v12447_v46 = vld [vmem:[%s18196_s5 + $0x2344] ss:$24 sps:$4 sm:$0xff]  }
 0x301   : > { %8618 = vmatpush1.bf16.msra.mxu0 %v12397_v47  ;;  %8578 = vmatprep.subr.bf16.mxu1 %v12402_v48  ;;  %v12442_v47 = vld [vmem:[%s18196_s5 + $0x2040] ss:$24 sps:$4 sm:$0xff]  }
 0x302   : > { %8619 = vmatprep.subr.bf16.mxu0 %v12405_v50  ;;  %v12445_v48 = vld [vmem:[%s18196_s5 + $0x2340] ss:$24 sps:$4 sm:$0xff]   ;;  %v12450_v50 = vld [vmem:[%s18196_s5 + $0x2014] ss:$24 sps:$4 sm:$0xff]  }
 0x304   : > { %8579 = vmatpush1.bf16.msra.mxu1 %v12400_v52  ;;  %v12453_v52 = vld [vmem:[%s18196_s5 + $0x2314] ss:$24 sps:$4 sm:$0xff]  }
 0x305   : > { %8620 = vmatpush1.bf16.msra.mxu0 %v12403_v53  ;;  %8580 = vmatprep.subr.bf16.mxu1 %v12408_v59  ;;  %v12448_v53 = vld [vmem:[%s18196_s5 + $0x2010] ss:$24 sps:$4 sm:$0xff]  }
 0x306   : > { %8621 = vmatprep.subr.bf16.mxu0 %v12411_v62  ;;  %v12451_v59 = vld [vmem:[%s18196_s5 + $0x2310] ss:$24 sps:$4 sm:$0xff]   ;;  %v12456_v62 = vld [vmem:[%s18196_s5 + $0x1fe4] ss:$24 sps:$4 sm:$0xff]  }
 0x308   : > { %8581 = vmatpush1.bf16.msra.mxu1 %v12406_v2  ;;  %v12459_v2 = vld [vmem:[%s18196_s5 + $0x22e4] ss:$24 sps:$4 sm:$0xff]  }
 0x309   : > { %8622 = vmatpush1.bf16.msra.mxu0 %v12409_v3  ;;  %8582 = vmatprep.subr.bf16.mxu1 %v12414_v60  ;;  %v12454_v3 = vld [vmem:[%s18196_s5 + $0x1fe0] ss:$24 sps:$4 sm:$0xff]  }
 0x30a   : > { %8623 = vmatprep.subr.bf16.mxu0 %v12417_v16  ;;  %v12457_v60 = vld [vmem:[%s18196_s5 + $0x22e0] ss:$24 sps:$4 sm:$0xff]   ;;  %v12462_v16 = vld [vmem:[%s18196_s5 + $0x1fb4] ss:$24 sps:$4 sm:$0xff]  }
 0x30c   : > { %8583 = vmatpush1.bf16.msra.mxu1 %v12412_v17  ;;  %v12465_v17 = vld [vmem:[%s18196_s5 + $0x22b4] ss:$24 sps:$4 sm:$0xff]  }
 0x30d   : > { %8624 = vmatpush1.bf16.msra.mxu0 %v12415_v4  ;;  %8584 = vmatprep.subr.bf16.mxu1 %v12420_v20  ;;  %v12460_v4 = vld [vmem:[%s18196_s5 + $0x1fb0] ss:$24 sps:$4 sm:$0xff]  }
 0x30e   : > { %8625 = vmatprep.subr.bf16.mxu0 %v12423_v21  ;;  %v12463_v20 = vld [vmem:[%s18196_s5 + $0x22b0] ss:$24 sps:$4 sm:$0xff]   ;;  %v12468_v21 = vld [vmem:[%s18196_s5 + $0x1f84] ss:$24 sps:$4 sm:$0xff]  }
 0x310   : > { %8585 = vmatpush1.bf16.msra.mxu1 %v12418_v22  ;;  %v12471_v22 = vld [vmem:[%s18196_s5 + $0x2284] ss:$24 sps:$4 sm:$0xff]  }
 0x311   : > { %8626 = vmatpush1.bf16.msra.mxu0 %v12421_v23  ;;  %8586 = vmatprep.subr.bf16.mxu1 %v12426_v24  ;;  %v12466_v23 = vld [vmem:[%s18196_s5 + $0x1f80] ss:$24 sps:$4 sm:$0xff]  }
 0x312   : > { %8627 = vmatprep.subr.bf16.mxu0 %v12429_v63  ;;  %v12469_v24 = vld [vmem:[%s18196_s5 + $0x2280] ss:$24 sps:$4 sm:$0xff]   ;;  %v893_v63 = vrot.slane %v14906_v45, %v14467_v18 }
 0x313   : > { %v12475_v45 = vld [vmem:[%s18196_s5 + $0x158] ss:$24 sps:$4 sm:$0xff]  }
 0x314   : > { %8587 = vmatpush2.bf16.msra.mxu1 %v12424_v25  ;;  %v12474_v25 = vld [vmem:[%s18196_s5 + $0x2554] ss:$24 sps:$4 sm:$0xff]  }
 0x315   : > { %8628 = vmatpush2.bf16.msra.mxu0 %v12427_v9  ;;  %8588 = vmatprep.subr.bf16.mxu1 %v12432_v26  ;;  %v12477_v9 = vld [vmem:[%s18196_s5 + $0x15c] ss:$24 sps:$4 sm:$0xff]   ;;  %v12472_v26 = vld [vmem:[%s18196_s5 + $0x2550] ss:$24 sps:$4 sm:$0xff]  }
 0x316   : > { %8629 = vmatprep.subr.bf16.mxu0 %v12435_v27  ;;  %v15345_v27 = vpack.c.bf16 %v893_v63, %v893_v63  ;;  %v12504_v63 = vld [vmem:[%s18196_s5 + $0x2464] ss:$24 sps:$4 sm:$0xff]  }
 0x318   : > { %8589 = vmatpush2.bf16.msra.mxu1 %v12430_v32  ;;  %v15352_v32 = vpack.c.bf16 %v14320_v13, %v14320_v13  ;;  %v12478_v13 = vld [vmem:[%s18196_s5 + $0x2520] ss:$24 sps:$4 sm:$0xff]  }
 0x319   : > { %8630 = vmatpush2.bf16.msra.mxu0 %v12433_v33  ;;  %8590 = vmatprep.subr.bf16.mxu1 %v12438_v34  ;;  %v12480_v33 = vld [vmem:[%s18196_s5 + $0x2524] ss:$24 sps:$4 sm:$0xff]  }
 0x31a   : > { %8631 = vmatprep.subr.bf16.mxu0 %v12441_v35  ;;  %v12483_v34 = vld [vmem:[%s18196_s5 + $0x12c] ss:$24 sps:$4 sm:$0xff]  }
 0x31c   : > { %8591 = vmatpush2.bf16.msra.mxu1 %v12436_v15 }
 0x31d   : > { %8632 = vmatpush2.bf16.msra.mxu0 %v12439_v36  ;;  %8592 = vmatprep.subr.bf16.mxu1 %v12444_v44 }
 0x31e   : > { %8633 = vmatprep.subr.bf16.mxu0 %v12447_v46  ;;  %v12481_v46 = vld [vmem:[%s18196_s5 + $0x128] ss:$24 sps:$4 sm:$0xff]  }
 0x320   : > { %8593 = vmatpush2.bf16.msra.mxu1 %v12442_v47 }
 0x321   : > { %8634 = vmatpush2.bf16.msra.mxu0 %v12445_v48  ;;  %8594 = vmatprep.subr.bf16.mxu1 %v12450_v50 }
 0x322   : > { %8635 = vmatprep.subr.bf16.mxu0 %v12453_v52  ;;  %v12489_v52 = vld [vmem:[%s18196_s5 + $0xfc] ss:$24 sps:$4 sm:$0xff]  }
 0x324   : > { %8595 = vmatpush2.bf16.msra.mxu1 %v12448_v53 }
 0x325   : > { %8636 = vmatpush2.bf16.msra.mxu0 %v12451_v59  ;;  %8596 = vmatprep.subr.bf16.mxu1 %v12456_v62 }
 0x326   : > { %8637 = vmatprep.subr.bf16.mxu0 %v12459_v2  ;;  %v12484_v2 = vld [vmem:[%s18196_s5 + $0x24f0] ss:$24 sps:$4 sm:$0xff]  }
 0x328   : > { %8597 = vmatpush2.bf16.msra.mxu1 %v12454_v3  ;;  %v12487_v3 = vld [vmem:[%s18196_s5 + $0xf8] ss:$24 sps:$4 sm:$0xff]  }
 0x329   : > { %8638 = vmatpush2.bf16.msra.mxu0 %v12457_v60  ;;  %8598 = vmatprep.subr.bf16.mxu1 %v12462_v16  ;;  %v12492_v60 = vld [vmem:[%s18196_s5 + $0x24c4] ss:$24 sps:$4 sm:$0xff]  }
 0x32a   : > { %8639 = vmatprep.subr.bf16.mxu0 %v12465_v17  ;;  %v12495_v17 = vld [vmem:[%s18196_s5 + $0xcc] ss:$24 sps:$4 sm:$0xff]  }
 0x32c   : > { %8599 = vmatpush2.bf16.msra.mxu1 %v12460_v4  ;;  %v12490_v4 = vld [vmem:[%s18196_s5 + $0x24c0] ss:$24 sps:$4 sm:$0xff]  }
 0x32d   : > { %8640 = vmatpush2.bf16.msra.mxu0 %v12463_v20  ;;  %8600 = vmatprep.subr.bf16.mxu1 %v12468_v21  ;;  %v12493_v20 = vld [vmem:[%s18196_s5 + $0xc8] ss:$24 sps:$4 sm:$0xff]   ;;  %v12498_v21 = vld [vmem:[%s18196_s5 + $0x2494] ss:$24 sps:$4 sm:$0xff]  }
 0x32e   : > { %8641 = vmatprep.subr.bf16.mxu0 %v12471_v22  ;;  %v12501_v22 = vld [vmem:[%s18196_s5 + $0x9c] ss:$24 sps:$4 sm:$0xff]  }
 0x330   : > { %8601 = vmatpush2.bf16.msra.mxu1 %v12466_v23  ;;  %v12496_v23 = vld [vmem:[%s18196_s5 + $0x2490] ss:$24 sps:$4 sm:$0xff]  }
 0x331   : > { %8642 = vmatpush2.bf16.msra.mxu0 %v12469_v24  ;;  %8652 = vmatprep.subr.bf16.mxu1 %v12474_v25  ;;  %v12499_v24 = vld [vmem:[%s18196_s5 + $0x98] ss:$24 sps:$4 sm:$0xff]   ;;  %v12507_v25 = vld [vmem:[%s18196_s5 + $0x6c] ss:$24 sps:$4 sm:$0xff]  }
 0x332   : > { %8693 = vmatprep.subr.bf16.mxu0 %v12477_v9  ;;  %v12502_v9 = vld [vmem:[%s18196_s5 + $0x2460] ss:$24 sps:$4 sm:$0xff]  }
 0x333   : > { %v8358_v35 = vpop.f32.mrf.mxu1  ;;  %8603 = vmatmul.mubr.bf16.vlgmr.msra.gmra.mxu1 %v15345_v27 }
 0x334   : > { %v8359_v15 = vadd.f32 %v8358_v35, %v15163_v42  ;;  %v8399_v36 = vpop.f32.mrf.mxu0  ;;  %8644 = vmatmul.mubr.bf16.vlgmr.msra.gmra.mxu0 %v15352_v32  ;;  %8653 = vmatpush1.bf16.msra.mxu1 %v12472_v26  ;;  %v12486_v42 = vld [vmem:[%s18196_s5 + $0x24f4] ss:$24 sps:$4 sm:$0xff]   ;;  %v12505_v26 = vld [vmem:[%s18196_s5 + $0x68] ss:$24 sps:$4 sm:$0xff]   ;;  %v12511_v35 = vld [vmem:[%s18196_s5 + $0x38] ss:$24 sps:$4 sm:$0xff]  }
 0x335   : > { %8694 = vmatpush1.bf16.msra.mxu0 %v12475_v45  ;;  %8725 = vmatprep.mubr.bf16.mxu0 %v14262_v55  ;;  %v8360_v44 = vpop.f32.mrf.mxu1  ;;  %v12510_v45 = vld [vmem:[%s18196_s5 + $0x2434] ss:$24 sps:$4 sm:$0xff]  }
 0x336   : > { %v15373_v47 = vadd.f32 %v8399_v36, %v8359_v15  ;;  %v8361_v48 = vadd.f32 %v8360_v44, %v15170_v54  ;;  %v8401_v50 = vpop.f32.mrf.mxu0  ;;  %8654 = vmatprep.subr.bf16.mxu1 %v12480_v33  ;;  %8695 = vmatprep.subr.bf16.mxu0 %v12483_v34  ;;  %v12513_v33 = vld [vmem:[%s18196_s5 + $0x3c] ss:$24 sps:$4 sm:$0xff]   ;;  %v12508_v34 = vld [vmem:[%s18196_s5 + $0x2430] ss:$24 sps:$4 sm:$0xff]   ;;  %v12519_v36 = vld [vmem:[%s18196_s5 + $0xc] ss:$24 sps:$4 sm:$0xff]  }
 0x337   : > { %v8362_v53 = vpop.f32.mrf.mxu1  ;;  %8684 = vmatprep.mubr.bf16.mxu1 %v13808_v10  ;;  %v12516_v15 = vld [vmem:[%s18196_s5 + $0x2404] ss:$24 sps:$4 sm:$0xff]   ;;  %v12517_v44 = vld [vmem:[%s18196_s5 + $0x8] ss:$24 sps:$4 sm:$0xff]  }
 0x338   : > { %v15380_v59 = vadd.f32 %v8401_v50, %v8361_v48  ;;  %v8403_v62 = vpop.f32.mrf.mxu0  ;;  %8655 = vmatpush1.bf16.msra.mxu1 %v12478_v13  ;;  %v12514_v13 = vld [vmem:[%s18196_s5 + $0x2400] ss:$24 sps:$4 sm:$0xff]   ;;  %v12522_v48 = vld [vmem:[%s18196_s5 + $0x2dc] ss:$24 sps:$4 sm:$0xff]  }
 0x339   : > { %8696 = vmatpush1.bf16.msra.mxu0 %v12481_v46  ;;  %v8363_v54 = vpop.f32.mrf.mxu1  ;;  %8656 = vmatprep.subr.bf16.mxu1 %v12486_v42  ;;  %v12525_v46 = vld [vmem:[%s18196_s5 + $0x45c] ss:$24 sps:$4 sm:$0xff]   ;;  %v10457_v42 = vld [vmem:[#allocation3 + $0x18] ss:$0 sm:$0xff]  ;;  %v12531_v62 = vld [vmem:[%s18196_s5 + $0x42c] ss:$24 sps:$4 sm:$0xff]  }
 0x33a   : > { %v8404_v16 = vpop.f32.mrf.mxu0  ;;  %8697 = vmatprep.subr.bf16.mxu0 %v12489_v52  ;;  %v12523_v50 = vld [vmem:[%s18196_s5 + $0x458] ss:$24 sps:$4 sm:$0xff]   ;;  %v15457_v52 = vpack.c.bf16 %v10457_v42, %v10457_v42  ;;  %v12529_v54 = vld [vmem:[%s18196_s5 + $0x428] ss:$24 sps:$4 sm:$0xff]  }
 0x33b   : > { %v12520_v53 = vld [vmem:[%s18196_s5 + $0x2d8] ss:$24 sps:$4 sm:$0xff]   ;;  %v12534_v16 = vld [vmem:[%s18196_s5 + $0x27c] ss:$24 sps:$4 sm:$0xff]   ;;  %v12565_v42 = vld [vmem:[%s18196_s5 + $0x308] ss:$24 sps:$4 sm:$0xff]  }
 0x33c   : > { %8657 = vmatpush1.bf16.msra.mxu1 %v12484_v2  ;;  %v12528_v2 = vld [vmem:[%s18196_s5 + $0x2ac] ss:$24 sps:$4 sm:$0xff]  }
 0x33d   : > { %8698 = vmatpush1.bf16.msra.mxu0 %v12487_v3  ;;  %8658 = vmatprep.subr.bf16.mxu1 %v12492_v60  ;;  %v12526_v3 = vld [vmem:[%s18196_s5 + $0x2a8] ss:$24 sps:$4 sm:$0xff]   ;;  %v12537_v60 = vld [vmem:[%s18196_s5 + $0x3fc] ss:$24 sps:$4 sm:$0xff]  }
 0x33e   : > { %8699 = vmatprep.subr.bf16.mxu0 %v12495_v17  ;;  %v12535_v17 = vld [vmem:[%s18196_s5 + $0x3f8] ss:$24 sps:$4 sm:$0xff]  }
 0x340   : > { %8659 = vmatpush1.bf16.msra.mxu1 %v12490_v4  ;;  %v12532_v4 = vld [vmem:[%s18196_s5 + $0x278] ss:$24 sps:$4 sm:$0xff]  }
 0x341   : > { %8700 = vmatpush1.bf16.msra.mxu0 %v12493_v20  ;;  %8660 = vmatprep.subr.bf16.mxu1 %v12498_v21  ;;  %v12543_v20 = vld [vmem:[%s18196_s5 + $0x3cc] ss:$24 sps:$4 sm:$0xff]  }
 0x342   : > { %8701 = vmatprep.subr.bf16.mxu0 %v12501_v22  ;;  %v12540_v21 = vld [vmem:[%s18196_s5 + $0x24c] ss:$24 sps:$4 sm:$0xff]   ;;  %v12541_v22 = vld [vmem:[%s18196_s5 + $0x3c8] ss:$24 sps:$4 sm:$0xff]  }
 0x344   : > { %8661 = vmatpush1.bf16.msra.mxu1 %v12496_v23  ;;  %v12538_v23 = vld [vmem:[%s18196_s5 + $0x248] ss:$24 sps:$4 sm:$0xff]  }
 0x345   : > { %8702 = vmatpush1.bf16.msra.mxu0 %v12499_v24  ;;  %8662 = vmatprep.subr.bf16.mxu1 %v12504_v63  ;;  %v12549_v24 = vld [vmem:[%s18196_s5 + $0x39c] ss:$24 sps:$4 sm:$0xff]  }
 0x346   : > { %8703 = vmatprep.subr.bf16.mxu0 %v12507_v25  ;;  %v12546_v63 = vld [vmem:[%s18196_s5 + $0x21c] ss:$24 sps:$4 sm:$0xff]   ;;  %v12547_v25 = vld [vmem:[%s18196_s5 + $0x398] ss:$24 sps:$4 sm:$0xff]  }
 0x348   : > { %8663 = vmatpush1.bf16.msra.mxu1 %v12502_v9  ;;  %v12544_v9 = vld [vmem:[%s18196_s5 + $0x218] ss:$24 sps:$4 sm:$0xff]  }
 0x349   : > { %8704 = vmatpush1.bf16.msra.mxu0 %v12505_v26  ;;  %8664 = vmatprep.subr.bf16.mxu1 %v12510_v45  ;;  %v12555_v26 = vld [vmem:[%s18196_s5 + $0x36c] ss:$24 sps:$4 sm:$0xff]  }
 0x34a   : > { %8705 = vmatprep.subr.bf16.mxu0 %v12513_v33  ;;  %v12552_v45 = vld [vmem:[%s18196_s5 + $0x1ec] ss:$24 sps:$4 sm:$0xff]   ;;  %v12553_v33 = vld [vmem:[%s18196_s5 + $0x368] ss:$24 sps:$4 sm:$0xff]  }
 0x34c   : > { %8665 = vmatpush1.bf16.msra.mxu1 %v12508_v34  ;;  %v12550_v34 = vld [vmem:[%s18196_s5 + $0x1e8] ss:$24 sps:$4 sm:$0xff]  }
 0x34d   : > { %8706 = vmatpush1.bf16.msra.mxu0 %v12511_v35  ;;  %8666 = vmatprep.subr.bf16.mxu1 %v12516_v15  ;;  %v12561_v35 = vld [vmem:[%s18196_s5 + $0x33c] ss:$24 sps:$4 sm:$0xff]  }
 0x34e   : > { %8707 = vmatprep.subr.bf16.mxu0 %v12519_v36  ;;  %v12558_v15 = vld [vmem:[%s18196_s5 + $0x1bc] ss:$24 sps:$4 sm:$0xff]   ;;  %v12559_v36 = vld [vmem:[%s18196_s5 + $0x338] ss:$24 sps:$4 sm:$0xff]  }
 0x350   : > { %8667 = vmatpush1.bf16.msra.mxu1 %v12514_v13  ;;  %v12556_v13 = vld [vmem:[%s18196_s5 + $0x1b8] ss:$24 sps:$4 sm:$0xff]  }
 0x351   : > { %8708 = vmatpush1.bf16.msra.mxu0 %v12517_v44  ;;  %8734 = vmatprep.subr.bf16.mxu1 %v12525_v46  ;;  %v12567_v44 = vld [vmem:[%s18196_s5 + $0x30c] ss:$24 sps:$4 sm:$0xff]  }
 0x352   : > { %8709 = vmatprep.subr.bf16.mxu0 %v12522_v48  ;;  %v12564_v46 = vld [vmem:[%s18196_s5 + $0x18c] ss:$24 sps:$4 sm:$0xff]   ;;  %v12562_v48 = vld [vmem:[%s18196_s5 + $0x188] ss:$24 sps:$4 sm:$0xff]  }
 0x353   : > { %8685 = vmatmul.mubr.bf16.vlgmr.msra.gmra.mxu1 %v15457_v52 }
 0x354   : > { %8735 = vmatpush1.bf16.msra.mxu1 %v12523_v50  ;;  %8766 = vmatprep.mubr.bf16.mxu1 %v14264_v56  ;;  %v12570_v50 = vld [vmem:[%s18196_s5 + $0x5dc] ss:$24 sps:$4 sm:$0xff]  }
 0x355   : > { %8710 = vmatpush2.bf16.msra.mxu0 %v12520_v53  ;;  %8736 = vmatprep.subr.bf16.mxu1 %v12531_v62  ;;  %v12573_v53 = vld [vmem:[%s18196_s5 + $0x75c] ss:$24 sps:$4 sm:$0xff]   ;;  %v12568_v62 = vld [vmem:[%s18196_s5 + $0x5d8] ss:$24 sps:$4 sm:$0xff]  }
 0x356   : > { %8711 = vmatprep.subr.bf16.mxu0 %v12528_v2  ;;  %v12571_v2 = vld [vmem:[%s18196_s5 + $0x758] ss:$24 sps:$4 sm:$0xff]  }
 0x358   : > { %8737 = vmatpush1.bf16.msra.mxu1 %v12529_v54  ;;  %v12576_v54 = vld [vmem:[%s18196_s5 + $0x5ac] ss:$24 sps:$4 sm:$0xff]  }
 0x359   : > { %8712 = vmatpush2.bf16.msra.mxu0 %v12526_v3  ;;  %8738 = vmatprep.subr.bf16.mxu1 %v12537_v60  ;;  %v12579_v3 = vld [vmem:[%s18196_s5 + $0x72c] ss:$24 sps:$4 sm:$0xff]  }
 0x35a   : > { %8713 = vmatprep.subr.bf16.mxu0 %v12534_v16 }
 0x35c   : > { %8739 = vmatpush1.bf16.msra.mxu1 %v12535_v17 }
 0x35d   : > { %8714 = vmatpush2.bf16.msra.mxu0 %v12532_v4  ;;  %8740 = vmatprep.subr.bf16.mxu1 %v12543_v20  ;;  %v12574_v4 = vld [vmem:[%s18196_s5 + $0x5a8] ss:$24 sps:$4 sm:$0xff]  }
 0x35e   : > { %8715 = vmatprep.subr.bf16.mxu0 %v12540_v21  ;;  %v12577_v21 = vld [vmem:[%s18196_s5 + $0x728] ss:$24 sps:$4 sm:$0xff]  }
 0x360   : > { %8741 = vmatpush1.bf16.msra.mxu1 %v12541_v22 }
 0x361   : > { %8716 = vmatpush2.bf16.msra.mxu0 %v12538_v23  ;;  %8742 = vmatprep.subr.bf16.mxu1 %v12549_v24 }
 0x362   : > { %8717 = vmatprep.subr.bf16.mxu0 %v12546_v63  ;;  %v12585_v63 = vld [vmem:[%s18196_s5 + $0x6fc] ss:$24 sps:$4 sm:$0xff]  }
 0x364   : > { %8743 = vmatpush1.bf16.msra.mxu1 %v12547_v25 }
 0x365   : > { %8718 = vmatpush2.bf16.msra.mxu0 %v12544_v9  ;;  %8744 = vmatprep.subr.bf16.mxu1 %v12555_v26 }
 0x366   : > { %8719 = vmatprep.subr.bf16.mxu0 %v12552_v45  ;;  %v12580_v45 = vld [vmem:[%s18196_s5 + $0x578] ss:$24 sps:$4 sm:$0xff]  }
 0x368   : > { %8745 = vmatpush1.bf16.msra.mxu1 %v12553_v33 }
 0x369   : > { %8720 = vmatpush2.bf16.msra.mxu0 %v12550_v34  ;;  %8746 = vmatprep.subr.bf16.mxu1 %v12561_v35  ;;  %v12588_v34 = vld [vmem:[%s18196_s5 + $0x54c] ss:$24 sps:$4 sm:$0xff]  }
 0x36a   : > { %8721 = vmatprep.subr.bf16.mxu0 %v12558_v15  ;;  %v12591_v15 = vld [vmem:[%s18196_s5 + $0x6cc] ss:$24 sps:$4 sm:$0xff]  }
 0x36c   : > { %8747 = vmatpush1.bf16.msra.mxu1 %v12559_v36  ;;  %v12586_v36 = vld [vmem:[%s18196_s5 + $0x548] ss:$24 sps:$4 sm:$0xff]  }
 0x36d   : > { %8722 = vmatpush2.bf16.msra.mxu0 %v12556_v13  ;;  %8748 = vmatprep.subr.bf16.mxu1 %v12567_v44  ;;  %v12589_v13 = vld [vmem:[%s18196_s5 + $0x6c8] ss:$24 sps:$4 sm:$0xff]   ;;  %v12594_v44 = vld [vmem:[%s18196_s5 + $0x51c] ss:$24 sps:$4 sm:$0xff]  }
 0x36e   : > { %8723 = vmatprep.subr.bf16.mxu0 %v12564_v46  ;;  %v12597_v46 = vld [vmem:[%s18196_s5 + $0x69c] ss:$24 sps:$4 sm:$0xff]  }
 0x370   : > { %8749 = vmatpush1.bf16.msra.mxu1 %v12565_v42  ;;  %v12592_v42 = vld [vmem:[%s18196_s5 + $0x518] ss:$24 sps:$4 sm:$0xff]  }
 0x371   : > { %8724 = vmatpush2.bf16.msra.mxu0 %v12562_v48  ;;  %8750 = vmatprep.subr.bf16.mxu1 %v12570_v50  ;;  %v12595_v48 = vld [vmem:[%s18196_s5 + $0x698] ss:$24 sps:$4 sm:$0xff]   ;;  %v12600_v50 = vld [vmem:[%s18196_s5 + $0x4ec] ss:$24 sps:$4 sm:$0xff]  }
 0x372   : > { %8775 = vmatprep.subr.bf16.mxu0 %v12573_v53  ;;  %v12603_v53 = vld [vmem:[%s18196_s5 + $0x66c] ss:$24 sps:$4 sm:$0xff]  }
 0x373   : > { %v8440_v60 = vpop.f32.mrf.mxu1 }
 0x374   : > { %v8441_v16 = vadd.f32 %v8440_v60, %v15373_v47  ;;  %v8481_v17 = vpop.f32.mrf.mxu0  ;;  %8726 = vmatmul.mubr.bf16.vlgmr.msra.gmra.mxu0 %v14266_v57  ;;  %8751 = vmatpush2.bf16.msra.mxu1 %v12568_v62  ;;  %v12582_v47 = vld [vmem:[%s18196_s5 + $0x57c] ss:$24 sps:$4 sm:$0xff]   ;;  %v12598_v62 = vld [vmem:[%s18196_s5 + $0x4e8] ss:$24 sps:$4 sm:$0xff]   ;;  %v12604_v60 = vld [vmem:[%s18196_s5 + $0x4b8] ss:$24 sps:$4 sm:$0xff]  }
 0x375   : > { %8776 = vmatpush1.bf16.msra.mxu0 %v12571_v2  ;;  %8807 = vmatprep.mubr.bf16.mxu0 %v14288_v0  ;;  %v8442_v20 = vpop.f32.mrf.mxu1  ;;  %v12601_v2 = vld [vmem:[%s18196_s5 + $0x668] ss:$24 sps:$4 sm:$0xff]  }
 0x376   : > { %v15578_v22 = vadd.f32 %v8481_v17, %v8441_v16  ;;  %v8443_v23 = vadd.f32 %v8442_v20, %v15380_v59  ;;  %v8483_v24 = vpop.f32.mrf.mxu0  ;;  %8752 = vmatprep.subr.bf16.mxu1 %v12576_v54  ;;  %8777 = vmatprep.subr.bf16.mxu0 %v12579_v3  ;;  %v12583_v59 = vld [vmem:[%s18196_s5 + $0x6f8] ss:$24 sps:$4 sm:$0xff]   ;;  %v12606_v54 = vld [vmem:[%s18196_s5 + $0x4bc] ss:$24 sps:$4 sm:$0xff]   ;;  %v12612_v17 = vld [vmem:[%s18196_s5 + $0x48c] ss:$24 sps:$4 sm:$0xff]  }
 0x377   : > { %v8444_v25 = vpop.f32.mrf.mxu1  ;;  %v12609_v3 = vld [vmem:[%s18196_s5 + $0x63c] ss:$24 sps:$4 sm:$0xff]   ;;  %v12607_v16 = vld [vmem:[%s18196_s5 + $0x638] ss:$24 sps:$4 sm:$0xff]   ;;  %v12610_v20 = vld [vmem:[%s18196_s5 + $0x488] ss:$24 sps:$4 sm:$0xff]  }
 0x378   : > { %v15584_v9 = vadd.f32 %v8483_v24, %v8443_v23  ;;  %v8485_v26 = vpop.f32.mrf.mxu0  ;;  %8753 = vmatpush2.bf16.msra.mxu1 %v12574_v4  ;;  %v12615_v4 = vld [vmem:[%s18196_s5 + $0x60c] ss:$24 sps:$4 sm:$0xff]   ;;  %v12618_v23 = vld [vmem:[%s18196_s5 + $0x8dc] ss:$24 sps:$4 sm:$0xff]   ;;  %v12619_v24 = vld [vmem:[%s18196_s5 + $0xa58] ss:$24 sps:$4 sm:$0xff]  }
 0x379   : > { %8778 = vmatpush1.bf16.msra.mxu0 %v12577_v21  ;;  %v8445_v33 = vpop.f32.mrf.mxu1  ;;  %8754 = vmatprep.subr.bf16.mxu1 %v12582_v47  ;;  %v12613_v21 = vld [vmem:[%s18196_s5 + $0x608] ss:$24 sps:$4 sm:$0xff]   ;;  %v12621_v47 = vld [vmem:[%s18196_s5 + $0xa5c] ss:$24 sps:$4 sm:$0xff]   ;;  %v12627_v25 = vld [vmem:[%s18196_s5 + $0xa2c] ss:$24 sps:$4 sm:$0xff]  }
 0x37a   : > { %v8486_v35 = vpop.f32.mrf.mxu0  ;;  %8779 = vmatprep.subr.bf16.mxu0 %v12585_v63  ;;  %v12616_v63 = vld [vmem:[%s18196_s5 + $0x8d8] ss:$24 sps:$4 sm:$0xff]   ;;  %v12624_v26 = vld [vmem:[%s18196_s5 + $0x8ac] ss:$24 sps:$4 sm:$0xff]   ;;  %v12622_v33 = vld [vmem:[%s18196_s5 + $0x8a8] ss:$24 sps:$4 sm:$0xff]  }
 0x37b   : > { %v12631_v35 = vld [vmem:[%s18196_s5 + $0x9f8] ss:$24 sps:$4 sm:$0xff]  }
 0x37c   : > { %8755 = vmatpush2.bf16.msra.mxu1 %v12580_v45  ;;  %v12625_v45 = vld [vmem:[%s18196_s5 + $0xa28] ss:$24 sps:$4 sm:$0xff]  }
 0x37d   : > { %8780 = vmatpush1.bf16.msra.mxu0 %v12583_v59  ;;  %8756 = vmatprep.subr.bf16.mxu1 %v12588_v34  ;;  %v12633_v59 = vld [vmem:[%s18196_s5 + $0x9fc] ss:$24 sps:$4 sm:$0xff]  }
 0x37e   : > { %8781 = vmatprep.subr.bf16.mxu0 %v12591_v15  ;;  %v12630_v34 = vld [vmem:[%s18196_s5 + $0x87c] ss:$24 sps:$4 sm:$0xff]   ;;  %v12628_v15 = vld [vmem:[%s18196_s5 + $0x878] ss:$24 sps:$4 sm:$0xff]  }
 0x380   : > { %8757 = vmatpush2.bf16.msra.mxu1 %v12586_v36  ;;  %v12639_v36 = vld [vmem:[%s18196_s5 + $0x9cc] ss:$24 sps:$4 sm:$0xff]  }
 0x381   : > { %8782 = vmatpush1.bf16.msra.mxu0 %v12589_v13  ;;  %8758 = vmatprep.subr.bf16.mxu1 %v12594_v44  ;;  %v12636_v13 = vld [vmem:[%s18196_s5 + $0x84c] ss:$24 sps:$4 sm:$0xff]   ;;  %v12637_v44 = vld [vmem:[%s18196_s5 + $0x9c8] ss:$24 sps:$4 sm:$0xff]  }
 0x382   : > { %8783 = vmatprep.subr.bf16.mxu0 %v12597_v46  ;;  %v12634_v46 = vld [vmem:[%s18196_s5 + $0x848] ss:$24 sps:$4 sm:$0xff]  }
 0x384   : > { %8759 = vmatpush2.bf16.msra.mxu1 %v12592_v42  ;;  %v12645_v42 = vld [vmem:[%s18196_s5 + $0x99c] ss:$24 sps:$4 sm:$0xff]  }
 0x385   : > { %8784 = vmatpush1.bf16.msra.mxu0 %v12595_v48  ;;  %8760 = vmatprep.subr.bf16.mxu1 %v12600_v50  ;;  %v12642_v48 = vld [vmem:[%s18196_s5 + $0x81c] ss:$24 sps:$4 sm:$0xff]   ;;  %v12643_v50 = vld [vmem:[%s18196_s5 + $0x998] ss:$24 sps:$4 sm:$0xff]  }
 0x386   : > { %8785 = vmatprep.subr.bf16.mxu0 %v12603_v53  ;;  %v12640_v53 = vld [vmem:[%s18196_s5 + $0x818] ss:$24 sps:$4 sm:$0xff]  }
 0x388   : > { %8761 = vmatpush2.bf16.msra.mxu1 %v12598_v62  ;;  %v12651_v62 = vld [vmem:[%s18196_s5 + $0x96c] ss:$24 sps:$4 sm:$0xff]  }
 0x389   : > { %8786 = vmatpush1.bf16.msra.mxu0 %v12601_v2  ;;  %8762 = vmatprep.subr.bf16.mxu1 %v12606_v54  ;;  %v12648_v2 = vld [vmem:[%s18196_s5 + $0x7ec] ss:$24 sps:$4 sm:$0xff]   ;;  %v12649_v54 = vld [vmem:[%s18196_s5 + $0x968] ss:$24 sps:$4 sm:$0xff]  }
 0x38a   : > { %8787 = vmatprep.subr.bf16.mxu0 %v12609_v3  ;;  %v12646_v3 = vld [vmem:[%s18196_s5 + $0x7e8] ss:$24 sps:$4 sm:$0xff]  }
 0x38c   : > { %8763 = vmatpush2.bf16.msra.mxu1 %v12604_v60  ;;  %v12657_v60 = vld [vmem:[%s18196_s5 + $0x93c] ss:$24 sps:$4 sm:$0xff]  }
 0x38d   : > { %8788 = vmatpush1.bf16.msra.mxu0 %v12607_v16  ;;  %8764 = vmatprep.subr.bf16.mxu1 %v12612_v17  ;;  %v12654_v16 = vld [vmem:[%s18196_s5 + $0x7bc] ss:$24 sps:$4 sm:$0xff]   ;;  %v12655_v17 = vld [vmem:[%s18196_s5 + $0x938] ss:$24 sps:$4 sm:$0xff]  }
 0x38e   : > { %8789 = vmatprep.subr.bf16.mxu0 %v12615_v4  ;;  %v12652_v4 = vld [vmem:[%s18196_s5 + $0x7b8] ss:$24 sps:$4 sm:$0xff]  }
 0x390   : > { %8765 = vmatpush2.bf16.msra.mxu1 %v12610_v20  ;;  %v12663_v20 = vld [vmem:[%s18196_s5 + $0x90c] ss:$24 sps:$4 sm:$0xff]  }
 0x391   : > { %8790 = vmatpush1.bf16.msra.mxu0 %v12613_v21  ;;  %8816 = vmatprep.subr.bf16.mxu1 %v12621_v47  ;;  %v12660_v21 = vld [vmem:[%s18196_s5 + $0x78c] ss:$24 sps:$4 sm:$0xff]   ;;  %v12661_v47 = vld [vmem:[%s18196_s5 + $0x908] ss:$24 sps:$4 sm:$0xff]  }
 0x392   : > { %8791 = vmatprep.subr.bf16.mxu0 %v12618_v23  ;;  %v12658_v23 = vld [vmem:[%s18196_s5 + $0x788] ss:$24 sps:$4 sm:$0xff]  }
 0x393   : > { %8767 = vmatmul.mubr.bf16.vlgmr.msra.gmra.mxu1 %v14268_v58 }
 0x394   : > { %8817 = vmatpush1.bf16.msra.mxu1 %v12619_v24  ;;  %8848 = vmatprep.mubr.bf16.mxu1 %v14290_v1  ;;  %v12666_v24 = vld [vmem:[%s18196_s5 + $0xbdc] ss:$24 sps:$4 sm:$0xff]  }
 0x395   : > { %8792 = vmatpush2.bf16.msra.mxu0 %v12616_v63  ;;  %8818 = vmatprep.subr.bf16.mxu1 %v12627_v25  ;;  %v12669_v63 = vld [vmem:[%s18196_s5 + $0xd5c] ss:$24 sps:$4 sm:$0xff]   ;;  %v12664_v25 = vld [vmem:[%s18196_s5 + $0xbd8] ss:$24 sps:$4 sm:$0xff]  }
 0x396   : > { %8793 = vmatprep.subr.bf16.mxu0 %v12624_v26  ;;  %v12667_v26 = vld [vmem:[%s18196_s5 + $0xd58] ss:$24 sps:$4 sm:$0xff]  }
 0x398   : > { %8819 = vmatpush1.bf16.msra.mxu1 %v12625_v45  ;;  %v12672_v45 = vld [vmem:[%s18196_s5 + $0xbac] ss:$24 sps:$4 sm:$0xff]  }
 0x399   : > { %8794 = vmatpush2.bf16.msra.mxu0 %v12622_v33  ;;  %8820 = vmatprep.subr.bf16.mxu1 %v12633_v59  ;;  %v12675_v33 = vld [vmem:[%s18196_s5 + $0xd2c] ss:$24 sps:$4 sm:$0xff]  }
 0x39a   : > { %8795 = vmatprep.subr.bf16.mxu0 %v12630_v34 }
 0x39c   : > { %8821 = vmatpush1.bf16.msra.mxu1 %v12631_v35 }
 0x39d   : > { %8796 = vmatpush2.bf16.msra.mxu0 %v12628_v15  ;;  %8822 = vmatprep.subr.bf16.mxu1 %v12639_v36  ;;  %v12670_v15 = vld [vmem:[%s18196_s5 + $0xba8] ss:$24 sps:$4 sm:$0xff]  }
 0x39e   : > { %8797 = vmatprep.subr.bf16.mxu0 %v12636_v13  ;;  %v12673_v13 = vld [vmem:[%s18196_s5 + $0xd28] ss:$24 sps:$4 sm:$0xff]  }
 0x3a0   : > { %8823 = vmatpush1.bf16.msra.mxu1 %v12637_v44 }
 0x3a1   : > { %8798 = vmatpush2.bf16.msra.mxu0 %v12634_v46  ;;  %8824 = vmatprep.subr.bf16.mxu1 %v12645_v42 }
 0x3a2   : > { %8799 = vmatprep.subr.bf16.mxu0 %v12642_v48  ;;  %v12681_v48 = vld [vmem:[%s18196_s5 + $0xcfc] ss:$24 sps:$4 sm:$0xff]  }
 0x3a4   : > { %8825 = vmatpush1.bf16.msra.mxu1 %v12643_v50 }
 0x3a5   : > { %8800 = vmatpush2.bf16.msra.mxu0 %v12640_v53  ;;  %8826 = vmatprep.subr.bf16.mxu1 %v12651_v62 }
 0x3a6   : > { %8801 = vmatprep.subr.bf16.mxu0 %v12648_v2  ;;  %v12676_v2 = vld [vmem:[%s18196_s5 + $0xb78] ss:$24 sps:$4 sm:$0xff]  }
 0x3a8   : > { %8827 = vmatpush1.bf16.msra.mxu1 %v12649_v54 }
 0x3a9   : > { %8802 = vmatpush2.bf16.msra.mxu0 %v12646_v3  ;;  %8828 = vmatprep.subr.bf16.mxu1 %v12657_v60  ;;  %v12684_v3 = vld [vmem:[%s18196_s5 + $0xb4c] ss:$24 sps:$4 sm:$0xff]  }
 0x3aa   : > { %8803 = vmatprep.subr.bf16.mxu0 %v12654_v16  ;;  %v12687_v16 = vld [vmem:[%s18196_s5 + $0xccc] ss:$24 sps:$4 sm:$0xff]  }
 0x3ac   : > { %8829 = vmatpush1.bf16.msra.mxu1 %v12655_v17  ;;  %v12682_v17 = vld [vmem:[%s18196_s5 + $0xb48] ss:$24 sps:$4 sm:$0xff]  }
 0x3ad   : > { %8804 = vmatpush2.bf16.msra.mxu0 %v12652_v4  ;;  %8830 = vmatprep.subr.bf16.mxu1 %v12663_v20  ;;  %v12685_v4 = vld [vmem:[%s18196_s5 + $0xcc8] ss:$24 sps:$4 sm:$0xff]   ;;  %v12690_v20 = vld [vmem:[%s18196_s5 + $0xb1c] ss:$24 sps:$4 sm:$0xff]  }
 0x3ae   : > { %8805 = vmatprep.subr.bf16.mxu0 %v12660_v21  ;;  %v12693_v21 = vld [vmem:[%s18196_s5 + $0xc9c] ss:$24 sps:$4 sm:$0xff]  }
 0x3b0   : > { %8831 = vmatpush1.bf16.msra.mxu1 %v12661_v47  ;;  %v12688_v47 = vld [vmem:[%s18196_s5 + $0xb18] ss:$24 sps:$4 sm:$0xff]  }
 0x3b1   : > { %8806 = vmatpush2.bf16.msra.mxu0 %v12658_v23  ;;  %8832 = vmatprep.subr.bf16.mxu1 %v12666_v24  ;;  %v12691_v23 = vld [vmem:[%s18196_s5 + $0xc98] ss:$24 sps:$4 sm:$0xff]   ;;  %v12696_v24 = vld [vmem:[%s18196_s5 + $0xaec] ss:$24 sps:$4 sm:$0xff]  }
 0x3b2   : > { %8857 = vmatprep.subr.bf16.mxu0 %v12669_v63  ;;  %v12699_v63 = vld [vmem:[%s18196_s5 + $0xc6c] ss:$24 sps:$4 sm:$0xff]  }
 0x3b3   : > { %v8522_v59 = vpop.f32.mrf.mxu1 }
 0x3b4   : > { %v8523_v34 = vadd.f32 %v8522_v59, %v15578_v22  ;;  %v8563_v35 = vpop.f32.mrf.mxu0  ;;  %8808 = vmatmul.mubr.bf16.vlgmr.msra.gmra.mxu0 %v14499_v28  ;;  %8833 = vmatpush2.bf16.msra.mxu1 %v12664_v25  ;;  %v12678_v22 = vld [vmem:[%s18196_s5 + $0xb7c] ss:$24 sps:$4 sm:$0xff]   ;;  %v12694_v25 = vld [vmem:[%s18196_s5 + $0xae8] ss:$24 sps:$4 sm:$0xff]   ;;  %v12700_v59 = vld [vmem:[%s18196_s5 + $0xab8] ss:$24 sps:$4 sm:$0xff]  }
 0x3b5   : > { %8858 = vmatpush1.bf16.msra.mxu0 %v12667_v26  ;;  %8889 = vmatprep.mubr.bf16.mxu0 %v14505_v30  ;;  %v8524_v36 = vpop.f32.mrf.mxu1  ;;  %v12697_v26 = vld [vmem:[%s18196_s5 + $0xc68] ss:$24 sps:$4 sm:$0xff]  }
 0x3b6   : > { %v15780_v44 = vadd.f32 %v8563_v35, %v8523_v34  ;;  %v8525_v46 = vadd.f32 %v8524_v36, %v15584_v9  ;;  %v8565_v42 = vpop.f32.mrf.mxu0  ;;  %8834 = vmatprep.subr.bf16.mxu1 %v12672_v45  ;;  %8859 = vmatprep.subr.bf16.mxu0 %v12675_v33  ;;  %v12679_v9 = vld [vmem:[%s18196_s5 + $0xcf8] ss:$24 sps:$4 sm:$0xff]   ;;  %v12702_v45 = vld [vmem:[%s18196_s5 + $0xabc] ss:$24 sps:$4 sm:$0xff]   ;;  %v12708_v35 = vld [vmem:[%s18196_s5 + $0xa8c] ss:$24 sps:$4 sm:$0xff]  }
 0x3b7   : > { %v8526_v50 = vpop.f32.mrf.mxu1  ;;  %v12705_v33 = vld [vmem:[%s18196_s5 + $0xc3c] ss:$24 sps:$4 sm:$0xff]   ;;  %v12703_v34 = vld [vmem:[%s18196_s5 + $0xc38] ss:$24 sps:$4 sm:$0xff]   ;;  %v12706_v36 = vld [vmem:[%s18196_s5 + $0xa88] ss:$24 sps:$4 sm:$0xff]  }
 0x3b8   : > { %v15786_v53 = vadd.f32 %v8565_v42, %v8525_v46  ;;  %v8567_v62 = vpop.f32.mrf.mxu0  ;;  %8835 = vmatpush2.bf16.msra.mxu1 %v12670_v15  ;;  %v12711_v15 = vld [vmem:[%s18196_s5 + $0xc0c] ss:$24 sps:$4 sm:$0xff]   ;;  %v12714_v46 = vld [vmem:[%s18196_s5 + $0xedc] ss:$24 sps:$4 sm:$0xff]   ;;  %v12715_v42 = vld [vmem:[%s18196_s5 + $0x1058] ss:$24 sps:$4 sm:$0xff]  }
 0x3b9   : > { %8860 = vmatpush1.bf16.msra.mxu0 %v12673_v13  ;;  %v8527_v54 = vpop.f32.mrf.mxu1  ;;  %8836 = vmatprep.subr.bf16.mxu1 %v12678_v22  ;;  %v12709_v13 = vld [vmem:[%s18196_s5 + $0xc08] ss:$24 sps:$4 sm:$0xff]   ;;  %v12717_v22 = vld [vmem:[%s18196_s5 + $0x105c] ss:$24 sps:$4 sm:$0xff]   ;;  %v12723_v50 = vld [vmem:[%s18196_s5 + $0x102c] ss:$24 sps:$4 sm:$0xff]  }
 0x3ba   : > { %v8568_v60 = vpop.f32.mrf.mxu0  ;;  %8861 = vmatprep.subr.bf16.mxu0 %v12681_v48  ;;  %v12712_v48 = vld [vmem:[%s18196_s5 + $0xed8] ss:$24 sps:$4 sm:$0xff]   ;;  %v12720_v62 = vld [vmem:[%s18196_s5 + $0xeac] ss:$24 sps:$4 sm:$0xff]   ;;  %v12718_v54 = vld [vmem:[%s18196_s5 + $0xea8] ss:$24 sps:$4 sm:$0xff]  }
 0x3bb   : > { %v12727_v60 = vld [vmem:[%s18196_s5 + $0xff8] ss:$24 sps:$4 sm:$0xff]  }
 0x3bc   : > { %8837 = vmatpush2.bf16.msra.mxu1 %v12676_v2  ;;  %v12721_v2 = vld [vmem:[%s18196_s5 + $0x1028] ss:$24 sps:$4 sm:$0xff]  }
 0x3bd   : > { %8862 = vmatpush1.bf16.msra.mxu0 %v12679_v9  ;;  %8838 = vmatprep.subr.bf16.mxu1 %v12684_v3  ;;  %v12729_v9 = vld [vmem:[%s18196_s5 + $0xffc] ss:$24 sps:$4 sm:$0xff]  }
 0x3be   : > { %8863 = vmatprep.subr.bf16.mxu0 %v12687_v16  ;;  %v12726_v3 = vld [vmem:[%s18196_s5 + $0xe7c] ss:$24 sps:$4 sm:$0xff]   ;;  %v12724_v16 = vld [vmem:[%s18196_s5 + $0xe78] ss:$24 sps:$4 sm:$0xff]  }
 0x3c0   : > { %8839 = vmatpush2.bf16.msra.mxu1 %v12682_v17  ;;  %v12735_v17 = vld [vmem:[%s18196_s5 + $0xfcc] ss:$24 sps:$4 sm:$0xff]  }
 0x3c1   : > { %8864 = vmatpush1.bf16.msra.mxu0 %v12685_v4  ;;  %8840 = vmatprep.subr.bf16.mxu1 %v12690_v20  ;;  %v12732_v4 = vld [vmem:[%s18196_s5 + $0xe4c] ss:$24 sps:$4 sm:$0xff]   ;;  %v12733_v20 = vld [vmem:[%s18196_s5 + $0xfc8] ss:$24 sps:$4 sm:$0xff]  }
 0x3c2   : > { %8865 = vmatprep.subr.bf16.mxu0 %v12693_v21  ;;  %v12730_v21 = vld [vmem:[%s18196_s5 + $0xe48] ss:$24 sps:$4 sm:$0xff]  }
 0x3c4   : > { %8841 = vmatpush2.bf16.msra.mxu1 %v12688_v47  ;;  %v12741_v47 = vld [vmem:[%s18196_s5 + $0xf9c] ss:$24 sps:$4 sm:$0xff]  }
 0x3c5   : > { %8866 = vmatpush1.bf16.msra.mxu0 %v12691_v23  ;;  %8842 = vmatprep.subr.bf16.mxu1 %v12696_v24  ;;  %v12738_v23 = vld [vmem:[%s18196_s5 + $0xe1c] ss:$24 sps:$4 sm:$0xff]   ;;  %v12739_v24 = vld [vmem:[%s18196_s5 + $0xf98] ss:$24 sps:$4 sm:$0xff]  }
 0x3c6   : > { %8867 = vmatprep.subr.bf16.mxu0 %v12699_v63  ;;  %v12736_v63 = vld [vmem:[%s18196_s5 + $0xe18] ss:$24 sps:$4 sm:$0xff]  }
 0x3c8   : > { %8843 = vmatpush2.bf16.msra.mxu1 %v12694_v25  ;;  %v12747_v25 = vld [vmem:[%s18196_s5 + $0xf6c] ss:$24 sps:$4 sm:$0xff]  }
 0x3c9   : > { %8868 = vmatpush1.bf16.msra.mxu0 %v12697_v26  ;;  %8844 = vmatprep.subr.bf16.mxu1 %v12702_v45  ;;  %v12744_v26 = vld [vmem:[%s18196_s5 + $0xdec] ss:$24 sps:$4 sm:$0xff]   ;;  %v12745_v45 = vld [vmem:[%s18196_s5 + $0xf68] ss:$24 sps:$4 sm:$0xff]  }
 0x3ca   : > { %8869 = vmatprep.subr.bf16.mxu0 %v12705_v33  ;;  %v12742_v33 = vld [vmem:[%s18196_s5 + $0xde8] ss:$24 sps:$4 sm:$0xff]  }
 0x3cc   : > { %8845 = vmatpush2.bf16.msra.mxu1 %v12700_v59  ;;  %v12753_v59 = vld [vmem:[%s18196_s5 + $0xf3c] ss:$24 sps:$4 sm:$0xff]  }
 0x3cd   : > { %8870 = vmatpush1.bf16.msra.mxu0 %v12703_v34  ;;  %8846 = vmatprep.subr.bf16.mxu1 %v12708_v35  ;;  %v12750_v34 = vld [vmem:[%s18196_s5 + $0xdbc] ss:$24 sps:$4 sm:$0xff]   ;;  %v12751_v35 = vld [vmem:[%s18196_s5 + $0xf38] ss:$24 sps:$4 sm:$0xff]  }
 0x3ce   : > { %8871 = vmatprep.subr.bf16.mxu0 %v12711_v15  ;;  %v12748_v15 = vld [vmem:[%s18196_s5 + $0xdb8] ss:$24 sps:$4 sm:$0xff]  }
 0x3d0   : > { %8847 = vmatpush2.bf16.msra.mxu1 %v12706_v36  ;;  %v12759_v36 = vld [vmem:[%s18196_s5 + $0xf0c] ss:$24 sps:$4 sm:$0xff]  }
 0x3d1   : > { %8872 = vmatpush1.bf16.msra.mxu0 %v12709_v13  ;;  %8898 = vmatprep.subr.bf16.mxu1 %v12717_v22  ;;  %v12756_v13 = vld [vmem:[%s18196_s5 + $0xd8c] ss:$24 sps:$4 sm:$0xff]   ;;  %v12757_v22 = vld [vmem:[%s18196_s5 + $0xf08] ss:$24 sps:$4 sm:$0xff]  }
 0x3d2   : > { %8873 = vmatprep.subr.bf16.mxu0 %v12714_v46  ;;  %v12754_v46 = vld [vmem:[%s18196_s5 + $0xd88] ss:$24 sps:$4 sm:$0xff]  }
 0x3d3   : > { %8849 = vmatmul.mubr.bf16.vlgmr.msra.gmra.mxu1 %v14503_v29 }
 0x3d4   : > { %8899 = vmatpush1.bf16.msra.mxu1 %v12715_v42  ;;  %8930 = vmatprep.mubr.bf16.mxu1 %v14509_v31  ;;  %v12762_v42 = vld [vmem:[%s18196_s5 + $0x11dc] ss:$24 sps:$4 sm:$0xff]  }
 0x3d5   : > { %8874 = vmatpush2.bf16.msra.mxu0 %v12712_v48  ;;  %8900 = vmatprep.subr.bf16.mxu1 %v12723_v50  ;;  %v12765_v48 = vld [vmem:[%s18196_s5 + $0x135c] ss:$24 sps:$4 sm:$0xff]   ;;  %v12760_v50 = vld [vmem:[%s18196_s5 + $0x11d8] ss:$24 sps:$4 sm:$0xff]  }
 0x3d6   : > { %8875 = vmatprep.subr.bf16.mxu0 %v12720_v62  ;;  %v12763_v62 = vld [vmem:[%s18196_s5 + $0x1358] ss:$24 sps:$4 sm:$0xff]  }
 0x3d8   : > { %8901 = vmatpush1.bf16.msra.mxu1 %v12721_v2  ;;  %v12768_v2 = vld [vmem:[%s18196_s5 + $0x11ac] ss:$24 sps:$4 sm:$0xff]  }
 0x3d9   : > { %8876 = vmatpush2.bf16.msra.mxu0 %v12718_v54  ;;  %8902 = vmatprep.subr.bf16.mxu1 %v12729_v9  ;;  %v12771_v54 = vld [vmem:[%s18196_s5 + $0x132c] ss:$24 sps:$4 sm:$0xff]  }
 0x3da   : > { %8877 = vmatprep.subr.bf16.mxu0 %v12726_v3 }
 0x3dc   : > { %8903 = vmatpush1.bf16.msra.mxu1 %v12727_v60 }
 0x3dd   : > { %8878 = vmatpush2.bf16.msra.mxu0 %v12724_v16  ;;  %8904 = vmatprep.subr.bf16.mxu1 %v12735_v17  ;;  %v12766_v16 = vld [vmem:[%s18196_s5 + $0x11a8] ss:$24 sps:$4 sm:$0xff]  }
 0x3de   : > { %8879 = vmatprep.subr.bf16.mxu0 %v12732_v4  ;;  %v12769_v4 = vld [vmem:[%s18196_s5 + $0x1328] ss:$24 sps:$4 sm:$0xff]  }
 0x3e0   : > { %8905 = vmatpush1.bf16.msra.mxu1 %v12733_v20 }
 0x3e1   : > { %8880 = vmatpush2.bf16.msra.mxu0 %v12730_v21  ;;  %8906 = vmatprep.subr.bf16.mxu1 %v12741_v47 }
 0x3e2   : > { %8881 = vmatprep.subr.bf16.mxu0 %v12738_v23  ;;  %v12777_v23 = vld [vmem:[%s18196_s5 + $0x12fc] ss:$24 sps:$4 sm:$0xff]  }
 0x3e4   : > { %8907 = vmatpush1.bf16.msra.mxu1 %v12739_v24 }
 0x3e5   : > { %8882 = vmatpush2.bf16.msra.mxu0 %v12736_v63  ;;  %8908 = vmatprep.subr.bf16.mxu1 %v12747_v25 }
 0x3e6   : > { %8883 = vmatprep.subr.bf16.mxu0 %v12744_v26  ;;  %v12772_v26 = vld [vmem:[%s18196_s5 + $0x1178] ss:$24 sps:$4 sm:$0xff]  }
 0x3e8   : > { %8909 = vmatpush1.bf16.msra.mxu1 %v12745_v45 }
 0x3e9   : > { %8884 = vmatpush2.bf16.msra.mxu0 %v12742_v33  ;;  %8910 = vmatprep.subr.bf16.mxu1 %v12753_v59  ;;  %v12780_v33 = vld [vmem:[%s18196_s5 + $0x114c] ss:$24 sps:$4 sm:$0xff]  }
 0x3ea   : > { %8885 = vmatprep.subr.bf16.mxu0 %v12750_v34  ;;  %v12783_v34 = vld [vmem:[%s18196_s5 + $0x12cc] ss:$24 sps:$4 sm:$0xff]  }
 0x3ec   : > { %8911 = vmatpush1.bf16.msra.mxu1 %v12751_v35  ;;  %v12778_v35 = vld [vmem:[%s18196_s5 + $0x1148] ss:$24 sps:$4 sm:$0xff]  }
 0x3ed   : > { %8886 = vmatpush2.bf16.msra.mxu0 %v12748_v15  ;;  %8912 = vmatprep.subr.bf16.mxu1 %v12759_v36  ;;  %v12781_v15 = vld [vmem:[%s18196_s5 + $0x12c8] ss:$24 sps:$4 sm:$0xff]   ;;  %v12786_v36 = vld [vmem:[%s18196_s5 + $0x111c] ss:$24 sps:$4 sm:$0xff]  }
 0x3ee   : > { %8887 = vmatprep.subr.bf16.mxu0 %v12756_v13  ;;  %v12789_v13 = vld [vmem:[%s18196_s5 + $0x129c] ss:$24 sps:$4 sm:$0xff]  }
 0x3f0   : > { %8913 = vmatpush1.bf16.msra.mxu1 %v12757_v22  ;;  %v12784_v22 = vld [vmem:[%s18196_s5 + $0x1118] ss:$24 sps:$4 sm:$0xff]  }
 0x3f1   : > { %8888 = vmatpush2.bf16.msra.mxu0 %v12754_v46  ;;  %8914 = vmatprep.subr.bf16.mxu1 %v12762_v42  ;;  %v12787_v46 = vld [vmem:[%s18196_s5 + $0x1298] ss:$24 sps:$4 sm:$0xff]   ;;  %v12792_v42 = vld [vmem:[%s18196_s5 + $0x10ec] ss:$24 sps:$4 sm:$0xff]  }
 0x3f2   : > { %8939 = vmatprep.subr.bf16.mxu0 %v12765_v48  ;;  %v12795_v48 = vld [vmem:[%s18196_s5 + $0x126c] ss:$24 sps:$4 sm:$0xff]  }
 0x3f3   : > { %v8604_v9 = vpop.f32.mrf.mxu1 }
 0x3f4   : > { %v8605_v3 = vadd.f32 %v8604_v9, %v15780_v44  ;;  %v8645_v60 = vpop.f32.mrf.mxu0  ;;  %8890 = vmatmul.mubr.bf16.vlgmr.msra.gmra.mxu0 %v14702_v5  ;;  %8915 = vmatpush2.bf16.msra.mxu1 %v12760_v50  ;;  %v12774_v44 = vld [vmem:[%s18196_s5 + $0x117c] ss:$24 sps:$4 sm:$0xff]   ;;  %v12790_v50 = vld [vmem:[%s18196_s5 + $0x10e8] ss:$24 sps:$4 sm:$0xff]   ;;  %v12796_v9 = vld [vmem:[%s18196_s5 + $0x10b8] ss:$24 sps:$4 sm:$0xff]  }
 0x3f5   : > { %8940 = vmatpush1.bf16.msra.mxu0 %v12763_v62  ;;  %8971 = vmatprep.mubr.bf16.mxu0 %v14713_v11  ;;  %v8606_v17 = vpop.f32.mrf.mxu1  ;;  %v12793_v62 = vld [vmem:[%s18196_s5 + $0x1268] ss:$24 sps:$4 sm:$0xff]  }
 0x3f6   : > { %v15982_v20 = vadd.f32 %v8645_v60, %v8605_v3  ;;  %v8607_v21 = vadd.f32 %v8606_v17, %v15786_v53  ;;  %v8647_v47 = vpop.f32.mrf.mxu0  ;;  %8916 = vmatprep.subr.bf16.mxu1 %v12768_v2  ;;  %8941 = vmatprep.subr.bf16.mxu0 %v12771_v54  ;;  %v12775_v53 = vld [vmem:[%s18196_s5 + $0x12f8] ss:$24 sps:$4 sm:$0xff]   ;;  %v12798_v2 = vld [vmem:[%s18196_s5 + $0x10bc] ss:$24 sps:$4 sm:$0xff]   ;;  %v12804_v60 = vld [vmem:[%s18196_s5 + $0x108c] ss:$24 sps:$4 sm:$0xff]  }
 0x3f7   : > { %v8608_v24 = vpop.f32.mrf.mxu1  ;;  %v12801_v54 = vld [vmem:[%s18196_s5 + $0x123c] ss:$24 sps:$4 sm:$0xff]   ;;  %v12799_v3 = vld [vmem:[%s18196_s5 + $0x1238] ss:$24 sps:$4 sm:$0xff]   ;;  %v12802_v17 = vld [vmem:[%s18196_s5 + $0x1088] ss:$24 sps:$4 sm:$0xff]  }
 0x3f8   : > { %v15988_v63 = vadd.f32 %v8647_v47, %v8607_v21  ;;  %v8649_v25 = vpop.f32.mrf.mxu0  ;;  %8917 = vmatpush2.bf16.msra.mxu1 %v12766_v16  ;;  %v12807_v16 = vld [vmem:[%s18196_s5 + $0x120c] ss:$24 sps:$4 sm:$0xff]   ;;  %v12810_v21 = vld [vmem:[%s18196_s5 + $0x14dc] ss:$24 sps:$4 sm:$0xff]   ;;  %v12811_v47 = vld [vmem:[%s18196_s5 + $0x1658] ss:$24 sps:$4 sm:$0xff]  }
 0x3f9   : > { %8942 = vmatpush1.bf16.msra.mxu0 %v12769_v4  ;;  %v8609_v45 = vpop.f32.mrf.mxu1  ;;  %8918 = vmatprep.subr.bf16.mxu1 %v12774_v44  ;;  %v12805_v4 = vld [vmem:[%s18196_s5 + $0x1208] ss:$24 sps:$4 sm:$0xff]   ;;  %v12813_v44 = vld [vmem:[%s18196_s5 + $0x165c] ss:$24 sps:$4 sm:$0xff]   ;;  %v12819_v24 = vld [vmem:[%s18196_s5 + $0x162c] ss:$24 sps:$4 sm:$0xff]  }
 0x3fa   : > { %v8650_v59 = vpop.f32.mrf.mxu0  ;;  %8943 = vmatprep.subr.bf16.mxu0 %v12777_v23  ;;  %v12808_v23 = vld [vmem:[%s18196_s5 + $0x14d8] ss:$24 sps:$4 sm:$0xff]   ;;  %v12816_v25 = vld [vmem:[%s18196_s5 + $0x14ac] ss:$24 sps:$4 sm:$0xff]  }
 0x3fb   : > { %v12814_v59 = vld [vmem:[%s18196_s5 + $0x14a8] ss:$24 sps:$4 sm:$0xff]  }
 0x3fc   : > { %8919 = vmatpush2.bf16.msra.mxu1 %v12772_v26 }
 0x3fd   : > { %8944 = vmatpush1.bf16.msra.mxu0 %v12775_v53  ;;  %8920 = vmatprep.subr.bf16.mxu1 %v12780_v33  ;;  %v12817_v53 = vld [vmem:[%s18196_s5 + $0x1628] ss:$24 sps:$4 sm:$0xff]  }
 0x3fe   : > { %8945 = vmatprep.subr.bf16.mxu0 %v12783_v34  ;;  %v12825_v34 = vld [vmem:[%s18196_s5 + $0x15fc] ss:$24 sps:$4 sm:$0xff]  }
 0x400   : > { %8921 = vmatpush2.bf16.msra.mxu1 %v12778_v35  ;;  %v12822_v35 = vld [vmem:[%s18196_s5 + $0x147c] ss:$24 sps:$4 sm:$0xff]  }
 0x401   : > { %8946 = vmatpush1.bf16.msra.mxu0 %v12781_v15  ;;  %8922 = vmatprep.subr.bf16.mxu1 %v12786_v36  ;;  %v12823_v36 = vld [vmem:[%s18196_s5 + $0x15f8] ss:$24 sps:$4 sm:$0xff]  }
 0x402   : > { %8947 = vmatprep.subr.bf16.mxu0 %v12789_v13 }
 0x404   : > { %8923 = vmatpush2.bf16.msra.mxu1 %v12784_v22  ;;  %v12820_v22 = vld [vmem:[%s18196_s5 + $0x1478] ss:$24 sps:$4 sm:$0xff]  }
 0x405   : > { %8948 = vmatpush1.bf16.msra.mxu0 %v12787_v46  ;;  %8924 = vmatprep.subr.bf16.mxu1 %v12792_v42  ;;  %v12828_v46 = vld [vmem:[%s18196_s5 + $0x144c] ss:$24 sps:$4 sm:$0xff]   ;;  %v12829_v42 = vld [vmem:[%s18196_s5 + $0x15c8] ss:$24 sps:$4 sm:$0xff]  }
 0x406   : > { %8949 = vmatprep.subr.bf16.mxu0 %v12795_v48  ;;  %v12826_v48 = vld [vmem:[%s18196_s5 + $0x1448] ss:$24 sps:$4 sm:$0xff]  }
 0x408   : > { %8925 = vmatpush2.bf16.msra.mxu1 %v12790_v50  ;;  %v12837_v50 = vld [vmem:[%s18196_s5 + $0x159c] ss:$24 sps:$4 sm:$0xff]  }
 0x409   : > { %8950 = vmatpush1.bf16.msra.mxu0 %v12793_v62  ;;  %8926 = vmatprep.subr.bf16.mxu1 %v12798_v2  ;;  %v12834_v62 = vld [vmem:[%s18196_s5 + $0x141c] ss:$24 sps:$4 sm:$0xff]   ;;  %v12835_v2 = vld [vmem:[%s18196_s5 + $0x1598] ss:$24 sps:$4 sm:$0xff]  }
 0x40a   : > { %8951 = vmatprep.subr.bf16.mxu0 %v12801_v54  ;;  %v12832_v54 = vld [vmem:[%s18196_s5 + $0x1418] ss:$24 sps:$4 sm:$0xff]  }
 0x40c   : > { %8927 = vmatpush2.bf16.msra.mxu1 %v12796_v9  ;;  %v12843_v9 = vld [vmem:[%s18196_s5 + $0x156c] ss:$24 sps:$4 sm:$0xff]  }
 0x40d   : > { %8952 = vmatpush1.bf16.msra.mxu0 %v12799_v3  ;;  %8928 = vmatprep.subr.bf16.mxu1 %v12804_v60  ;;  %v12840_v3 = vld [vmem:[%s18196_s5 + $0x13ec] ss:$24 sps:$4 sm:$0xff]   ;;  %v12841_v60 = vld [vmem:[%s18196_s5 + $0x1568] ss:$24 sps:$4 sm:$0xff]  }
 0x40e   : > { %8953 = vmatprep.subr.bf16.mxu0 %v12807_v16  ;;  %v12838_v16 = vld [vmem:[%s18196_s5 + $0x13e8] ss:$24 sps:$4 sm:$0xff]  }
 0x410   : > { %8929 = vmatpush2.bf16.msra.mxu1 %v12802_v17  ;;  %v12849_v17 = vld [vmem:[%s18196_s5 + $0x153c] ss:$24 sps:$4 sm:$0xff]  }
 0x411   : > { %8954 = vmatpush1.bf16.msra.mxu0 %v12805_v4  ;;  %8980 = vmatprep.subr.bf16.mxu1 %v12813_v44  ;;  %v12846_v4 = vld [vmem:[%s18196_s5 + $0x13bc] ss:$24 sps:$4 sm:$0xff]   ;;  %v12847_v44 = vld [vmem:[%s18196_s5 + $0x1538] ss:$24 sps:$4 sm:$0xff]  }
 0x412   : > { %8955 = vmatprep.subr.bf16.mxu0 %v12810_v21  ;;  %v12844_v21 = vld [vmem:[%s18196_s5 + $0x13b8] ss:$24 sps:$4 sm:$0xff]  }
 0x413   : > { %v8686_v26 = vpop.f32.mrf.mxu1  ;;  %8931 = vmatmul.mubr.bf16.vlgmr.msra.gmra.mxu1 %v14707_v8 }
 0x414   : > { %v16076_v45 = vadd.f32 %v8686_v26, %v15982_v20  ;;  %8981 = vmatpush1.bf16.msra.mxu1 %v12811_v47  ;;  %9012 = vmatprep.mubr.bf16.mxu1 %v14721_v14  ;;  %v12855_v47 = vld [vmem:[%s18196_s5 + $0x150c] ss:$24 sps:$4 sm:$0xff]   ;;  %v12858_v26 = vld [vmem:[%s18196_s5 + $0x17dc] ss:$24 sps:$4 sm:$0xff]  }
 0x415   : > { %8956 = vmatpush2.bf16.msra.mxu0 %v12808_v23  ;;  %v8688_v33 = vpop.f32.mrf.mxu1  ;;  %8982 = vmatprep.subr.bf16.mxu1 %v12819_v24  ;;  %v12852_v23 = vld [vmem:[%s18196_s5 + $0x138c] ss:$24 sps:$4 sm:$0xff]   ;;  %v12853_v24 = vld [vmem:[%s18196_s5 + $0x1508] ss:$24 sps:$4 sm:$0xff]  }
 0x416   : > { %v16089_v20 = vadd.f32 %v8688_v33, %v15988_v63  ;;  %8957 = vmatprep.subr.bf16.mxu0 %v12816_v25  ;;  %v12831_v63 = vld [vmem:[%s18196_s5 + $0x15cc] ss:$24 sps:$4 sm:$0xff]   ;;  %v12850_v25 = vld [vmem:[%s18196_s5 + $0x1388] ss:$24 sps:$4 sm:$0xff]   ;;  %v12856_v33 = vld [vmem:[%s18196_s5 + $0x17d8] ss:$24 sps:$4 sm:$0xff]  }
 0x417   : > { %v8690_v15 = vpop.f32.mrf.mxu1 }
 0x418   : > { %8983 = vmatpush1.bf16.msra.mxu1 %v12817_v53  ;;  %v12861_v53 = vld [vmem:[%s18196_s5 + $0x195c] ss:$24 sps:$4 sm:$0xff]  }
 0x419   : > { %8958 = vmatpush2.bf16.msra.mxu0 %v12814_v59  ;;  %v8691_v13 = vpop.f32.mrf.mxu1  ;;  %8984 = vmatprep.subr.bf16.mxu1 %v12825_v34  ;;  %v12859_v59 = vld [vmem:[%s18196_s5 + $0x1958] ss:$24 sps:$4 sm:$0xff]   ;;  %v12864_v34 = vld [vmem:[%s18196_s5 + $0x17ac] ss:$24 sps:$4 sm:$0xff]  }
 0x41a   : > { %8959 = vmatprep.subr.bf16.mxu0 %v12822_v35  ;;  %v12867_v35 = vld [vmem:[%s18196_s5 + $0x192c] ss:$24 sps:$4 sm:$0xff]   ;;  %v12865_v13 = vld [vmem:[%s18196_s5 + $0x1928] ss:$24 sps:$4 sm:$0xff]  }
 0x41c   : > { %8985 = vmatpush1.bf16.msra.mxu1 %v12823_v36  ;;  %v12862_v36 = vld [vmem:[%s18196_s5 + $0x17a8] ss:$24 sps:$4 sm:$0xff]  }
 0x41d   : > { %8960 = vmatpush2.bf16.msra.mxu0 %v12820_v22  ;;  %8986 = vmatprep.subr.bf16.mxu1 %v12831_v63  ;;  %v12870_v22 = vld [vmem:[%s18196_s5 + $0x177c] ss:$24 sps:$4 sm:$0xff]  }
 0x41e   : > { %8961 = vmatprep.subr.bf16.mxu0 %v12828_v46  ;;  %v12873_v46 = vld [vmem:[%s18196_s5 + $0x18fc] ss:$24 sps:$4 sm:$0xff]  }
 0x420   : > { %8987 = vmatpush1.bf16.msra.mxu1 %v12829_v42 }
 0x421   : > { %8962 = vmatpush2.bf16.msra.mxu0 %v12826_v48  ;;  %8988 = vmatprep.subr.bf16.mxu1 %v12837_v50  ;;  %v12868_v48 = vld [vmem:[%s18196_s5 + $0x1778] ss:$24 sps:$4 sm:$0xff]  }
 0x422   : > { %8963 = vmatprep.subr.bf16.mxu0 %v12834_v62  ;;  %v12871_v50 = vld [vmem:[%s18196_s5 + $0x18f8] ss:$24 sps:$4 sm:$0xff]   ;;  %v12876_v62 = vld [vmem:[%s18196_s5 + $0x174c] ss:$24 sps:$4 sm:$0xff]  }
 0x424   : > { %8989 = vmatpush1.bf16.msra.mxu1 %v12835_v2 }
 0x425   : > { %8964 = vmatpush2.bf16.msra.mxu0 %v12832_v54  ;;  %8990 = vmatprep.subr.bf16.mxu1 %v12843_v9  ;;  %v12879_v54 = vld [vmem:[%s18196_s5 + $0x18cc] ss:$24 sps:$4 sm:$0xff]   ;;  %v12874_v9 = vld [vmem:[%s18196_s5 + $0x1748] ss:$24 sps:$4 sm:$0xff]  }
 0x426   : > { %8965 = vmatprep.subr.bf16.mxu0 %v12840_v3  ;;  %v12877_v3 = vld [vmem:[%s18196_s5 + $0x18c8] ss:$24 sps:$4 sm:$0xff]  }
 0x428   : > { %8991 = vmatpush1.bf16.msra.mxu1 %v12841_v60  ;;  %v12882_v60 = vld [vmem:[%s18196_s5 + $0x171c] ss:$24 sps:$4 sm:$0xff]  }
 0x429   : > { %8966 = vmatpush2.bf16.msra.mxu0 %v12838_v16  ;;  %8992 = vmatprep.subr.bf16.mxu1 %v12849_v17  ;;  %v12885_v16 = vld [vmem:[%s18196_s5 + $0x189c] ss:$24 sps:$4 sm:$0xff]   ;;  %v12880_v17 = vld [vmem:[%s18196_s5 + $0x1718] ss:$24 sps:$4 sm:$0xff]  }
 0x42a   : > { %8967 = vmatprep.subr.bf16.mxu0 %v12846_v4  ;;  %v12883_v4 = vld [vmem:[%s18196_s5 + $0x1898] ss:$24 sps:$4 sm:$0xff]  }
 0x42c   : > { %8993 = vmatpush1.bf16.msra.mxu1 %v12847_v44  ;;  %v12888_v44 = vld [vmem:[%s18196_s5 + $0x16ec] ss:$24 sps:$4 sm:$0xff]  }
 0x42d   : > { %8968 = vmatpush2.bf16.msra.mxu0 %v12844_v21  ;;  %8994 = vmatprep.subr.bf16.mxu1 %v12855_v47  ;;  %v12891_v21 = vld [vmem:[%s18196_s5 + $0x186c] ss:$24 sps:$4 sm:$0xff]   ;;  %v12886_v47 = vld [vmem:[%s18196_s5 + $0x16e8] ss:$24 sps:$4 sm:$0xff]  }
 0x42e   : > { %8969 = vmatprep.subr.bf16.mxu0 %v12852_v23  ;;  %v12889_v23 = vld [vmem:[%s18196_s5 + $0x1868] ss:$24 sps:$4 sm:$0xff]  }
 0x430   : > { %8995 = vmatpush1.bf16.msra.mxu1 %v12853_v24  ;;  %v12894_v24 = vld [vmem:[%s18196_s5 + $0x16bc] ss:$24 sps:$4 sm:$0xff]  }
 0x431   : > { %8970 = vmatpush2.bf16.msra.mxu0 %v12850_v25  ;;  %8996 = vmatprep.subr.bf16.mxu1 %v12858_v26  ;;  %v12897_v25 = vld [vmem:[%s18196_s5 + $0x183c] ss:$24 sps:$4 sm:$0xff]   ;;  %v12892_v26 = vld [vmem:[%s18196_s5 + $0x16b8] ss:$24 sps:$4 sm:$0xff]  }
 0x432   : > { %9021 = vmatprep.subr.bf16.mxu0 %v12861_v53  ;;  %v12895_v53 = vld [vmem:[%s18196_s5 + $0x1838] ss:$24 sps:$4 sm:$0xff]  }
 0x434   : > { %v16178_v15 = vpop.f32.mrf.mxu0  ;;  %8972 = vmatmul.mubr.bf16.vlgmr.msra.gmra.mxu0 %v14915_v49  ;;  %8997 = vmatpush2.bf16.msra.mxu1 %v12856_v33  ;;  %v12900_v33 = vld [vmem:[%s18196_s5 + $0x168c] ss:$24 sps:$4 sm:$0xff]  }
 0x435   : > { %9022 = vmatpush1.bf16.msra.mxu0 %v12859_v59  ;;  %9053 = vmatprep.mubr.bf16.mxu0 %v14928_v61  ;;  %v12903_v59 = vld [vmem:[%s18196_s5 + $0x180c] ss:$24 sps:$4 sm:$0xff]  }
 0x436   : > { %v16191_v63 = vpop.f32.mrf.mxu0  ;;  %8998 = vmatprep.subr.bf16.mxu1 %v12864_v34  ;;  %9023 = vmatprep.subr.bf16.mxu0 %v12867_v35  ;;  %v12898_v34 = vld [vmem:[%s18196_s5 + $0x1688] ss:$24 sps:$4 sm:$0xff]  }
 0x437   : > { %v12901_v35 = vld [vmem:[%s18196_s5 + $0x1808] ss:$24 sps:$4 sm:$0xff]  }
 0x438   : > { %v8731_v42 = vpop.f32.mrf.mxu0  ;;  %8999 = vmatpush2.bf16.msra.mxu1 %v12862_v36  ;;  %v12909_v36 = vld [vmem:[%s18196_s5 + $0x1c5c] ss:$24 sps:$4 sm:$0xff]  }
 0x439   : > { %9024 = vmatpush1.bf16.msra.mxu0 %v12865_v13  ;;  %9000 = vmatprep.subr.bf16.mxu1 %v12870_v22  ;;  %v12906_v13 = vld [vmem:[%s18196_s5 + $0x1adc] ss:$24 sps:$4 sm:$0xff]   ;;  %v12907_v22 = vld [vmem:[%s18196_s5 + $0x1c58] ss:$24 sps:$4 sm:$0xff]   ;;  %v12915_v42 = vld [vmem:[%s18196_s5 + $0x1c2c] ss:$24 sps:$4 sm:$0xff]  }
 0x43a   : > { %v8732_v2 = vpop.f32.mrf.mxu0  ;;  %9025 = vmatprep.subr.bf16.mxu0 %v12873_v46  ;;  %v12904_v46 = vld [vmem:[%s18196_s5 + $0x1ad8] ss:$24 sps:$4 sm:$0xff]  }
 0x43b   : > { %v12913_v2 = vld [vmem:[%s18196_s5 + $0x1c28] ss:$24 sps:$4 sm:$0xff]  }
 0x43c   : > { %9001 = vmatpush2.bf16.msra.mxu1 %v12868_v48  ;;  %v12912_v48 = vld [vmem:[%s18196_s5 + $0x1aac] ss:$24 sps:$4 sm:$0xff]  }
 0x43d   : > { %9026 = vmatpush1.bf16.msra.mxu0 %v12871_v50  ;;  %9002 = vmatprep.subr.bf16.mxu1 %v12876_v62 }
 0x43e   : > { %9027 = vmatprep.subr.bf16.mxu0 %v12879_v54 }
 0x440   : > { %9003 = vmatpush2.bf16.msra.mxu1 %v12874_v9  ;;  %v12910_v9 = vld [vmem:[%s18196_s5 + $0x1aa8] ss:$24 sps:$4 sm:$0xff]  }
 0x441   : > { %9028 = vmatpush1.bf16.msra.mxu0 %v12877_v3  ;;  %9004 = vmatprep.subr.bf16.mxu1 %v12882_v60  ;;  %v12921_v3 = vld [vmem:[%s18196_s5 + $0x1bfc] ss:$24 sps:$4 sm:$0xff]  }
 0x442   : > { %9029 = vmatprep.subr.bf16.mxu0 %v12885_v16  ;;  %v12918_v60 = vld [vmem:[%s18196_s5 + $0x1a7c] ss:$24 sps:$4 sm:$0xff]  }
 0x444   : > { %9005 = vmatpush2.bf16.msra.mxu1 %v12880_v17  ;;  %v12919_v17 = vld [vmem:[%s18196_s5 + $0x1bf8] ss:$24 sps:$4 sm:$0xff]  }
 0x445   : > { %9030 = vmatpush1.bf16.msra.mxu0 %v12883_v4  ;;  %9006 = vmatprep.subr.bf16.mxu1 %v12888_v44  ;;  %v12916_v44 = vld [vmem:[%s18196_s5 + $0x1a78] ss:$24 sps:$4 sm:$0xff]  }
 0x446   : > { %9031 = vmatprep.subr.bf16.mxu0 %v12891_v21  ;;  %v12924_v21 = vld [vmem:[%s18196_s5 + $0x1a4c] ss:$24 sps:$4 sm:$0xff]  }
 0x448   : > { %9007 = vmatpush2.bf16.msra.mxu1 %v12886_v47  ;;  %v12925_v47 = vld [vmem:[%s18196_s5 + $0x1bc8] ss:$24 sps:$4 sm:$0xff]  }
 0x449   : > { %9032 = vmatpush1.bf16.msra.mxu0 %v12889_v23  ;;  %9008 = vmatprep.subr.bf16.mxu1 %v12894_v24  ;;  %v12922_v23 = vld [vmem:[%s18196_s5 + $0x1a48] ss:$24 sps:$4 sm:$0xff]   ;;  %v12933_v24 = vld [vmem:[%s18196_s5 + $0x1b9c] ss:$24 sps:$4 sm:$0xff]  }
 0x44a   : > { %9033 = vmatprep.subr.bf16.mxu0 %v12897_v25  ;;  %v12930_v25 = vld [vmem:[%s18196_s5 + $0x1a1c] ss:$24 sps:$4 sm:$0xff]  }
 0x44c   : > { %9009 = vmatpush2.bf16.msra.mxu1 %v12892_v26  ;;  %v12931_v26 = vld [vmem:[%s18196_s5 + $0x1b98] ss:$24 sps:$4 sm:$0xff]  }
 0x44d   : > { %9034 = vmatpush1.bf16.msra.mxu0 %v12895_v53  ;;  %9010 = vmatprep.subr.bf16.mxu1 %v12900_v33  ;;  %v12928_v53 = vld [vmem:[%s18196_s5 + $0x1a18] ss:$24 sps:$4 sm:$0xff]   ;;  %v12939_v33 = vld [vmem:[%s18196_s5 + $0x1b6c] ss:$24 sps:$4 sm:$0xff]  }
 0x44e   : > { %9035 = vmatprep.subr.bf16.mxu0 %v12903_v59  ;;  %v12936_v59 = vld [vmem:[%s18196_s5 + $0x19ec] ss:$24 sps:$4 sm:$0xff]  }
 0x450   : > { %9011 = vmatpush2.bf16.msra.mxu1 %v12898_v34  ;;  %v12937_v34 = vld [vmem:[%s18196_s5 + $0x1b68] ss:$24 sps:$4 sm:$0xff]  }
 0x451   : > { %9036 = vmatpush1.bf16.msra.mxu0 %v12901_v35  ;;  %9062 = vmatprep.subr.bf16.mxu1 %v12909_v36  ;;  %v12934_v35 = vld [vmem:[%s18196_s5 + $0x19e8] ss:$24 sps:$4 sm:$0xff]   ;;  %v12945_v36 = vld [vmem:[%s18196_s5 + $0x1b3c] ss:$24 sps:$4 sm:$0xff]  }
 0x452   : > { %9037 = vmatprep.subr.bf16.mxu0 %v12906_v13  ;;  %v12942_v13 = vld [vmem:[%s18196_s5 + $0x19bc] ss:$24 sps:$4 sm:$0xff]  }
 0x453   : > { %v8768_v50 = vpop.f32.mrf.mxu1  ;;  %9013 = vmatmul.mubr.bf16.vlgmr.msra.gmra.mxu1 %v14922_v51 }
 0x454   : > { %v16282_v62 = vadd.f32 %v8768_v50, %v16178_v15  ;;  %9063 = vmatpush1.bf16.msra.mxu1 %v12907_v22  ;;  %9094 = vmatprep.mubr.bf16.mxu1 %v14936_v7  ;;  %v12943_v22 = vld [vmem:[%s18196_s5 + $0x1b38] ss:$24 sps:$4 sm:$0xff]   ;;  %v12949_v50 = vld [vmem:[%s18196_s5 + $0x1b08] ss:$24 sps:$4 sm:$0xff]  }
 0x455   : > { %9038 = vmatpush2.bf16.msra.mxu0 %v12904_v46  ;;  %v8770_v54 = vpop.f32.mrf.mxu1  ;;  %9064 = vmatprep.subr.bf16.mxu1 %v12915_v42  ;;  %v12940_v46 = vld [vmem:[%s18196_s5 + $0x19b8] ss:$24 sps:$4 sm:$0xff]   ;;  %v12951_v42 = vld [vmem:[%s18196_s5 + $0x1b0c] ss:$24 sps:$4 sm:$0xff]  }
 0x456   : > { %v16295_v15 = vadd.f32 %v8770_v54, %v16191_v63  ;;  %9039 = vmatprep.subr.bf16.mxu0 %v12912_v48  ;;  %v12927_v63 = vld [vmem:[%s18196_s5 + $0x1bcc] ss:$24 sps:$4 sm:$0xff]   ;;  %v12954_v54 = vld [vmem:[%s18196_s5 + $0x1ddc] ss:$24 sps:$4 sm:$0xff]  }
 0x457   : > { %v8772_v16 = vpop.f32.mrf.mxu1  ;;  %v12948_v48 = vld [vmem:[%s18196_s5 + $0x198c] ss:$24 sps:$4 sm:$0xff]  }
 0x458   : > { %9065 = vmatpush1.bf16.msra.mxu1 %v12913_v2  ;;  %v12946_v2 = vld [vmem:[%s18196_s5 + $0x1988] ss:$24 sps:$4 sm:$0xff]   ;;  %v12960_v16 = vld [vmem:[%s18196_s5 + $0x1dac] ss:$24 sps:$4 sm:$0xff]  }
 0x459   : > { %9040 = vmatpush2.bf16.msra.mxu0 %v12910_v9  ;;  %v8773_v4 = vpop.f32.mrf.mxu1  ;;  %9066 = vmatprep.subr.bf16.mxu1 %v12921_v3  ;;  %v12957_v9 = vld [vmem:[%s18196_s5 + $0x1f5c] ss:$24 sps:$4 sm:$0xff]   ;;  %v12952_v3 = vld [vmem:[%s18196_s5 + $0x1dd8] ss:$24 sps:$4 sm:$0xff]  }
 0x45a   : > { %9041 = vmatprep.subr.bf16.mxu0 %v12918_v60  ;;  %v12955_v60 = vld [vmem:[%s18196_s5 + $0x1f58] ss:$24 sps:$4 sm:$0xff]  }
 0x45c   : > { %9067 = vmatpush1.bf16.msra.mxu1 %v12919_v17  ;;  %v12963_v17 = vld [vmem:[%s18196_s5 + $0x1f2c] ss:$24 sps:$4 sm:$0xff]  }
 0x45d   : > { %9042 = vmatpush2.bf16.msra.mxu0 %v12916_v44  ;;  %9068 = vmatprep.subr.bf16.mxu1 %v12927_v63  ;;  %v12958_v44 = vld [vmem:[%s18196_s5 + $0x1da8] ss:$24 sps:$4 sm:$0xff]  }
 0x45e   : > { %9043 = vmatprep.subr.bf16.mxu0 %v12924_v21  ;;  %v12961_v21 = vld [vmem:[%s18196_s5 + $0x1f28] ss:$24 sps:$4 sm:$0xff]  }
 0x460   : > { %9069 = vmatpush1.bf16.msra.mxu1 %v12925_v47  ;;  %v12966_v47 = vld [vmem:[%s18196_s5 + $0x1d7c] ss:$24 sps:$4 sm:$0xff]  }
 0x461   : > { %9044 = vmatpush2.bf16.msra.mxu0 %v12922_v23  ;;  %9070 = vmatprep.subr.bf16.mxu1 %v12933_v24  ;;  %v12969_v24 = vld [vmem:[%s18196_s5 + $0x1efc] ss:$24 sps:$4 sm:$0xff]  }
 0x462   : > { %9045 = vmatprep.subr.bf16.mxu0 %v12930_v25 }
 0x464   : > { %9071 = vmatpush1.bf16.msra.mxu1 %v12931_v26  ;;  %v12964_v26 = vld [vmem:[%s18196_s5 + $0x1d78] ss:$24 sps:$4 sm:$0xff]  }
 0x465   : > { %9046 = vmatpush2.bf16.msra.mxu0 %v12928_v53  ;;  %9072 = vmatprep.subr.bf16.mxu1 %v12939_v33  ;;  %v12967_v53 = vld [vmem:[%s18196_s5 + $0x1ef8] ss:$24 sps:$4 sm:$0xff]   ;;  %v12972_v33 = vld [vmem:[%s18196_s5 + $0x1d4c] ss:$24 sps:$4 sm:$0xff]  }
 0x466   : > { %9047 = vmatprep.subr.bf16.mxu0 %v12936_v59 }
 0x468   : > { %9073 = vmatpush1.bf16.msra.mxu1 %v12937_v34  ;;  %v12970_v34 = vld [vmem:[%s18196_s5 + $0x1d48] ss:$24 sps:$4 sm:$0xff]  }
 0x469   : > { %9048 = vmatpush2.bf16.msra.mxu0 %v12934_v35  ;;  %9074 = vmatprep.subr.bf16.mxu1 %v12945_v36  ;;  %v12973_v35 = vld [vmem:[%s18196_s5 + $0x1ec8] ss:$24 sps:$4 sm:$0xff]   ;;  %v12978_v36 = vld [vmem:[%s18196_s5 + $0x1d1c] ss:$24 sps:$4 sm:$0xff]  }
 0x46a   : > { %9049 = vmatprep.subr.bf16.mxu0 %v12942_v13  ;;  %v12981_v13 = vld [vmem:[%s18196_s5 + $0x1e9c] ss:$24 sps:$4 sm:$0xff]  }
 0x46c   : > { %9075 = vmatpush1.bf16.msra.mxu1 %v12943_v22  ;;  %v12976_v22 = vld [vmem:[%s18196_s5 + $0x1d18] ss:$24 sps:$4 sm:$0xff]  }
 0x46d   : > { %9050 = vmatpush2.bf16.msra.mxu0 %v12940_v46  ;;  %9076 = vmatprep.subr.bf16.mxu1 %v12951_v42  ;;  %v12979_v46 = vld [vmem:[%s18196_s5 + $0x1e98] ss:$24 sps:$4 sm:$0xff]   ;;  %v12984_v42 = vld [vmem:[%s18196_s5 + $0x1cec] ss:$24 sps:$4 sm:$0xff]  }
 0x46e   : > { %9051 = vmatprep.subr.bf16.mxu0 %v12948_v48  ;;  %v12987_v48 = vld [vmem:[%s18196_s5 + $0x1e6c] ss:$24 sps:$4 sm:$0xff]  }
 0x470   : > { %9077 = vmatpush1.bf16.msra.mxu1 %v12949_v50  ;;  %v12982_v50 = vld [vmem:[%s18196_s5 + $0x1ce8] ss:$24 sps:$4 sm:$0xff]  }
 0x471   : > { %9052 = vmatpush2.bf16.msra.mxu0 %v12946_v2  ;;  %9078 = vmatprep.subr.bf16.mxu1 %v12954_v54  ;;  %v12985_v2 = vld [vmem:[%s18196_s5 + $0x1e68] ss:$24 sps:$4 sm:$0xff]   ;;  %v12990_v54 = vld [vmem:[%s18196_s5 + $0x1cbc] ss:$24 sps:$4 sm:$0xff]  }
 0x472   : > { %9103 = vmatprep.subr.bf16.mxu0 %v12957_v9  ;;  %v12993_v9 = vld [vmem:[%s18196_s5 + $0x1e3c] ss:$24 sps:$4 sm:$0xff]  }
 0x474   : > { %v8809_v4 = vpop.f32.mrf.mxu0  ;;  %9054 = vmatmul.mubr.bf16.vlgmr.msra.gmra.mxu0 %v15131_v6  ;;  %9079 = vmatpush2.bf16.msra.mxu1 %v12952_v3  ;;  %v12988_v3 = vld [vmem:[%s18196_s5 + $0x1cb8] ss:$24 sps:$4 sm:$0xff]  }
 0x475   : > { %v16389_v63 = vadd.f32 %v8809_v4, %v16282_v62  ;;  %9104 = vmatpush1.bf16.msra.mxu0 %v12955_v60  ;;  %9135 = vmatprep.mubr.bf16.mxu0 %v15142_v19  ;;  %v12991_v60 = vld [vmem:[%s18196_s5 + $0x1e38] ss:$24 sps:$4 sm:$0xff]   ;;  %v12994_v4 = vld [vmem:[%s18196_s5 + $0x1c88] ss:$24 sps:$4 sm:$0xff]  }
 0x476   : > { %v8811_v23 = vpop.f32.mrf.mxu0  ;;  %9080 = vmatprep.subr.bf16.mxu1 %v12960_v16  ;;  %9105 = vmatprep.subr.bf16.mxu0 %v12963_v17  ;;  %v12996_v16 = vld [vmem:[%s18196_s5 + $0x1c8c] ss:$24 sps:$4 sm:$0xff]  }
 0x477   : > { %v16402_v62 = vadd.f32 %v8811_v23, %v16295_v15  ;;  %v12975_v15 = vld [vmem:[%s18196_s5 + $0x1ecc] ss:$24 sps:$4 sm:$0xff]   ;;  %v13003_v23 = vld [vmem:[%s18196_s5 + $0x2258] ss:$24 sps:$4 sm:$0xff]  }
 0x478   : > { %v8813_v25 = vpop.f32.mrf.mxu0  ;;  %9081 = vmatpush2.bf16.msra.mxu1 %v12958_v44  ;;  %v12999_v17 = vld [vmem:[%s18196_s5 + $0x1e0c] ss:$24 sps:$4 sm:$0xff]   ;;  %v12997_v44 = vld [vmem:[%s18196_s5 + $0x1e08] ss:$24 sps:$4 sm:$0xff]  }
 0x479   : > { %9106 = vmatpush1.bf16.msra.mxu0 %v12961_v21  ;;  %9082 = vmatprep.subr.bf16.mxu1 %v12966_v47  ;;  %v13005_v21 = vld [vmem:[%s18196_s5 + $0x225c] ss:$24 sps:$4 sm:$0xff]   ;;  %v13011_v25 = vld [vmem:[%s18196_s5 + $0x222c] ss:$24 sps:$4 sm:$0xff]  }
 0x47a   : > { %v8814_v59 = vpop.f32.mrf.mxu0  ;;  %9107 = vmatprep.subr.bf16.mxu0 %v12969_v24  ;;  %v13002_v47 = vld [vmem:[%s18196_s5 + $0x20dc] ss:$24 sps:$4 sm:$0xff]   ;;  %v13000_v24 = vld [vmem:[%s18196_s5 + $0x20d8] ss:$24 sps:$4 sm:$0xff]  }
 0x47b   : > { %v13009_v59 = vld [vmem:[%s18196_s5 + $0x2228] ss:$24 sps:$4 sm:$0xff]  }
 0x47c   : > { %9083 = vmatpush2.bf16.msra.mxu1 %v12964_v26  ;;  %v13008_v26 = vld [vmem:[%s18196_s5 + $0x20ac] ss:$24 sps:$4 sm:$0xff]  }
 0x47d   : > { %9108 = vmatpush1.bf16.msra.mxu0 %v12967_v53  ;;  %9084 = vmatprep.subr.bf16.mxu1 %v12972_v33 }
 0x47e   : > { %9109 = vmatprep.subr.bf16.mxu0 %v12975_v15 }
 0x480   : > { %9085 = vmatpush2.bf16.msra.mxu1 %v12970_v34  ;;  %v13006_v34 = vld [vmem:[%s18196_s5 + $0x20a8] ss:$24 sps:$4 sm:$0xff]  }
 0x481   : > { %9110 = vmatpush1.bf16.msra.mxu0 %v12973_v35  ;;  %9086 = vmatprep.subr.bf16.mxu1 %v12978_v36  ;;  %v13017_v35 = vld [vmem:[%s18196_s5 + $0x21fc] ss:$24 sps:$4 sm:$0xff]  }
 0x482   : > { %9111 = vmatprep.subr.bf16.mxu0 %v12981_v13  ;;  %v13014_v36 = vld [vmem:[%s18196_s5 + $0x207c] ss:$24 sps:$4 sm:$0xff]  }
 0x484   : > { %9087 = vmatpush2.bf16.msra.mxu1 %v12976_v22  ;;  %v13015_v22 = vld [vmem:[%s18196_s5 + $0x21f8] ss:$24 sps:$4 sm:$0xff]  }
 0x485   : > { %9112 = vmatpush1.bf16.msra.mxu0 %v12979_v46  ;;  %9088 = vmatprep.subr.bf16.mxu1 %v12984_v42  ;;  %v13012_v42 = vld [vmem:[%s18196_s5 + $0x2078] ss:$24 sps:$4 sm:$0xff]  }
 0x486   : > { %9113 = vmatprep.subr.bf16.mxu0 %v12987_v48  ;;  %v13020_v48 = vld [vmem:[%s18196_s5 + $0x204c] ss:$24 sps:$4 sm:$0xff]  }
 0x488   : > { %9089 = vmatpush2.bf16.msra.mxu1 %v12982_v50  ;;  %v13021_v50 = vld [vmem:[%s18196_s5 + $0x21c8] ss:$24 sps:$4 sm:$0xff]  }
 0x489   : > { %9114 = vmatpush1.bf16.msra.mxu0 %v12985_v2  ;;  %9090 = vmatprep.subr.bf16.mxu1 %v12990_v54  ;;  %v13018_v2 = vld [vmem:[%s18196_s5 + $0x2048] ss:$24 sps:$4 sm:$0xff]   ;;  %v13029_v54 = vld [vmem:[%s18196_s5 + $0x219c] ss:$24 sps:$4 sm:$0xff]  }
 0x48a   : > { %9115 = vmatprep.subr.bf16.mxu0 %v12993_v9  ;;  %v13026_v9 = vld [vmem:[%s18196_s5 + $0x201c] ss:$24 sps:$4 sm:$0xff]  }
 0x48c   : > { %9091 = vmatpush2.bf16.msra.mxu1 %v12988_v3  ;;  %v13027_v3 = vld [vmem:[%s18196_s5 + $0x2198] ss:$24 sps:$4 sm:$0xff]  }
 0x48d   : > { %9116 = vmatpush1.bf16.msra.mxu0 %v12991_v60  ;;  %9092 = vmatprep.subr.bf16.mxu1 %v12996_v16  ;;  %v13024_v60 = vld [vmem:[%s18196_s5 + $0x2018] ss:$24 sps:$4 sm:$0xff]   ;;  %v13035_v16 = vld [vmem:[%s18196_s5 + $0x216c] ss:$24 sps:$4 sm:$0xff]  }
 0x48e   : > { %9117 = vmatprep.subr.bf16.mxu0 %v12999_v17  ;;  %v13032_v17 = vld [vmem:[%s18196_s5 + $0x1fec] ss:$24 sps:$4 sm:$0xff]  }
 0x490   : > { %9093 = vmatpush2.bf16.msra.mxu1 %v12994_v4  ;;  %v13033_v4 = vld [vmem:[%s18196_s5 + $0x2168] ss:$24 sps:$4 sm:$0xff]  }
 0x491   : > { %9118 = vmatpush1.bf16.msra.mxu0 %v12997_v44  ;;  %9144 = vmatprep.subr.bf16.mxu1 %v13005_v21  ;;  %v13030_v44 = vld [vmem:[%s18196_s5 + $0x1fe8] ss:$24 sps:$4 sm:$0xff]   ;;  %v13041_v21 = vld [vmem:[%s18196_s5 + $0x213c] ss:$24 sps:$4 sm:$0xff]  }
 0x492   : > { %9119 = vmatprep.subr.bf16.mxu0 %v13002_v47  ;;  %v13038_v47 = vld [vmem:[%s18196_s5 + $0x1fbc] ss:$24 sps:$4 sm:$0xff]  }
 0x493   : > { %v8850_v53 = vpop.f32.mrf.mxu1  ;;  %9095 = vmatmul.mubr.bf16.vlgmr.msra.gmra.mxu1 %v15136_v12 }
 0x494   : > { %v16490_v33 = vadd.f32 %v8850_v53, %v16389_v63  ;;  %9145 = vmatpush1.bf16.msra.mxu1 %v13003_v23  ;;  %9176 = vmatprep.mubr.bf16.mxu1 %v15151_v37  ;;  %v13039_v23 = vld [vmem:[%s18196_s5 + $0x2138] ss:$24 sps:$4 sm:$0xff]   ;;  %v13045_v53 = vld [vmem:[%s18196_s5 + $0x2108] ss:$24 sps:$4 sm:$0xff]  }
 0x495   : > { %9120 = vmatpush2.bf16.msra.mxu0 %v13000_v24  ;;  %v8852_v15 = vpop.f32.mrf.mxu1  ;;  %9146 = vmatprep.subr.bf16.mxu1 %v13011_v25  ;;  %v13036_v24 = vld [vmem:[%s18196_s5 + $0x1fb8] ss:$24 sps:$4 sm:$0xff]   ;;  %v13047_v25 = vld [vmem:[%s18196_s5 + $0x210c] ss:$24 sps:$4 sm:$0xff]  }
 0x496   : > { %v16503_v63 = vadd.f32 %v8852_v15, %v16402_v62  ;;  %9121 = vmatprep.subr.bf16.mxu0 %v13008_v26  ;;  %v13023_v62 = vld [vmem:[%s18196_s5 + $0x21cc] ss:$24 sps:$4 sm:$0xff]   ;;  %v13050_v15 = vld [vmem:[%s18196_s5 + $0x23dc] ss:$24 sps:$4 sm:$0xff]  }
 0x497   : > { %v8854_v13 = vpop.f32.mrf.mxu1  ;;  %v13044_v26 = vld [vmem:[%s18196_s5 + $0x1f8c] ss:$24 sps:$4 sm:$0xff]  }
 0x498   : > { %9147 = vmatpush1.bf16.msra.mxu1 %v13009_v59  ;;  %v13042_v59 = vld [vmem:[%s18196_s5 + $0x1f88] ss:$24 sps:$4 sm:$0xff]   ;;  %v13056_v13 = vld [vmem:[%s18196_s5 + $0x23ac] ss:$24 sps:$4 sm:$0xff]  }
 0x499   : > { %9122 = vmatpush2.bf16.msra.mxu0 %v13006_v34  ;;  %v8855_v46 = vpop.f32.mrf.mxu1  ;;  %9148 = vmatprep.subr.bf16.mxu1 %v13017_v35  ;;  %v13053_v34 = vld [vmem:[%s18196_s5 + $0x255c] ss:$24 sps:$4 sm:$0xff]   ;;  %v13048_v35 = vld [vmem:[%s18196_s5 + $0x23d8] ss:$24 sps:$4 sm:$0xff]  }
 0x49a   : > { %9123 = vmatprep.subr.bf16.mxu0 %v13014_v36  ;;  %v13051_v36 = vld [vmem:[%s18196_s5 + $0x2558] ss:$24 sps:$4 sm:$0xff]  }
 0x49c   : > { %9149 = vmatpush1.bf16.msra.mxu1 %v13015_v22  ;;  %v13059_v22 = vld [vmem:[%s18196_s5 + $0x252c] ss:$24 sps:$4 sm:$0xff]  }
 0x49d   : > { %9124 = vmatpush2.bf16.msra.mxu0 %v13012_v42  ;;  %9150 = vmatprep.subr.bf16.mxu1 %v13023_v62  ;;  %v13054_v42 = vld [vmem:[%s18196_s5 + $0x23a8] ss:$24 sps:$4 sm:$0xff]  }
 0x49e   : > { %9125 = vmatprep.subr.bf16.mxu0 %v13020_v48  ;;  %v13057_v48 = vld [vmem:[%s18196_s5 + $0x2528] ss:$24 sps:$4 sm:$0xff]  }
 0x4a0   : > { %9151 = vmatpush1.bf16.msra.mxu1 %v13021_v50  ;;  %v13062_v50 = vld [vmem:[%s18196_s5 + $0x237c] ss:$24 sps:$4 sm:$0xff]  }
 0x4a1   : > { %9126 = vmatpush2.bf16.msra.mxu0 %v13018_v2  ;;  %9152 = vmatprep.subr.bf16.mxu1 %v13029_v54  ;;  %v13065_v54 = vld [vmem:[%s18196_s5 + $0x24fc] ss:$24 sps:$4 sm:$0xff]  }
 0x4a2   : > { %9127 = vmatprep.subr.bf16.mxu0 %v13026_v9 }
 0x4a4   : > { %9153 = vmatpush1.bf16.msra.mxu1 %v13027_v3  ;;  %v13060_v3 = vld [vmem:[%s18196_s5 + $0x2378] ss:$24 sps:$4 sm:$0xff]  }
 0x4a5   : > { %9128 = vmatpush2.bf16.msra.mxu0 %v13024_v60  ;;  %9154 = vmatprep.subr.bf16.mxu1 %v13035_v16  ;;  %v13063_v60 = vld [vmem:[%s18196_s5 + $0x24f8] ss:$24 sps:$4 sm:$0xff]   ;;  %v13068_v16 = vld [vmem:[%s18196_s5 + $0x234c] ss:$24 sps:$4 sm:$0xff]  }
 0x4a6   : > { %9129 = vmatprep.subr.bf16.mxu0 %v13032_v17 }
 0x4a8   : > { %9155 = vmatpush1.bf16.msra.mxu1 %v13033_v4  ;;  %v13066_v4 = vld [vmem:[%s18196_s5 + $0x2348] ss:$24 sps:$4 sm:$0xff]  }
 0x4a9   : > { %9130 = vmatpush2.bf16.msra.mxu0 %v13030_v44  ;;  %9156 = vmatprep.subr.bf16.mxu1 %v13041_v21  ;;  %v13069_v44 = vld [vmem:[%s18196_s5 + $0x24c8] ss:$24 sps:$4 sm:$0xff]   ;;  %v13074_v21 = vld [vmem:[%s18196_s5 + $0x231c] ss:$24 sps:$4 sm:$0xff]  }
 0x4aa   : > { %9131 = vmatprep.subr.bf16.mxu0 %v13038_v47  ;;  %v13077_v47 = vld [vmem:[%s18196_s5 + $0x249c] ss:$24 sps:$4 sm:$0xff]  }
 0x4ac   : > { %9157 = vmatpush1.bf16.msra.mxu1 %v13039_v23  ;;  %v13072_v23 = vld [vmem:[%s18196_s5 + $0x2318] ss:$24 sps:$4 sm:$0xff]  }
 0x4ad   : > { %9132 = vmatpush2.bf16.msra.mxu0 %v13036_v24  ;;  %9158 = vmatprep.subr.bf16.mxu1 %v13047_v25  ;;  %v13075_v24 = vld [vmem:[%s18196_s5 + $0x2498] ss:$24 sps:$4 sm:$0xff]   ;;  %v13080_v25 = vld [vmem:[%s18196_s5 + $0x22ec] ss:$24 sps:$4 sm:$0xff]  }
 0x4ae   : > { %9133 = vmatprep.subr.bf16.mxu0 %v13044_v26  ;;  %v13083_v26 = vld [vmem:[%s18196_s5 + $0x246c] ss:$24 sps:$4 sm:$0xff]  }
 0x4b0   : > { %9159 = vmatpush1.bf16.msra.mxu1 %v13045_v53  ;;  %v13078_v53 = vld [vmem:[%s18196_s5 + $0x22e8] ss:$24 sps:$4 sm:$0xff]  }
 0x4b1   : > { %9134 = vmatpush2.bf16.msra.mxu0 %v13042_v59  ;;  %9160 = vmatprep.subr.bf16.mxu1 %v13050_v15  ;;  %v13081_v59 = vld [vmem:[%s18196_s5 + $0x2468] ss:$24 sps:$4 sm:$0xff]   ;;  %v13086_v15 = vld [vmem:[%s18196_s5 + $0x22bc] ss:$24 sps:$4 sm:$0xff]  }
 0x4b2   : > { %9185 = vmatprep.subr.bf16.mxu0 %v13053_v34  ;;  %v13089_v34 = vld [vmem:[%s18196_s5 + $0x243c] ss:$24 sps:$4 sm:$0xff]  }
 0x4b4   : > { %v8891_v46 = vpop.f32.mrf.mxu0  ;;  %9136 = vmatmul.mubr.bf16.vlgmr.msra.gmra.mxu0 %v15345_v27  ;;  %9161 = vmatpush2.bf16.msra.mxu1 %v13048_v35  ;;  %v13084_v35 = vld [vmem:[%s18196_s5 + $0x22b8] ss:$24 sps:$4 sm:$0xff]  }
 0x4b5   : > { %v16597_v62 = vadd.f32 %v8891_v46, %v16490_v33  ;;  %9186 = vmatpush1.bf16.msra.mxu0 %v13051_v36  ;;  %9162 = vmatprep.subr.bf16.mxu1 %v13056_v13  ;;  %v13087_v36 = vld [vmem:[%s18196_s5 + $0x2438] ss:$24 sps:$4 sm:$0xff]   ;;  %v13092_v13 = vld [vmem:[%s18196_s5 + $0x228c] ss:$24 sps:$4 sm:$0xff]   ;;  %v13090_v46 = vld [vmem:[%s18196_s5 + $0x2288] ss:$24 sps:$4 sm:$0xff]  }
 0x4b6   : > { %v8893_v2 = vpop.f32.mrf.mxu0  ;;  %9187 = vmatprep.subr.bf16.mxu0 %v13059_v22  ;;  %9217 = vmatprep.mubr.bf16.mxu0 %v13808_v10  ;;  %v13095_v22 = vld [vmem:[%s18196_s5 + $0x240c] ss:$24 sps:$4 sm:$0xff]  }
 0x4b7   : > { %v16610_v33 = vadd.f32 %v8893_v2, %v16503_v63  ;;  %v13071_v63 = vld [vmem:[%s18196_s5 + $0x24cc] ss:$24 sps:$4 sm:$0xff]   ;;  %v13096_v2 = vld [vmem:[%s18196_s5 + $0x160] ss:$24 sps:$4 sm:$0xff]  }
 0x4b8   : > { %v8895_v9 = vpop.f32.mrf.mxu0  ;;  %9163 = vmatpush2.bf16.msra.mxu1 %v13054_v42  ;;  %v13093_v42 = vld [vmem:[%s18196_s5 + $0x2408] ss:$24 sps:$4 sm:$0xff]  }
 0x4b9   : > { %9188 = vmatpush1.bf16.msra.mxu0 %v13057_v48  ;;  %9164 = vmatprep.subr.bf16.mxu1 %v13062_v50  ;;  %v13098_v48 = vld [vmem:[%s18196_s5 + $0x164] ss:$24 sps:$4 sm:$0xff]   ;;  %v13104_v9 = vld [vmem:[%s18196_s5 + $0x134] ss:$24 sps:$4 sm:$0xff]  }
 0x4ba   : > { %v8896_v17 = vpop.f32.mrf.mxu0  ;;  %9189 = vmatprep.subr.bf16.mxu0 %v13065_v54  ;;  %v13101_v50 = vld [vmem:[%s18196_s5 + $0x464] ss:$24 sps:$4 sm:$0xff]   ;;  %v13099_v54 = vld [vmem:[%s18196_s5 + $0x460] ss:$24 sps:$4 sm:$0xff]  }
 0x4bb   : > { %v13102_v17 = vld [vmem:[%s18196_s5 + $0x130] ss:$24 sps:$4 sm:$0xff]  }
 0x4bc   : > { %9165 = vmatpush2.bf16.msra.mxu1 %v13060_v3 }
 0x4bd   : > { %9190 = vmatpush1.bf16.msra.mxu0 %v13063_v60  ;;  %9166 = vmatprep.subr.bf16.mxu1 %v13068_v16  ;;  %v13107_v60 = vld [vmem:[%s18196_s5 + $0x434] ss:$24 sps:$4 sm:$0xff]  }
 0x4be   : > { %9191 = vmatprep.subr.bf16.mxu0 %v13071_v63 }
 0x4c0   : > { %9167 = vmatpush2.bf16.msra.mxu1 %v13066_v4  ;;  %v13105_v4 = vld [vmem:[%s18196_s5 + $0x430] ss:$24 sps:$4 sm:$0xff]  }
 0x4c1   : > { %9192 = vmatpush1.bf16.msra.mxu0 %v13069_v44  ;;  %9168 = vmatprep.subr.bf16.mxu1 %v13074_v21 }
 0x4c2   : > { %9193 = vmatprep.subr.bf16.mxu0 %v13077_v47  ;;  %v13108_v47 = vld [vmem:[%s18196_s5 + $0x100] ss:$24 sps:$4 sm:$0xff]  }
 0x4c4   : > { %9169 = vmatpush2.bf16.msra.mxu1 %v13072_v23 }
 0x4c5   : > { %9194 = vmatpush1.bf16.msra.mxu0 %v13075_v24  ;;  %9170 = vmatprep.subr.bf16.mxu1 %v13080_v25  ;;  %v13119_v24 = vld [vmem:[%s18196_s5 + $0x3d4] ss:$24 sps:$4 sm:$0xff]   ;;  %v13114_v25 = vld [vmem:[%s18196_s5 + $0xd0] ss:$24 sps:$4 sm:$0xff]  }
 0x4c6   : > { %9195 = vmatprep.subr.bf16.mxu0 %v13083_v26  ;;  %v13117_v26 = vld [vmem:[%s18196_s5 + $0x3d0] ss:$24 sps:$4 sm:$0xff]  }
 0x4c8   : > { %9171 = vmatpush2.bf16.msra.mxu1 %v13078_v53  ;;  %v13122_v53 = vld [vmem:[%s18196_s5 + $0xa4] ss:$24 sps:$4 sm:$0xff]  }
 0x4c9   : > { %9196 = vmatpush1.bf16.msra.mxu0 %v13081_v59  ;;  %9172 = vmatprep.subr.bf16.mxu1 %v13086_v15  ;;  %v13125_v59 = vld [vmem:[%s18196_s5 + $0x3a4] ss:$24 sps:$4 sm:$0xff]   ;;  %v13120_v15 = vld [vmem:[%s18196_s5 + $0xa0] ss:$24 sps:$4 sm:$0xff]  }
 0x4ca   : > { %9197 = vmatprep.subr.bf16.mxu0 %v13089_v34  ;;  %v13123_v34 = vld [vmem:[%s18196_s5 + $0x3a0] ss:$24 sps:$4 sm:$0xff]  }
 0x4cc   : > { %9173 = vmatpush2.bf16.msra.mxu1 %v13084_v35  ;;  %v13128_v35 = vld [vmem:[%s18196_s5 + $0x74] ss:$24 sps:$4 sm:$0xff]  }
 0x4cd   : > { %9198 = vmatpush1.bf16.msra.mxu0 %v13087_v36  ;;  %9174 = vmatprep.subr.bf16.mxu1 %v13092_v13  ;;  %v13131_v36 = vld [vmem:[%s18196_s5 + $0x374] ss:$24 sps:$4 sm:$0xff]   ;;  %v13126_v13 = vld [vmem:[%s18196_s5 + $0x70] ss:$24 sps:$4 sm:$0xff]  }
 0x4ce   : > { %9199 = vmatprep.subr.bf16.mxu0 %v13095_v22  ;;  %v13129_v22 = vld [vmem:[%s18196_s5 + $0x370] ss:$24 sps:$4 sm:$0xff]  }
 0x4d0   : > { %9175 = vmatpush2.bf16.msra.mxu1 %v13090_v46  ;;  %v13134_v46 = vld [vmem:[%s18196_s5 + $0x44] ss:$24 sps:$4 sm:$0xff]  }
 0x4d1   : > { %9200 = vmatpush1.bf16.msra.mxu0 %v13093_v42  ;;  %9226 = vmatprep.subr.bf16.mxu1 %v13098_v48  ;;  %v13137_v42 = vld [vmem:[%s18196_s5 + $0x344] ss:$24 sps:$4 sm:$0xff]   ;;  %v13132_v48 = vld [vmem:[%s18196_s5 + $0x40] ss:$24 sps:$4 sm:$0xff]  }
 0x4d2   : > { %9267 = vmatprep.subr.bf16.mxu0 %v13101_v50  ;;  %v13135_v50 = vld [vmem:[%s18196_s5 + $0x340] ss:$24 sps:$4 sm:$0xff]  }
 0x4d3   : > { %v8932_v3 = vpop.f32.mrf.mxu1  ;;  %9177 = vmatmul.mubr.bf16.vlgmr.msra.gmra.mxu1 %v15352_v32 }
 0x4d4   : > { %v16698_v16 = vadd.f32 %v8932_v3, %v16597_v62  ;;  %9218 = vmatmul.mubr.bf16.vlgmr.msra.gmra.mxu0 %v15457_v52  ;;  %9227 = vmatpush1.bf16.msra.mxu1 %v13096_v2  ;;  %v13110_v62 = vld [vmem:[%s18196_s5 + $0x104] ss:$24 sps:$4 sm:$0xff]   ;;  %v13140_v2 = vld [vmem:[%s18196_s5 + $0x14] ss:$24 sps:$4 sm:$0xff]   ;;  %v13141_v3 = vld [vmem:[%s18196_s5 + $0x310] ss:$24 sps:$4 sm:$0xff]  }
 0x4d5   : > { %9258 = vmatprep.mubr.bf16.mxu1 %v14262_v55  ;;  %9268 = vmatpush1.bf16.msra.mxu0 %v13099_v54  ;;  %v8934_v63 = vpop.f32.mrf.mxu1  ;;  %v13113_v55 = vld [vmem:[%s18196_s5 + $0x404] ss:$24 sps:$4 sm:$0xff]   ;;  %v13143_v54 = vld [vmem:[%s18196_s5 + $0x314] ss:$24 sps:$4 sm:$0xff]  }
 0x4d6   : > { %9299 = vmatprep.mubr.bf16.mxu0 %v14264_v56  ;;  %v16713_v44 = vadd.f32 %v8934_v63, %v16610_v33  ;;  %9228 = vmatprep.subr.bf16.mxu1 %v13104_v9  ;;  %v13111_v56 = vld [vmem:[%s18196_s5 + $0x400] ss:$24 sps:$4 sm:$0xff]   ;;  %v13116_v33 = vld [vmem:[%s18196_s5 + $0xd4] ss:$24 sps:$4 sm:$0xff]   ;;  %v13138_v9 = vld [vmem:[%s18196_s5 + $0x10] ss:$24 sps:$4 sm:$0xff]  }
 0x4d7   : > { %v8936_v21 = vpop.f32.mrf.mxu1  ;;  %9269 = vmatprep.subr.bf16.mxu0 %v13107_v60  ;;  %v13146_v60 = vld [vmem:[%s18196_s5 + $0x2e4] ss:$24 sps:$4 sm:$0xff]   ;;  %v13144_v63 = vld [vmem:[%s18196_s5 + $0x2e0] ss:$24 sps:$4 sm:$0xff]  }
 0x4d8   : > { %9229 = vmatpush1.bf16.msra.mxu1 %v13102_v17  ;;  %v13149_v17 = vld [vmem:[%s18196_s5 + $0x5e4] ss:$24 sps:$4 sm:$0xff]  }
 0x4d9   : > { %9270 = vmatpush1.bf16.msra.mxu0 %v13105_v4  ;;  %v8937_v23 = vpop.f32.mrf.mxu1  ;;  %9230 = vmatprep.subr.bf16.mxu1 %v13110_v62  ;;  %v13147_v4 = vld [vmem:[%s18196_s5 + $0x5e0] ss:$24 sps:$4 sm:$0xff]   ;;  %v13152_v62 = vld [vmem:[%s18196_s5 + $0x2b4] ss:$24 sps:$4 sm:$0xff]  }
 0x4da   : > { %9271 = vmatprep.subr.bf16.mxu0 %v13113_v55  ;;  %v13155_v55 = vld [vmem:[%s18196_s5 + $0x5b4] ss:$24 sps:$4 sm:$0xff]  }
 0x4dc   : > { %9231 = vmatpush1.bf16.msra.mxu1 %v13108_v47  ;;  %v13150_v47 = vld [vmem:[%s18196_s5 + $0x2b0] ss:$24 sps:$4 sm:$0xff]  }
 0x4dd   : > { %9272 = vmatpush1.bf16.msra.mxu0 %v13111_v56  ;;  %9232 = vmatprep.subr.bf16.mxu1 %v13116_v33  ;;  %v13153_v56 = vld [vmem:[%s18196_s5 + $0x5b0] ss:$24 sps:$4 sm:$0xff]   ;;  %v13158_v33 = vld [vmem:[%s18196_s5 + $0x284] ss:$24 sps:$4 sm:$0xff]  }
 0x4de   : > { %9273 = vmatprep.subr.bf16.mxu0 %v13119_v24 }
 0x4e0   : > { %9233 = vmatpush1.bf16.msra.mxu1 %v13114_v25  ;;  %v13161_v25 = vld [vmem:[%s18196_s5 + $0x584] ss:$24 sps:$4 sm:$0xff]  }
 0x4e1   : > { %9274 = vmatpush1.bf16.msra.mxu0 %v13117_v26  ;;  %9234 = vmatprep.subr.bf16.mxu1 %v13122_v53  ;;  %v13156_v53 = vld [vmem:[%s18196_s5 + $0x280] ss:$24 sps:$4 sm:$0xff]  }
 0x4e2   : > { %9275 = vmatprep.subr.bf16.mxu0 %v13125_v59  ;;  %v13159_v59 = vld [vmem:[%s18196_s5 + $0x580] ss:$24 sps:$4 sm:$0xff]  }
 0x4e4   : > { %9235 = vmatpush1.bf16.msra.mxu1 %v13120_v15  ;;  %v13164_v15 = vld [vmem:[%s18196_s5 + $0x254] ss:$24 sps:$4 sm:$0xff]  }
 0x4e5   : > { %9276 = vmatpush1.bf16.msra.mxu0 %v13123_v34  ;;  %9236 = vmatprep.subr.bf16.mxu1 %v13128_v35  ;;  %v13162_v35 = vld [vmem:[%s18196_s5 + $0x250] ss:$24 sps:$4 sm:$0xff]  }
 0x4e6   : > { %9277 = vmatprep.subr.bf16.mxu0 %v13131_v36  ;;  %v13165_v36 = vld [vmem:[%s18196_s5 + $0x550] ss:$24 sps:$4 sm:$0xff]  }
 0x4e8   : > { %9237 = vmatpush1.bf16.msra.mxu1 %v13126_v13  ;;  %v13170_v13 = vld [vmem:[%s18196_s5 + $0x224] ss:$24 sps:$4 sm:$0xff]  }
 0x4e9   : > { %9278 = vmatpush1.bf16.msra.mxu0 %v13129_v22  ;;  %9238 = vmatprep.subr.bf16.mxu1 %v13134_v46  ;;  %v13173_v22 = vld [vmem:[%s18196_s5 + $0x524] ss:$24 sps:$4 sm:$0xff]   ;;  %v13168_v46 = vld [vmem:[%s18196_s5 + $0x220] ss:$24 sps:$4 sm:$0xff]  }
 0x4ea   : > { %9279 = vmatprep.subr.bf16.mxu0 %v13137_v42  ;;  %v13171_v42 = vld [vmem:[%s18196_s5 + $0x520] ss:$24 sps:$4 sm:$0xff]  }
 0x4ec   : > { %9239 = vmatpush1.bf16.msra.mxu1 %v13132_v48  ;;  %v13176_v48 = vld [vmem:[%s18196_s5 + $0x1f4] ss:$24 sps:$4 sm:$0xff]  }
 0x4ed   : > { %9280 = vmatpush1.bf16.msra.mxu0 %v13135_v50  ;;  %9240 = vmatprep.subr.bf16.mxu1 %v13140_v2  ;;  %v13179_v50 = vld [vmem:[%s18196_s5 + $0x4f4] ss:$24 sps:$4 sm:$0xff]   ;;  %v13174_v2 = vld [vmem:[%s18196_s5 + $0x1f0] ss:$24 sps:$4 sm:$0xff]  }
 0x4ee   : > { %9281 = vmatprep.subr.bf16.mxu0 %v13143_v54  ;;  %v13177_v54 = vld [vmem:[%s18196_s5 + $0x4f0] ss:$24 sps:$4 sm:$0xff]  }
 0x4f0   : > { %9241 = vmatpush1.bf16.msra.mxu1 %v13138_v9  ;;  %v13182_v9 = vld [vmem:[%s18196_s5 + $0x1c4] ss:$24 sps:$4 sm:$0xff]  }
 0x4f1   : > { %9282 = vmatpush1.bf16.msra.mxu0 %v13141_v3  ;;  %9242 = vmatprep.subr.bf16.mxu1 %v13146_v60  ;;  %v13185_v3 = vld [vmem:[%s18196_s5 + $0x4c4] ss:$24 sps:$4 sm:$0xff]   ;;  %v13180_v60 = vld [vmem:[%s18196_s5 + $0x1c0] ss:$24 sps:$4 sm:$0xff]  }
 0x4f2   : > { %9283 = vmatprep.subr.bf16.mxu0 %v13149_v17  ;;  %v13183_v17 = vld [vmem:[%s18196_s5 + $0x4c0] ss:$24 sps:$4 sm:$0xff]  }
 0x4f4   : > { %v8973_v21 = vpop.f32.mrf.mxu0  ;;  %9243 = vmatpush2.bf16.msra.mxu1 %v13144_v63  ;;  %v13188_v63 = vld [vmem:[%s18196_s5 + $0x194] ss:$24 sps:$4 sm:$0xff]  }
 0x4f5   : > { %v16806_v23 = vadd.f32 %v8973_v21, %v16698_v16  ;;  %9284 = vmatpush2.bf16.msra.mxu0 %v13147_v4  ;;  %9244 = vmatprep.subr.bf16.mxu1 %v13152_v62  ;;  %v13191_v4 = vld [vmem:[%s18196_s5 + $0x494] ss:$24 sps:$4 sm:$0xff]   ;;  %v13186_v62 = vld [vmem:[%s18196_s5 + $0x190] ss:$24 sps:$4 sm:$0xff]   ;;  %v13194_v21 = vld [vmem:[%s18196_s5 + $0x764] ss:$24 sps:$4 sm:$0xff]  }
 0x4f6   : > { %v8975_v24 = vpop.f32.mrf.mxu0  ;;  %9285 = vmatprep.subr.bf16.mxu0 %v13155_v55  ;;  %v13189_v55 = vld [vmem:[%s18196_s5 + $0x490] ss:$24 sps:$4 sm:$0xff]  }
 0x4f7   : > { %v16818_v26 = vadd.f32 %v8975_v24, %v16713_v44  ;;  %v13167_v44 = vld [vmem:[%s18196_s5 + $0x554] ss:$24 sps:$4 sm:$0xff]  }
 0x4f8   : > { %v8977_v16 = vpop.f32.mrf.mxu0  ;;  %9245 = vmatpush2.bf16.msra.mxu1 %v13150_v47  ;;  %v13197_v47 = vld [vmem:[%s18196_s5 + $0xa64] ss:$24 sps:$4 sm:$0xff]   ;;  %v13200_v24 = vld [vmem:[%s18196_s5 + $0x734] ss:$24 sps:$4 sm:$0xff]  }
 0x4f9   : > { %9286 = vmatpush2.bf16.msra.mxu0 %v13153_v56  ;;  %9246 = vmatprep.subr.bf16.mxu1 %v13158_v33  ;;  %v13192_v56 = vld [vmem:[%s18196_s5 + $0x760] ss:$24 sps:$4 sm:$0xff]   ;;  %v13203_v16 = vld [vmem:[%s18196_s5 + $0xa34] ss:$24 sps:$4 sm:$0xff]  }
 0x4fa   : > { %v8978_v34 = vpop.f32.mrf.mxu0  ;;  %9287 = vmatprep.subr.bf16.mxu0 %v13161_v25  ;;  %v13195_v33 = vld [vmem:[%s18196_s5 + $0xa60] ss:$24 sps:$4 sm:$0xff]  }
 0x4fc   : > { %9247 = vmatpush2.bf16.msra.mxu1 %v13156_v53 }
 0x4fd   : > { %9288 = vmatpush2.bf16.msra.mxu0 %v13159_v59  ;;  %9248 = vmatprep.subr.bf16.mxu1 %v13164_v15  ;;  %v13198_v59 = vld [vmem:[%s18196_s5 + $0x730] ss:$24 sps:$4 sm:$0xff]  }
 0x4fe   : > { %9289 = vmatprep.subr.bf16.mxu0 %v13167_v44  ;;  %v13204_v44 = vld [vmem:[%s18196_s5 + $0x700] ss:$24 sps:$4 sm:$0xff]  }
 0x500   : > { %9249 = vmatpush2.bf16.msra.mxu1 %v13162_v35 }
 0x501   : > { %9290 = vmatpush2.bf16.msra.mxu0 %v13165_v36  ;;  %9250 = vmatprep.subr.bf16.mxu1 %v13170_v13  ;;  %v13215_v36 = vld [vmem:[%s18196_s5 + $0x9d4] ss:$24 sps:$4 sm:$0xff]   ;;  %v13210_v13 = vld [vmem:[%s18196_s5 + $0x6d0] ss:$24 sps:$4 sm:$0xff]  }
 0x502   : > { %9291 = vmatprep.subr.bf16.mxu0 %v13173_v22  ;;  %v13213_v22 = vld [vmem:[%s18196_s5 + $0x9d0] ss:$24 sps:$4 sm:$0xff]  }
 0x504   : > { %9251 = vmatpush2.bf16.msra.mxu1 %v13168_v46  ;;  %v13218_v46 = vld [vmem:[%s18196_s5 + $0x6a4] ss:$24 sps:$4 sm:$0xff]  }
 0x505   : > { %9292 = vmatpush2.bf16.msra.mxu0 %v13171_v42  ;;  %9252 = vmatprep.subr.bf16.mxu1 %v13176_v48  ;;  %v13221_v42 = vld [vmem:[%s18196_s5 + $0x9a4] ss:$24 sps:$4 sm:$0xff]   ;;  %v13216_v48 = vld [vmem:[%s18196_s5 + $0x6a0] ss:$24 sps:$4 sm:$0xff]  }
 0x506   : > { %9293 = vmatprep.subr.bf16.mxu0 %v13179_v50  ;;  %v13219_v50 = vld [vmem:[%s18196_s5 + $0x9a0] ss:$24 sps:$4 sm:$0xff]  }
 0x508   : > { %9253 = vmatpush2.bf16.msra.mxu1 %v13174_v2  ;;  %v13224_v2 = vld [vmem:[%s18196_s5 + $0x674] ss:$24 sps:$4 sm:$0xff]  }
 0x509   : > { %9294 = vmatpush2.bf16.msra.mxu0 %v13177_v54  ;;  %9254 = vmatprep.subr.bf16.mxu1 %v13182_v9  ;;  %v13227_v54 = vld [vmem:[%s18196_s5 + $0x974] ss:$24 sps:$4 sm:$0xff]   ;;  %v13222_v9 = vld [vmem:[%s18196_s5 + $0x670] ss:$24 sps:$4 sm:$0xff]  }
 0x50a   : > { %9295 = vmatprep.subr.bf16.mxu0 %v13185_v3  ;;  %v13225_v3 = vld [vmem:[%s18196_s5 + $0x970] ss:$24 sps:$4 sm:$0xff]  }
 0x50c   : > { %9255 = vmatpush2.bf16.msra.mxu1 %v13180_v60  ;;  %v13230_v60 = vld [vmem:[%s18196_s5 + $0x644] ss:$24 sps:$4 sm:$0xff]  }
 0x50d   : > { %9296 = vmatpush2.bf16.msra.mxu0 %v13183_v17  ;;  %9256 = vmatprep.subr.bf16.mxu1 %v13188_v63  ;;  %v13233_v17 = vld [vmem:[%s18196_s5 + $0x944] ss:$24 sps:$4 sm:$0xff]   ;;  %v13228_v63 = vld [vmem:[%s18196_s5 + $0x640] ss:$24 sps:$4 sm:$0xff]  }
 0x50e   : > { %9297 = vmatprep.subr.bf16.mxu0 %v13191_v4  ;;  %v13231_v4 = vld [vmem:[%s18196_s5 + $0x940] ss:$24 sps:$4 sm:$0xff]  }
 0x510   : > { %9257 = vmatpush2.bf16.msra.mxu1 %v13186_v62  ;;  %v13236_v62 = vld [vmem:[%s18196_s5 + $0x614] ss:$24 sps:$4 sm:$0xff]  }
 0x511   : > { %9298 = vmatpush2.bf16.msra.mxu0 %v13189_v55  ;;  %9308 = vmatprep.subr.bf16.mxu1 %v13194_v21  ;;  %v13239_v55 = vld [vmem:[%s18196_s5 + $0x914] ss:$24 sps:$4 sm:$0xff]   ;;  %v13234_v21 = vld [vmem:[%s18196_s5 + $0x610] ss:$24 sps:$4 sm:$0xff]  }
 0x512   : > { %9349 = vmatprep.subr.bf16.mxu0 %v13197_v47  ;;  %v13237_v47 = vld [vmem:[%s18196_s5 + $0x910] ss:$24 sps:$4 sm:$0xff]  }
 0x513   : > { %v9014_v25 = vpop.f32.mrf.mxu1  ;;  %9259 = vmatmul.mubr.bf16.vlgmr.msra.gmra.mxu1 %v14266_v57  ;;  %v13201_v57 = vld [vmem:[%s18196_s5 + $0xa30] ss:$24 sps:$4 sm:$0xff]  }
 0x514   : > { %v16906_v53 = vadd.f32 %v9014_v25, %v16806_v23  ;;  %9300 = vmatmul.mubr.bf16.vlgmr.msra.gmra.mxu0 %v14268_v58  ;;  %9309 = vmatpush1.bf16.msra.mxu1 %v13192_v56  ;;  %v13206_v23 = vld [vmem:[%s18196_s5 + $0x704] ss:$24 sps:$4 sm:$0xff]   ;;  %v13243_v25 = vld [vmem:[%s18196_s5 + $0xbe0] ss:$24 sps:$4 sm:$0xff]  }
 0x515   : > { %9340 = vmatprep.mubr.bf16.mxu1 %v14288_v0  ;;  %9350 = vmatpush1.bf16.msra.mxu0 %v13195_v33  ;;  %v9016_v15 = vpop.f32.mrf.mxu1  ;;  %v13209_v0 = vld [vmem:[%s18196_s5 + $0xa04] ss:$24 sps:$4 sm:$0xff]  }
 0x516   : > { %9381 = vmatprep.mubr.bf16.mxu0 %v14290_v1  ;;  %v16921_v58 = vadd.f32 %v9016_v15, %v16818_v26  ;;  %9310 = vmatprep.subr.bf16.mxu1 %v13200_v24  ;;  %v13207_v1 = vld [vmem:[%s18196_s5 + $0xa00] ss:$24 sps:$4 sm:$0xff]   ;;  %v13212_v26 = vld [vmem:[%s18196_s5 + $0x6d4] ss:$24 sps:$4 sm:$0xff]   ;;  %v13242_v56 = vld [vmem:[%s18196_s5 + $0x8e4] ss:$24 sps:$4 sm:$0xff]  }
 0x517   : > { %v9018_v34 = vpop.f32.mrf.mxu1  ;;  %9351 = vmatprep.subr.bf16.mxu0 %v13203_v16  ;;  %v13245_v33 = vld [vmem:[%s18196_s5 + $0xbe4] ss:$24 sps:$4 sm:$0xff]   ;;  %v13240_v24 = vld [vmem:[%s18196_s5 + $0x8e0] ss:$24 sps:$4 sm:$0xff]   ;;  %v13248_v16 = vld [vmem:[%s18196_s5 + $0x8b4] ss:$24 sps:$4 sm:$0xff]  }
 0x518   : > { %9311 = vmatpush1.bf16.msra.mxu1 %v13198_v59  ;;  %v13251_v59 = vld [vmem:[%s18196_s5 + $0xbb4] ss:$24 sps:$4 sm:$0xff]   ;;  %v13254_v34 = vld [vmem:[%s18196_s5 + $0x884] ss:$24 sps:$4 sm:$0xff]  }
 0x519   : > { %9352 = vmatpush1.bf16.msra.mxu0 %v13201_v57  ;;  %v9019_v35 = vpop.f32.mrf.mxu1  ;;  %9312 = vmatprep.subr.bf16.mxu1 %v13206_v23  ;;  %v13246_v57 = vld [vmem:[%s18196_s5 + $0x8b0] ss:$24 sps:$4 sm:$0xff]  }
 0x51a   : > { %9353 = vmatprep.subr.bf16.mxu0 %v13209_v0  ;;  %v13249_v0 = vld [vmem:[%s18196_s5 + $0xbb0] ss:$24 sps:$4 sm:$0xff]   ;;  %v13257_v35 = vld [vmem:[%s18196_s5 + $0xb84] ss:$24 sps:$4 sm:$0xff]  }
 0x51c   : > { %9313 = vmatpush1.bf16.msra.mxu1 %v13204_v44 }
 0x51d   : > { %9354 = vmatpush1.bf16.msra.mxu0 %v13207_v1  ;;  %9314 = vmatprep.subr.bf16.mxu1 %v13212_v26  ;;  %v13252_v26 = vld [vmem:[%s18196_s5 + $0x880] ss:$24 sps:$4 sm:$0xff]  }
 0x51e   : > { %9355 = vmatprep.subr.bf16.mxu0 %v13215_v36  ;;  %v13255_v36 = vld [vmem:[%s18196_s5 + $0xb80] ss:$24 sps:$4 sm:$0xff]  }
 0x520   : > { %9315 = vmatpush1.bf16.msra.mxu1 %v13210_v13  ;;  %v13260_v13 = vld [vmem:[%s18196_s5 + $0x854] ss:$24 sps:$4 sm:$0xff]  }
 0x521   : > { %9356 = vmatpush1.bf16.msra.mxu0 %v13213_v22  ;;  %9316 = vmatprep.subr.bf16.mxu1 %v13218_v46  ;;  %v13258_v46 = vld [vmem:[%s18196_s5 + $0x850] ss:$24 sps:$4 sm:$0xff]  }
 0x522   : > { %9357 = vmatprep.subr.bf16.mxu0 %v13221_v42  ;;  %v13261_v42 = vld [vmem:[%s18196_s5 + $0xb50] ss:$24 sps:$4 sm:$0xff]  }
 0x524   : > { %9317 = vmatpush1.bf16.msra.mxu1 %v13216_v48  ;;  %v13266_v48 = vld [vmem:[%s18196_s5 + $0x824] ss:$24 sps:$4 sm:$0xff]  }
 0x525   : > { %9358 = vmatpush1.bf16.msra.mxu0 %v13219_v50  ;;  %9318 = vmatprep.subr.bf16.mxu1 %v13224_v2  ;;  %v13269_v50 = vld [vmem:[%s18196_s5 + $0xb24] ss:$24 sps:$4 sm:$0xff]   ;;  %v13264_v2 = vld [vmem:[%s18196_s5 + $0x820] ss:$24 sps:$4 sm:$0xff]  }
 0x526   : > { %9359 = vmatprep.subr.bf16.mxu0 %v13227_v54  ;;  %v13267_v54 = vld [vmem:[%s18196_s5 + $0xb20] ss:$24 sps:$4 sm:$0xff]  }
 0x528   : > { %9319 = vmatpush1.bf16.msra.mxu1 %v13222_v9  ;;  %v13272_v9 = vld [vmem:[%s18196_s5 + $0x7f4] ss:$24 sps:$4 sm:$0xff]  }
 0x529   : > { %9360 = vmatpush1.bf16.msra.mxu0 %v13225_v3  ;;  %9320 = vmatprep.subr.bf16.mxu1 %v13230_v60  ;;  %v13275_v3 = vld [vmem:[%s18196_s5 + $0xaf4] ss:$24 sps:$4 sm:$0xff]   ;;  %v13270_v60 = vld [vmem:[%s18196_s5 + $0x7f0] ss:$24 sps:$4 sm:$0xff]  }
 0x52a   : > { %9361 = vmatprep.subr.bf16.mxu0 %v13233_v17  ;;  %v13273_v17 = vld [vmem:[%s18196_s5 + $0xaf0] ss:$24 sps:$4 sm:$0xff]  }
 0x52c   : > { %9321 = vmatpush1.bf16.msra.mxu1 %v13228_v63  ;;  %v13278_v63 = vld [vmem:[%s18196_s5 + $0x7c4] ss:$24 sps:$4 sm:$0xff]  }
 0x52d   : > { %9362 = vmatpush1.bf16.msra.mxu0 %v13231_v4  ;;  %9322 = vmatprep.subr.bf16.mxu1 %v13236_v62  ;;  %v13281_v4 = vld [vmem:[%s18196_s5 + $0xac4] ss:$24 sps:$4 sm:$0xff]   ;;  %v13276_v62 = vld [vmem:[%s18196_s5 + $0x7c0] ss:$24 sps:$4 sm:$0xff]  }
 0x52e   : > { %9363 = vmatprep.subr.bf16.mxu0 %v13239_v55  ;;  %v13279_v55 = vld [vmem:[%s18196_s5 + $0xac0] ss:$24 sps:$4 sm:$0xff]  }
 0x530   : > { %9323 = vmatpush1.bf16.msra.mxu1 %v13234_v21  ;;  %v13284_v21 = vld [vmem:[%s18196_s5 + $0x794] ss:$24 sps:$4 sm:$0xff]  }
 0x531   : > { %9364 = vmatpush1.bf16.msra.mxu0 %v13237_v47  ;;  %9324 = vmatprep.subr.bf16.mxu1 %v13242_v56  ;;  %v13287_v47 = vld [vmem:[%s18196_s5 + $0xa94] ss:$24 sps:$4 sm:$0xff]   ;;  %v13282_v56 = vld [vmem:[%s18196_s5 + $0x790] ss:$24 sps:$4 sm:$0xff]  }
 0x532   : > { %9365 = vmatprep.subr.bf16.mxu0 %v13245_v33  ;;  %v13285_v33 = vld [vmem:[%s18196_s5 + $0xa90] ss:$24 sps:$4 sm:$0xff]  }
 0x534   : > { %v9055_v15 = vpop.f32.mrf.mxu0  ;;  %9325 = vmatpush2.bf16.msra.mxu1 %v13240_v24  ;;  %v13290_v24 = vld [vmem:[%s18196_s5 + $0xd64] ss:$24 sps:$4 sm:$0xff]  }
 0x535   : > { %v17014_v23 = vadd.f32 %v9055_v15, %v16906_v53  ;;  %9366 = vmatpush2.bf16.msra.mxu0 %v13243_v25  ;;  %9326 = vmatprep.subr.bf16.mxu1 %v13248_v16  ;;  %v13293_v25 = vld [vmem:[%s18196_s5 + $0x1064] ss:$24 sps:$4 sm:$0xff]   ;;  %v13288_v16 = vld [vmem:[%s18196_s5 + $0xd60] ss:$24 sps:$4 sm:$0xff]   ;;  %v13296_v15 = vld [vmem:[%s18196_s5 + $0xd34] ss:$24 sps:$4 sm:$0xff]  }
 0x536   : > { %v9057_v44 = vpop.f32.mrf.mxu0  ;;  %9367 = vmatprep.subr.bf16.mxu0 %v13251_v59  ;;  %v13291_v59 = vld [vmem:[%s18196_s5 + $0x1060] ss:$24 sps:$4 sm:$0xff]  }
 0x537   : > { %v17026_v1 = vadd.f32 %v9057_v44, %v16921_v58  ;;  %v13263_v58 = vld [vmem:[%s18196_s5 + $0xb54] ss:$24 sps:$4 sm:$0xff]   ;;  %v13294_v44 = vld [vmem:[%s18196_s5 + $0xd30] ss:$24 sps:$4 sm:$0xff]  }
 0x538   : > { %v9059_v53 = vpop.f32.mrf.mxu0  ;;  %9327 = vmatpush2.bf16.msra.mxu1 %v13246_v57 }
 0x539   : > { %9368 = vmatpush2.bf16.msra.mxu0 %v13249_v0  ;;  %9328 = vmatprep.subr.bf16.mxu1 %v13254_v34  ;;  %v13299_v0 = vld [vmem:[%s18196_s5 + $0x1034] ss:$24 sps:$4 sm:$0xff]  }
 0x53a   : > { %v9060_v22 = vpop.f32.mrf.mxu0  ;;  %9369 = vmatprep.subr.bf16.mxu0 %v13257_v35 }
 0x53b   : > { %v13306_v22 = vld [vmem:[%s18196_s5 + $0xcd0] ss:$24 sps:$4 sm:$0xff]  }
 0x53c   : > { %9329 = vmatpush2.bf16.msra.mxu1 %v13252_v26  ;;  %v13300_v26 = vld [vmem:[%s18196_s5 + $0xd00] ss:$24 sps:$4 sm:$0xff]  }
 0x53d   : > { %9370 = vmatpush2.bf16.msra.mxu0 %v13255_v36  ;;  %9330 = vmatprep.subr.bf16.mxu1 %v13260_v13  ;;  %v13311_v13 = vld [vmem:[%s18196_s5 + $0xfd4] ss:$24 sps:$4 sm:$0xff]  }
 0x53e   : > { %9371 = vmatprep.subr.bf16.mxu0 %v13263_v58  ;;  %v13309_v58 = vld [vmem:[%s18196_s5 + $0xfd0] ss:$24 sps:$4 sm:$0xff]  }
 0x540   : > { %9331 = vmatpush2.bf16.msra.mxu1 %v13258_v46  ;;  %v13314_v46 = vld [vmem:[%s18196_s5 + $0xca4] ss:$24 sps:$4 sm:$0xff]  }
 0x541   : > { %9372 = vmatpush2.bf16.msra.mxu0 %v13261_v42  ;;  %9332 = vmatprep.subr.bf16.mxu1 %v13266_v48  ;;  %v13317_v42 = vld [vmem:[%s18196_s5 + $0xfa4] ss:$24 sps:$4 sm:$0xff]   ;;  %v13312_v48 = vld [vmem:[%s18196_s5 + $0xca0] ss:$24 sps:$4 sm:$0xff]  }
 0x542   : > { %9373 = vmatprep.subr.bf16.mxu0 %v13269_v50  ;;  %v13315_v50 = vld [vmem:[%s18196_s5 + $0xfa0] ss:$24 sps:$4 sm:$0xff]  }
 0x544   : > { %9333 = vmatpush2.bf16.msra.mxu1 %v13264_v2  ;;  %v13320_v2 = vld [vmem:[%s18196_s5 + $0xc74] ss:$24 sps:$4 sm:$0xff]  }
 0x545   : > { %9374 = vmatpush2.bf16.msra.mxu0 %v13267_v54  ;;  %9334 = vmatprep.subr.bf16.mxu1 %v13272_v9  ;;  %v13323_v54 = vld [vmem:[%s18196_s5 + $0xf74] ss:$24 sps:$4 sm:$0xff]   ;;  %v13318_v9 = vld [vmem:[%s18196_s5 + $0xc70] ss:$24 sps:$4 sm:$0xff]  }
 0x546   : > { %9375 = vmatprep.subr.bf16.mxu0 %v13275_v3  ;;  %v13321_v3 = vld [vmem:[%s18196_s5 + $0xf70] ss:$24 sps:$4 sm:$0xff]  }
 0x548   : > { %9335 = vmatpush2.bf16.msra.mxu1 %v13270_v60  ;;  %v13326_v60 = vld [vmem:[%s18196_s5 + $0xc44] ss:$24 sps:$4 sm:$0xff]  }
 0x549   : > { %9376 = vmatpush2.bf16.msra.mxu0 %v13273_v17  ;;  %9336 = vmatprep.subr.bf16.mxu1 %v13278_v63  ;;  %v13329_v17 = vld [vmem:[%s18196_s5 + $0xf44] ss:$24 sps:$4 sm:$0xff]   ;;  %v13324_v63 = vld [vmem:[%s18196_s5 + $0xc40] ss:$24 sps:$4 sm:$0xff]  }
 0x54a   : > { %9377 = vmatprep.subr.bf16.mxu0 %v13281_v4  ;;  %v13327_v4 = vld [vmem:[%s18196_s5 + $0xf40] ss:$24 sps:$4 sm:$0xff]  }
 0x54c   : > { %9337 = vmatpush2.bf16.msra.mxu1 %v13276_v62  ;;  %v13332_v62 = vld [vmem:[%s18196_s5 + $0xc14] ss:$24 sps:$4 sm:$0xff]  }
 0x54d   : > { %9378 = vmatpush2.bf16.msra.mxu0 %v13279_v55  ;;  %9338 = vmatprep.subr.bf16.mxu1 %v13284_v21  ;;  %v13335_v55 = vld [vmem:[%s18196_s5 + $0xf14] ss:$24 sps:$4 sm:$0xff]   ;;  %v13330_v21 = vld [vmem:[%s18196_s5 + $0xc10] ss:$24 sps:$4 sm:$0xff]  }
 0x54e   : > { %9379 = vmatprep.subr.bf16.mxu0 %v13287_v47  ;;  %v13333_v47 = vld [vmem:[%s18196_s5 + $0xf10] ss:$24 sps:$4 sm:$0xff]  }
 0x550   : > { %9339 = vmatpush2.bf16.msra.mxu1 %v13282_v56  ;;  %v13338_v56 = vld [vmem:[%s18196_s5 + $0xee4] ss:$24 sps:$4 sm:$0xff]  }
 0x551   : > { %9380 = vmatpush2.bf16.msra.mxu0 %v13285_v33  ;;  %9390 = vmatprep.subr.bf16.mxu1 %v13290_v24  ;;  %v13341_v33 = vld [vmem:[%s18196_s5 + $0x11e4] ss:$24 sps:$4 sm:$0xff]   ;;  %v13336_v24 = vld [vmem:[%s18196_s5 + $0xee0] ss:$24 sps:$4 sm:$0xff]  }
 0x552   : > { %9431 = vmatprep.subr.bf16.mxu0 %v13293_v25  ;;  %v13339_v25 = vld [vmem:[%s18196_s5 + $0x11e0] ss:$24 sps:$4 sm:$0xff]  }
 0x553   : > { %v9096_v57 = vpop.f32.mrf.mxu1  ;;  %9341 = vmatmul.mubr.bf16.vlgmr.msra.gmra.mxu1 %v14499_v28  ;;  %v13297_v28 = vld [vmem:[%s18196_s5 + $0x1030] ss:$24 sps:$4 sm:$0xff]  }
 0x554   : > { %v17114_v34 = vadd.f32 %v9096_v57, %v17014_v23  ;;  %9382 = vmatmul.mubr.bf16.vlgmr.msra.gmra.mxu0 %v14503_v29  ;;  %9391 = vmatpush1.bf16.msra.mxu1 %v13288_v16  ;;  %v13302_v23 = vld [vmem:[%s18196_s5 + $0xd04] ss:$24 sps:$4 sm:$0xff]   ;;  %v13344_v16 = vld [vmem:[%s18196_s5 + $0xeb4] ss:$24 sps:$4 sm:$0xff]   ;;  %v13342_v57 = vld [vmem:[%s18196_s5 + $0xeb0] ss:$24 sps:$4 sm:$0xff]  }
 0x555   : > { %9422 = vmatprep.mubr.bf16.mxu1 %v14505_v30  ;;  %9432 = vmatpush1.bf16.msra.mxu0 %v13291_v59  ;;  %v9098_v35 = vpop.f32.mrf.mxu1  ;;  %v13305_v30 = vld [vmem:[%s18196_s5 + $0x1004] ss:$24 sps:$4 sm:$0xff]   ;;  %v13347_v59 = vld [vmem:[%s18196_s5 + $0x11b4] ss:$24 sps:$4 sm:$0xff]  }
 0x556   : > { %9463 = vmatprep.mubr.bf16.mxu0 %v14509_v31  ;;  %v17129_v29 = vadd.f32 %v9098_v35, %v17026_v1  ;;  %9392 = vmatprep.subr.bf16.mxu1 %v13296_v15  ;;  %v13303_v31 = vld [vmem:[%s18196_s5 + $0x1000] ss:$24 sps:$4 sm:$0xff]   ;;  %v13308_v1 = vld [vmem:[%s18196_s5 + $0xcd4] ss:$24 sps:$4 sm:$0xff]   ;;  %v13350_v35 = vld [vmem:[%s18196_s5 + $0xe84] ss:$24 sps:$4 sm:$0xff]  }
 0x557   : > { %v9100_v53 = vpop.f32.mrf.mxu1  ;;  %9433 = vmatprep.subr.bf16.mxu0 %v13299_v0 }
 0x558   : > { %9393 = vmatpush1.bf16.msra.mxu1 %v13294_v44  ;;  %v13345_v44 = vld [vmem:[%s18196_s5 + $0x11b0] ss:$24 sps:$4 sm:$0xff]   ;;  %v13348_v53 = vld [vmem:[%s18196_s5 + $0xe80] ss:$24 sps:$4 sm:$0xff]  }
 0x559   : > { %9434 = vmatpush1.bf16.msra.mxu0 %v13297_v28  ;;  %v9101_v36 = vpop.f32.mrf.mxu1  ;;  %9394 = vmatprep.subr.bf16.mxu1 %v13302_v23  ;;  %v13353_v23 = vld [vmem:[%s18196_s5 + $0x1184] ss:$24 sps:$4 sm:$0xff]  }
 0x55a   : > { %9435 = vmatprep.subr.bf16.mxu0 %v13305_v30  ;;  %v13356_v36 = vld [vmem:[%s18196_s5 + $0xe54] ss:$24 sps:$4 sm:$0xff]  }
 0x55c   : > { %9395 = vmatpush1.bf16.msra.mxu1 %v13300_v26  ;;  %v13351_v26 = vld [vmem:[%s18196_s5 + $0x1180] ss:$24 sps:$4 sm:$0xff]  }
 0x55d   : > { %9436 = vmatpush1.bf16.msra.mxu0 %v13303_v31  ;;  %9396 = vmatprep.subr.bf16.mxu1 %v13308_v1  ;;  %v13354_v1 = vld [vmem:[%s18196_s5 + $0xe50] ss:$24 sps:$4 sm:$0xff]  }
 0x55e   : > { %9437 = vmatprep.subr.bf16.mxu0 %v13311_v13  ;;  %v13357_v13 = vld [vmem:[%s18196_s5 + $0x1150] ss:$24 sps:$4 sm:$0xff]  }
 0x560   : > { %9397 = vmatpush1.bf16.msra.mxu1 %v13306_v22  ;;  %v13362_v22 = vld [vmem:[%s18196_s5 + $0xe24] ss:$24 sps:$4 sm:$0xff]  }
 0x561   : > { %9438 = vmatpush1.bf16.msra.mxu0 %v13309_v58  ;;  %9398 = vmatprep.subr.bf16.mxu1 %v13314_v46  ;;  %v13365_v58 = vld [vmem:[%s18196_s5 + $0x1124] ss:$24 sps:$4 sm:$0xff]   ;;  %v13360_v46 = vld [vmem:[%s18196_s5 + $0xe20] ss:$24 sps:$4 sm:$0xff]  }
 0x562   : > { %9439 = vmatprep.subr.bf16.mxu0 %v13317_v42  ;;  %v13363_v42 = vld [vmem:[%s18196_s5 + $0x1120] ss:$24 sps:$4 sm:$0xff]  }
 0x564   : > { %9399 = vmatpush1.bf16.msra.mxu1 %v13312_v48  ;;  %v13368_v48 = vld [vmem:[%s18196_s5 + $0xdf4] ss:$24 sps:$4 sm:$0xff]  }
 0x565   : > { %9440 = vmatpush1.bf16.msra.mxu0 %v13315_v50  ;;  %9400 = vmatprep.subr.bf16.mxu1 %v13320_v2  ;;  %v13371_v50 = vld [vmem:[%s18196_s5 + $0x10f4] ss:$24 sps:$4 sm:$0xff]   ;;  %v13366_v2 = vld [vmem:[%s18196_s5 + $0xdf0] ss:$24 sps:$4 sm:$0xff]  }
 0x566   : > { %9441 = vmatprep.subr.bf16.mxu0 %v13323_v54  ;;  %v13369_v54 = vld [vmem:[%s18196_s5 + $0x10f0] ss:$24 sps:$4 sm:$0xff]  }
 0x568   : > { %9401 = vmatpush1.bf16.msra.mxu1 %v13318_v9  ;;  %v13374_v9 = vld [vmem:[%s18196_s5 + $0xdc4] ss:$24 sps:$4 sm:$0xff]  }
 0x569   : > { %9442 = vmatpush1.bf16.msra.mxu0 %v13321_v3  ;;  %9402 = vmatprep.subr.bf16.mxu1 %v13326_v60  ;;  %v13377_v3 = vld [vmem:[%s18196_s5 + $0x10c4] ss:$24 sps:$4 sm:$0xff]   ;;  %v13372_v60 = vld [vmem:[%s18196_s5 + $0xdc0] ss:$24 sps:$4 sm:$0xff]  }
 0x56a   : > { %9443 = vmatprep.subr.bf16.mxu0 %v13329_v17  ;;  %v13375_v17 = vld [vmem:[%s18196_s5 + $0x10c0] ss:$24 sps:$4 sm:$0xff]  }
 0x56c   : > { %9403 = vmatpush1.bf16.msra.mxu1 %v13324_v63  ;;  %v13380_v63 = vld [vmem:[%s18196_s5 + $0xd94] ss:$24 sps:$4 sm:$0xff]  }
 0x56d   : > { %9444 = vmatpush1.bf16.msra.mxu0 %v13327_v4  ;;  %9404 = vmatprep.subr.bf16.mxu1 %v13332_v62  ;;  %v13383_v4 = vld [vmem:[%s18196_s5 + $0x1094] ss:$24 sps:$4 sm:$0xff]   ;;  %v13378_v62 = vld [vmem:[%s18196_s5 + $0xd90] ss:$24 sps:$4 sm:$0xff]  }
 0x56e   : > { %9445 = vmatprep.subr.bf16.mxu0 %v13335_v55  ;;  %v13381_v55 = vld [vmem:[%s18196_s5 + $0x1090] ss:$24 sps:$4 sm:$0xff]  }
 0x570   : > { %9405 = vmatpush1.bf16.msra.mxu1 %v13330_v21  ;;  %v13386_v21 = vld [vmem:[%s18196_s5 + $0x1364] ss:$24 sps:$4 sm:$0xff]  }
 0x571   : > { %9446 = vmatpush1.bf16.msra.mxu0 %v13333_v47  ;;  %9406 = vmatprep.subr.bf16.mxu1 %v13338_v56  ;;  %v13389_v47 = vld [vmem:[%s18196_s5 + $0x1664] ss:$24 sps:$4 sm:$0xff]   ;;  %v13384_v56 = vld [vmem:[%s18196_s5 + $0x1360] ss:$24 sps:$4 sm:$0xff]  }
 0x572   : > { %9447 = vmatprep.subr.bf16.mxu0 %v13341_v33  ;;  %v13387_v33 = vld [vmem:[%s18196_s5 + $0x1660] ss:$24 sps:$4 sm:$0xff]  }
 0x574   : > { %v9137_v15 = vpop.f32.mrf.mxu0  ;;  %9407 = vmatpush2.bf16.msra.mxu1 %v13336_v24  ;;  %v13392_v24 = vld [vmem:[%s18196_s5 + $0x1334] ss:$24 sps:$4 sm:$0xff]  }
 0x575   : > { %v17222_v0 = vadd.f32 %v9137_v15, %v17114_v34  ;;  %9448 = vmatpush2.bf16.msra.mxu0 %v13339_v25  ;;  %9408 = vmatprep.subr.bf16.mxu1 %v13344_v16  ;;  %v13395_v16 = vld [vmem:[%s18196_s5 + $0x1634] ss:$24 sps:$4 sm:$0xff]  }
 0x576   : > { %v9139_v28 = vpop.f32.mrf.mxu0  ;;  %9449 = vmatprep.subr.bf16.mxu0 %v13347_v59 }
 0x577   : > { %v17234_v30 = vadd.f32 %v9139_v28, %v17129_v29  ;;  %v13359_v29 = vld [vmem:[%s18196_s5 + $0x1154] ss:$24 sps:$4 sm:$0xff]  }
 0x578   : > { %v9141_v34 = vpop.f32.mrf.mxu0  ;;  %9409 = vmatpush2.bf16.msra.mxu1 %v13342_v57  ;;  %v13390_v57 = vld [vmem:[%s18196_s5 + $0x1330] ss:$24 sps:$4 sm:$0xff]  }
 0x579   : > { %9450 = vmatpush2.bf16.msra.mxu0 %v13345_v44  ;;  %9410 = vmatprep.subr.bf16.mxu1 %v13350_v35 }
 0x57a   : > { %v9142_v31 = vpop.f32.mrf.mxu0  ;;  %9451 = vmatprep.subr.bf16.mxu0 %v13353_v23 }
 0x57c   : > { %9411 = vmatpush2.bf16.msra.mxu1 %v13348_v53 }
 0x57d   : > { %9452 = vmatpush2.bf16.msra.mxu0 %v13351_v26  ;;  %9412 = vmatprep.subr.bf16.mxu1 %v13356_v36  ;;  %v13396_v26 = vld [vmem:[%s18196_s5 + $0x1300] ss:$24 sps:$4 sm:$0xff]   ;;  %v13404_v36 = vld [vmem:[%s18196_s5 + $0x12d4] ss:$24 sps:$4 sm:$0xff]  }
 0x57e   : > { %9453 = vmatprep.subr.bf16.mxu0 %v13359_v29  ;;  %v13407_v29 = vld [vmem:[%s18196_s5 + $0x15d4] ss:$24 sps:$4 sm:$0xff]  }
 0x580   : > { %9413 = vmatpush2.bf16.msra.mxu1 %v13354_v1  ;;  %v13402_v1 = vld [vmem:[%s18196_s5 + $0x12d0] ss:$24 sps:$4 sm:$0xff]  }
 0x581   : > { %9454 = vmatpush2.bf16.msra.mxu0 %v13357_v13  ;;  %9414 = vmatprep.subr.bf16.mxu1 %v13362_v22  ;;  %v13405_v13 = vld [vmem:[%s18196_s5 + $0x15d0] ss:$24 sps:$4 sm:$0xff]   ;;  %v13410_v22 = vld [vmem:[%s18196_s5 + $0x12a4] ss:$24 sps:$4 sm:$0xff]  }
 0x582   : > { %9455 = vmatprep.subr.bf16.mxu0 %v13365_v58  ;;  %v13413_v58 = vld [vmem:[%s18196_s5 + $0x15a4] ss:$24 sps:$4 sm:$0xff]  }
 0x584   : > { %9415 = vmatpush2.bf16.msra.mxu1 %v13360_v46  ;;  %v13408_v46 = vld [vmem:[%s18196_s5 + $0x12a0] ss:$24 sps:$4 sm:$0xff]  }
 0x585   : > { %9456 = vmatpush2.bf16.msra.mxu0 %v13363_v42  ;;  %9416 = vmatprep.subr.bf16.mxu1 %v13368_v48  ;;  %v13411_v42 = vld [vmem:[%s18196_s5 + $0x15a0] ss:$24 sps:$4 sm:$0xff]   ;;  %v13416_v48 = vld [vmem:[%s18196_s5 + $0x1274] ss:$24 sps:$4 sm:$0xff]  }
 0x586   : > { %9457 = vmatprep.subr.bf16.mxu0 %v13371_v50  ;;  %v13419_v50 = vld [vmem:[%s18196_s5 + $0x1574] ss:$24 sps:$4 sm:$0xff]  }
 0x588   : > { %9417 = vmatpush2.bf16.msra.mxu1 %v13366_v2  ;;  %v13414_v2 = vld [vmem:[%s18196_s5 + $0x1270] ss:$24 sps:$4 sm:$0xff]  }
 0x589   : > { %9458 = vmatpush2.bf16.msra.mxu0 %v13369_v54  ;;  %9418 = vmatprep.subr.bf16.mxu1 %v13374_v9  ;;  %v13417_v54 = vld [vmem:[%s18196_s5 + $0x1570] ss:$24 sps:$4 sm:$0xff]   ;;  %v13422_v9 = vld [vmem:[%s18196_s5 + $0x1244] ss:$24 sps:$4 sm:$0xff]  }
 0x58a   : > { %9459 = vmatprep.subr.bf16.mxu0 %v13377_v3  ;;  %v13425_v3 = vld [vmem:[%s18196_s5 + $0x1544] ss:$24 sps:$4 sm:$0xff]  }
 0x58c   : > { %9419 = vmatpush2.bf16.msra.mxu1 %v13372_v60  ;;  %v13420_v60 = vld [vmem:[%s18196_s5 + $0x1240] ss:$24 sps:$4 sm:$0xff]  }
 0x58d   : > { %9460 = vmatpush2.bf16.msra.mxu0 %v13375_v17  ;;  %9420 = vmatprep.subr.bf16.mxu1 %v13380_v63  ;;  %v13423_v17 = vld [vmem:[%s18196_s5 + $0x1540] ss:$24 sps:$4 sm:$0xff]   ;;  %v13428_v63 = vld [vmem:[%s18196_s5 + $0x1214] ss:$24 sps:$4 sm:$0xff]  }
 0x58e   : > { %9461 = vmatprep.subr.bf16.mxu0 %v13383_v4  ;;  %v13431_v4 = vld [vmem:[%s18196_s5 + $0x1514] ss:$24 sps:$4 sm:$0xff]  }
 0x590   : > { %9421 = vmatpush2.bf16.msra.mxu1 %v13378_v62  ;;  %v13426_v62 = vld [vmem:[%s18196_s5 + $0x1210] ss:$24 sps:$4 sm:$0xff]  }
 0x591   : > { %9462 = vmatpush2.bf16.msra.mxu0 %v13381_v55  ;;  %9472 = vmatprep.subr.bf16.mxu1 %v13386_v21  ;;  %v13429_v55 = vld [vmem:[%s18196_s5 + $0x1510] ss:$24 sps:$4 sm:$0xff]   ;;  %v13434_v21 = vld [vmem:[%s18196_s5 + $0x14e4] ss:$24 sps:$4 sm:$0xff]  }
 0x592   : > { %9513 = vmatprep.subr.bf16.mxu0 %v13389_v47  ;;  %v13437_v47 = vld [vmem:[%s18196_s5 + $0x17e4] ss:$24 sps:$4 sm:$0xff]  }
 0x593   : > { %v9178_v25 = vpop.f32.mrf.mxu1  ;;  %9423 = vmatmul.mubr.bf16.vlgmr.msra.gmra.mxu1 %v14702_v5  ;;  %v13393_v5 = vld [vmem:[%s18196_s5 + $0x1630] ss:$24 sps:$4 sm:$0xff]  }
 0x594   : > { %v9179_v59 = vadd.f32 %v9178_v25, %v17222_v0  ;;  %v9219_v15 = vpop.f32.mrf.mxu0  ;;  %9464 = vmatmul.mubr.bf16.vlgmr.msra.gmra.mxu0 %v14707_v8  ;;  %9473 = vmatpush1.bf16.msra.mxu1 %v13384_v56  ;;  %v13398_v0 = vld [vmem:[%s18196_s5 + $0x1304] ss:$24 sps:$4 sm:$0xff]   ;;  %v13432_v56 = vld [vmem:[%s18196_s5 + $0x14e0] ss:$24 sps:$4 sm:$0xff]   ;;  %v13443_v25 = vld [vmem:[%s18196_s5 + $0x17b4] ss:$24 sps:$4 sm:$0xff]  }
 0x595   : > { %9504 = vmatprep.mubr.bf16.mxu1 %v14713_v11  ;;  %9514 = vmatpush1.bf16.msra.mxu0 %v13387_v33  ;;  %v9180_v44 = vpop.f32.mrf.mxu1  ;;  %v13401_v11 = vld [vmem:[%s18196_s5 + $0x1604] ss:$24 sps:$4 sm:$0xff]   ;;  %v13435_v33 = vld [vmem:[%s18196_s5 + $0x17e0] ss:$24 sps:$4 sm:$0xff]  }
 0x596   : > { %v17333_v35 = vadd.f32 %v9219_v15, %v9179_v59  ;;  %9545 = vmatprep.mubr.bf16.mxu0 %v14721_v14  ;;  %v9181_v8 = vadd.f32 %v9180_v44, %v17234_v30  ;;  %v9221_v28 = vpop.f32.mrf.mxu0  ;;  %9474 = vmatprep.subr.bf16.mxu1 %v13392_v24  ;;  %v13399_v30 = vld [vmem:[%s18196_s5 + $0x1600] ss:$24 sps:$4 sm:$0xff]   ;;  %v13440_v24 = vld [vmem:[%s18196_s5 + $0x14b4] ss:$24 sps:$4 sm:$0xff]   ;;  %v13441_v59 = vld [vmem:[%s18196_s5 + $0x17b0] ss:$24 sps:$4 sm:$0xff]  }
 0x597   : > { %v9182_v23 = vpop.f32.mrf.mxu1  ;;  %9515 = vmatprep.subr.bf16.mxu0 %v13395_v16  ;;  %v13438_v16 = vld [vmem:[%s18196_s5 + $0x14b0] ss:$24 sps:$4 sm:$0xff]   ;;  %v13446_v15 = vld [vmem:[%s18196_s5 + $0x1484] ss:$24 sps:$4 sm:$0xff]   ;;  %v13444_v44 = vld [vmem:[%s18196_s5 + $0x1480] ss:$24 sps:$4 sm:$0xff]  }
 0x598   : > { %v17340_v34 = vadd.f32 %v9221_v28, %v9181_v8  ;;  %v9223_v53 = vpop.f32.mrf.mxu0  ;;  %9475 = vmatpush1.bf16.msra.mxu1 %v13390_v57  ;;  %v13449_v57 = vld [vmem:[%s18196_s5 + $0x1784] ss:$24 sps:$4 sm:$0xff]   ;;  %v13455_v8 = vld [vmem:[%s18196_s5 + $0x1754] ss:$24 sps:$4 sm:$0xff]   ;;  %v13450_v28 = vld [vmem:[%s18196_s5 + $0x1450] ss:$24 sps:$4 sm:$0xff]  }
 0x599   : > { %9516 = vmatpush1.bf16.msra.mxu0 %v13393_v5  ;;  %v9183_v14 = vpop.f32.mrf.mxu1  ;;  %9476 = vmatprep.subr.bf16.mxu1 %v13398_v0  ;;  %v13447_v5 = vld [vmem:[%s18196_s5 + $0x1780] ss:$24 sps:$4 sm:$0xff]   ;;  %v13452_v0 = vld [vmem:[%s18196_s5 + $0x1454] ss:$24 sps:$4 sm:$0xff]   ;;  %v13458_v23 = vld [vmem:[%s18196_s5 + $0x1424] ss:$24 sps:$4 sm:$0xff]  }
 0x59a   : > { %v9224_v31 = vpop.f32.mrf.mxu0  ;;  %9517 = vmatprep.subr.bf16.mxu0 %v13401_v11  ;;  %v13453_v11 = vld [vmem:[%s18196_s5 + $0x1750] ss:$24 sps:$4 sm:$0xff]   ;;  %v13461_v53 = vld [vmem:[%s18196_s5 + $0x1724] ss:$24 sps:$4 sm:$0xff]   ;;  %v13459_v14 = vld [vmem:[%s18196_s5 + $0x1720] ss:$24 sps:$4 sm:$0xff]  }
 0x59b   : > { %v13462_v31 = vld [vmem:[%s18196_s5 + $0x13f0] ss:$24 sps:$4 sm:$0xff]  }
 0x59c   : > { %9477 = vmatpush1.bf16.msra.mxu1 %v13396_v26  ;;  %v13456_v26 = vld [vmem:[%s18196_s5 + $0x1420] ss:$24 sps:$4 sm:$0xff]  }
 0x59d   : > { %9518 = vmatpush1.bf16.msra.mxu0 %v13399_v30  ;;  %9478 = vmatprep.subr.bf16.mxu1 %v13404_v36  ;;  %v13464_v30 = vld [vmem:[%s18196_s5 + $0x13f4] ss:$24 sps:$4 sm:$0xff]  }
 0x59e   : > { %9519 = vmatprep.subr.bf16.mxu0 %v13407_v29  ;;  %v13467_v36 = vld [vmem:[%s18196_s5 + $0x16f4] ss:$24 sps:$4 sm:$0xff]   ;;  %v13465_v29 = vld [vmem:[%s18196_s5 + $0x16f0] ss:$24 sps:$4 sm:$0xff]  }
 0x5a0   : > { %9479 = vmatpush1.bf16.msra.mxu1 %v13402_v1  ;;  %v13470_v1 = vld [vmem:[%s18196_s5 + $0x13c4] ss:$24 sps:$4 sm:$0xff]  }
 0x5a1   : > { %9520 = vmatpush1.bf16.msra.mxu0 %v13405_v13  ;;  %9480 = vmatprep.subr.bf16.mxu1 %v13410_v22  ;;  %v13473_v13 = vld [vmem:[%s18196_s5 + $0x16c4] ss:$24 sps:$4 sm:$0xff]   ;;  %v13468_v22 = vld [vmem:[%s18196_s5 + $0x13c0] ss:$24 sps:$4 sm:$0xff]  }
 0x5a2   : > { %9521 = vmatprep.subr.bf16.mxu0 %v13413_v58  ;;  %v13471_v58 = vld [vmem:[%s18196_s5 + $0x16c0] ss:$24 sps:$4 sm:$0xff]  }
 0x5a4   : > { %9481 = vmatpush1.bf16.msra.mxu1 %v13408_v46  ;;  %v13476_v46 = vld [vmem:[%s18196_s5 + $0x1394] ss:$24 sps:$4 sm:$0xff]  }
 0x5a5   : > { %9522 = vmatpush1.bf16.msra.mxu0 %v13411_v42  ;;  %9482 = vmatprep.subr.bf16.mxu1 %v13416_v48  ;;  %v13479_v42 = vld [vmem:[%s18196_s5 + $0x1694] ss:$24 sps:$4 sm:$0xff]   ;;  %v13474_v48 = vld [vmem:[%s18196_s5 + $0x1390] ss:$24 sps:$4 sm:$0xff]  }
 0x5a6   : > { %9523 = vmatprep.subr.bf16.mxu0 %v13419_v50  ;;  %v13477_v50 = vld [vmem:[%s18196_s5 + $0x1690] ss:$24 sps:$4 sm:$0xff]  }
 0x5a8   : > { %9483 = vmatpush1.bf16.msra.mxu1 %v13414_v2  ;;  %v13482_v2 = vld [vmem:[%s18196_s5 + $0x1964] ss:$24 sps:$4 sm:$0xff]  }
 0x5a9   : > { %9524 = vmatpush1.bf16.msra.mxu0 %v13417_v54  ;;  %9484 = vmatprep.subr.bf16.mxu1 %v13422_v9  ;;  %v13485_v54 = vld [vmem:[%s18196_s5 + $0x1c64] ss:$24 sps:$4 sm:$0xff]   ;;  %v13480_v9 = vld [vmem:[%s18196_s5 + $0x1960] ss:$24 sps:$4 sm:$0xff]  }
 0x5aa   : > { %9525 = vmatprep.subr.bf16.mxu0 %v13425_v3  ;;  %v13483_v3 = vld [vmem:[%s18196_s5 + $0x1c60] ss:$24 sps:$4 sm:$0xff]  }
 0x5ac   : > { %9485 = vmatpush1.bf16.msra.mxu1 %v13420_v60  ;;  %v13488_v60 = vld [vmem:[%s18196_s5 + $0x1934] ss:$24 sps:$4 sm:$0xff]  }
 0x5ad   : > { %9526 = vmatpush1.bf16.msra.mxu0 %v13423_v17  ;;  %9486 = vmatprep.subr.bf16.mxu1 %v13428_v63  ;;  %v13491_v63 = vld [vmem:[%s18196_s5 + $0x1c34] ss:$24 sps:$4 sm:$0xff]  }
 0x5ae   : > { %9527 = vmatprep.subr.bf16.mxu0 %v13431_v4 }
 0x5b0   : > { %9487 = vmatpush1.bf16.msra.mxu1 %v13426_v62  ;;  %v13486_v62 = vld [vmem:[%s18196_s5 + $0x1930] ss:$24 sps:$4 sm:$0xff]  }
 0x5b1   : > { %9528 = vmatpush1.bf16.msra.mxu0 %v13429_v55  ;;  %9488 = vmatprep.subr.bf16.mxu1 %v13434_v21 }
 0x5b2   : > { %9529 = vmatprep.subr.bf16.mxu0 %v13437_v47  ;;  %v13494_v47 = vld [vmem:[%s18196_s5 + $0x1904] ss:$24 sps:$4 sm:$0xff]  }
 0x5b4   : > { %9489 = vmatpush2.bf16.msra.mxu1 %v13432_v56  ;;  %v13497_v56 = vld [vmem:[%s18196_s5 + $0x1c04] ss:$24 sps:$4 sm:$0xff]  }
 0x5b5   : > { %9530 = vmatpush2.bf16.msra.mxu0 %v13435_v33  ;;  %9490 = vmatprep.subr.bf16.mxu1 %v13440_v24 }
 0x5b6   : > { %9531 = vmatprep.subr.bf16.mxu0 %v13443_v25  ;;  %v13492_v25 = vld [vmem:[%s18196_s5 + $0x1900] ss:$24 sps:$4 sm:$0xff]  }
 0x5b8   : > { %9491 = vmatpush2.bf16.msra.mxu1 %v13438_v16 }
 0x5b9   : > { %9532 = vmatpush2.bf16.msra.mxu0 %v13441_v59  ;;  %9492 = vmatprep.subr.bf16.mxu1 %v13446_v15  ;;  %v13500_v59 = vld [vmem:[%s18196_s5 + $0x18d4] ss:$24 sps:$4 sm:$0xff]  }
 0x5ba   : > { %9533 = vmatprep.subr.bf16.mxu0 %v13449_v57  ;;  %v13503_v57 = vld [vmem:[%s18196_s5 + $0x1bd4] ss:$24 sps:$4 sm:$0xff]  }
 0x5bc   : > { %9493 = vmatpush2.bf16.msra.mxu1 %v13444_v44  ;;  %v13498_v44 = vld [vmem:[%s18196_s5 + $0x18d0] ss:$24 sps:$4 sm:$0xff]  }
 0x5bd   : > { %9534 = vmatpush2.bf16.msra.mxu0 %v13447_v5  ;;  %9494 = vmatprep.subr.bf16.mxu1 %v13452_v0  ;;  %v13501_v5 = vld [vmem:[%s18196_s5 + $0x1bd0] ss:$24 sps:$4 sm:$0xff]   ;;  %v13506_v0 = vld [vmem:[%s18196_s5 + $0x18a4] ss:$24 sps:$4 sm:$0xff]  }
 0x5be   : > { %9535 = vmatprep.subr.bf16.mxu0 %v13455_v8  ;;  %v13509_v8 = vld [vmem:[%s18196_s5 + $0x1ba4] ss:$24 sps:$4 sm:$0xff]  }
 0x5c0   : > { %9495 = vmatpush2.bf16.msra.mxu1 %v13450_v28  ;;  %v13504_v28 = vld [vmem:[%s18196_s5 + $0x18a0] ss:$24 sps:$4 sm:$0xff]  }
 0x5c1   : > { %9536 = vmatpush2.bf16.msra.mxu0 %v13453_v11  ;;  %9496 = vmatprep.subr.bf16.mxu1 %v13458_v23  ;;  %v13507_v11 = vld [vmem:[%s18196_s5 + $0x1ba0] ss:$24 sps:$4 sm:$0xff]   ;;  %v13512_v23 = vld [vmem:[%s18196_s5 + $0x1874] ss:$24 sps:$4 sm:$0xff]  }
 0x5c2   : > { %9537 = vmatprep.subr.bf16.mxu0 %v13461_v53  ;;  %v13515_v53 = vld [vmem:[%s18196_s5 + $0x1b74] ss:$24 sps:$4 sm:$0xff]  }
 0x5c4   : > { %9497 = vmatpush2.bf16.msra.mxu1 %v13456_v26  ;;  %v13510_v26 = vld [vmem:[%s18196_s5 + $0x1870] ss:$24 sps:$4 sm:$0xff]  }
 0x5c5   : > { %9538 = vmatpush2.bf16.msra.mxu0 %v13459_v14  ;;  %9498 = vmatprep.subr.bf16.mxu1 %v13464_v30  ;;  %v13513_v14 = vld [vmem:[%s18196_s5 + $0x1b70] ss:$24 sps:$4 sm:$0xff]   ;;  %v13518_v30 = vld [vmem:[%s18196_s5 + $0x1844] ss:$24 sps:$4 sm:$0xff]  }
 0x5c6   : > { %9539 = vmatprep.subr.bf16.mxu0 %v13467_v36  ;;  %v13521_v36 = vld [vmem:[%s18196_s5 + $0x1b44] ss:$24 sps:$4 sm:$0xff]  }
 0x5c8   : > { %9499 = vmatpush2.bf16.msra.mxu1 %v13462_v31  ;;  %v13516_v31 = vld [vmem:[%s18196_s5 + $0x1840] ss:$24 sps:$4 sm:$0xff]  }
 0x5c9   : > { %9540 = vmatpush2.bf16.msra.mxu0 %v13465_v29  ;;  %9500 = vmatprep.subr.bf16.mxu1 %v13470_v1  ;;  %v13519_v29 = vld [vmem:[%s18196_s5 + $0x1b40] ss:$24 sps:$4 sm:$0xff]   ;;  %v13524_v1 = vld [vmem:[%s18196_s5 + $0x1814] ss:$24 sps:$4 sm:$0xff]  }
 0x5ca   : > { %9541 = vmatprep.subr.bf16.mxu0 %v13473_v13  ;;  %v13527_v13 = vld [vmem:[%s18196_s5 + $0x1b14] ss:$24 sps:$4 sm:$0xff]  }
 0x5cc   : > { %9501 = vmatpush2.bf16.msra.mxu1 %v13468_v22  ;;  %v13522_v22 = vld [vmem:[%s18196_s5 + $0x1810] ss:$24 sps:$4 sm:$0xff]  }
 0x5cd   : > { %9542 = vmatpush2.bf16.msra.mxu0 %v13471_v58  ;;  %9502 = vmatprep.subr.bf16.mxu1 %v13476_v46  ;;  %v13525_v58 = vld [vmem:[%s18196_s5 + $0x1b10] ss:$24 sps:$4 sm:$0xff]   ;;  %v13530_v46 = vld [vmem:[%s18196_s5 + $0x1ae4] ss:$24 sps:$4 sm:$0xff]  }
 0x5ce   : > { %9543 = vmatprep.subr.bf16.mxu0 %v13479_v42  ;;  %v13533_v42 = vld [vmem:[%s18196_s5 + $0x1de4] ss:$24 sps:$4 sm:$0xff]  }
 0x5d0   : > { %9503 = vmatpush2.bf16.msra.mxu1 %v13474_v48  ;;  %v13528_v48 = vld [vmem:[%s18196_s5 + $0x1ae0] ss:$24 sps:$4 sm:$0xff]  }
 0x5d1   : > { %9544 = vmatpush2.bf16.msra.mxu0 %v13477_v50  ;;  %9554 = vmatprep.subr.bf16.mxu1 %v13482_v2  ;;  %v13531_v50 = vld [vmem:[%s18196_s5 + $0x1de0] ss:$24 sps:$4 sm:$0xff]   ;;  %v13536_v2 = vld [vmem:[%s18196_s5 + $0x1ab4] ss:$24 sps:$4 sm:$0xff]  }
 0x5d2   : > { %9595 = vmatprep.subr.bf16.mxu0 %v13485_v54  ;;  %v13539_v54 = vld [vmem:[%s18196_s5 + $0x1db4] ss:$24 sps:$4 sm:$0xff]  }
 0x5d3   : > { %v9260_v17 = vpop.f32.mrf.mxu1  ;;  %9505 = vmatmul.mubr.bf16.vlgmr.msra.gmra.mxu1 %v14915_v49  ;;  %v13489_v49 = vld [vmem:[%s18196_s5 + $0x1c30] ss:$24 sps:$4 sm:$0xff]  }
 0x5d4   : > { %v9301_v4 = vpop.f32.mrf.mxu0  ;;  %9546 = vmatmul.mubr.bf16.vlgmr.msra.gmra.mxu0 %v14922_v51  ;;  %9555 = vmatpush1.bf16.msra.mxu1 %v13480_v9  ;;  %v13534_v9 = vld [vmem:[%s18196_s5 + $0x1ab0] ss:$24 sps:$4 sm:$0xff]  }
 0x5d5   : > { %v17527_v55 = vadd.f32 %v9301_v4, %v9260_v17  ;;  %9586 = vmatprep.mubr.bf16.mxu1 %v14928_v61  ;;  %9596 = vmatpush1.bf16.msra.mxu0 %v13483_v3  ;;  %v9262_v21 = vpop.f32.mrf.mxu1  ;;  %v13537_v3 = vld [vmem:[%s18196_s5 + $0x1db0] ss:$24 sps:$4 sm:$0xff]   ;;  %v13545_v17 = vld [vmem:[%s18196_s5 + $0x1d84] ss:$24 sps:$4 sm:$0xff]   ;;  %v13543_v4 = vld [vmem:[%s18196_s5 + $0x1d80] ss:$24 sps:$4 sm:$0xff]  }
 0x5d6   : > { %9627 = vmatprep.mubr.bf16.mxu0 %v14936_v7  ;;  %v9303_v51 = vpop.f32.mrf.mxu0  ;;  %9556 = vmatprep.subr.bf16.mxu1 %v13488_v60  ;;  %v13495_v7 = vld [vmem:[%s18196_s5 + $0x1c00] ss:$24 sps:$4 sm:$0xff]   ;;  %v13542_v60 = vld [vmem:[%s18196_s5 + $0x1a84] ss:$24 sps:$4 sm:$0xff]  }
 0x5d7   : > { %v17540_v33 = vadd.f32 %v9303_v51, %v9262_v21  ;;  %v9264_v61 = vpop.f32.mrf.mxu1  ;;  %9597 = vmatprep.subr.bf16.mxu0 %v13491_v63  ;;  %v13540_v63 = vld [vmem:[%s18196_s5 + $0x1a80] ss:$24 sps:$4 sm:$0xff]   ;;  %v13551_v21 = vld [vmem:[%s18196_s5 + $0x1d54] ss:$24 sps:$4 sm:$0xff]   ;;  %v13554_v51 = vld [vmem:[%s18196_s5 + $0x1a24] ss:$24 sps:$4 sm:$0xff]  }
 0x5d8   : > { %v9305_v24 = vpop.f32.mrf.mxu0  ;;  %9557 = vmatpush1.bf16.msra.mxu1 %v13486_v62  ;;  %v13548_v62 = vld [vmem:[%s18196_s5 + $0x1a54] ss:$24 sps:$4 sm:$0xff]   ;;  %v13552_v61 = vld [vmem:[%s18196_s5 + $0x1a20] ss:$24 sps:$4 sm:$0xff]  }
 0x5d9   : > { %9598 = vmatpush1.bf16.msra.mxu0 %v13489_v49  ;;  %v9265_v16 = vpop.f32.mrf.mxu1  ;;  %9558 = vmatprep.subr.bf16.mxu1 %v13494_v47  ;;  %v13546_v49 = vld [vmem:[%s18196_s5 + $0x1a50] ss:$24 sps:$4 sm:$0xff]   ;;  %v13555_v24 = vld [vmem:[%s18196_s5 + $0x1d20] ss:$24 sps:$4 sm:$0xff]  }
 0x5da   : > { %v9306_v15 = vpop.f32.mrf.mxu0  ;;  %9599 = vmatprep.subr.bf16.mxu0 %v13497_v56  ;;  %v13549_v47 = vld [vmem:[%s18196_s5 + $0x1d50] ss:$24 sps:$4 sm:$0xff]   ;;  %v13557_v56 = vld [vmem:[%s18196_s5 + $0x1d24] ss:$24 sps:$4 sm:$0xff]   ;;  %v13563_v16 = vld [vmem:[%s18196_s5 + $0x1cf4] ss:$24 sps:$4 sm:$0xff]  }
 0x5db   : > { %v13566_v15 = vld [vmem:[%s18196_s5 + $0x19c4] ss:$24 sps:$4 sm:$0xff]  }
 0x5dc   : > { %9559 = vmatpush1.bf16.msra.mxu1 %v13492_v25  ;;  %v13560_v25 = vld [vmem:[%s18196_s5 + $0x19f4] ss:$24 sps:$4 sm:$0xff]  }
 0x5dd   : > { %9600 = vmatpush1.bf16.msra.mxu0 %v13495_v7  ;;  %9560 = vmatprep.subr.bf16.mxu1 %v13500_v59  ;;  %v13558_v7 = vld [vmem:[%s18196_s5 + $0x19f0] ss:$24 sps:$4 sm:$0xff]  }
 0x5de   : > { %9601 = vmatprep.subr.bf16.mxu0 %v13503_v57  ;;  %v13561_v59 = vld [vmem:[%s18196_s5 + $0x1cf0] ss:$24 sps:$4 sm:$0xff]   ;;  %v13569_v57 = vld [vmem:[%s18196_s5 + $0x1cc4] ss:$24 sps:$4 sm:$0xff]  }
 0x5e0   : > { %9561 = vmatpush1.bf16.msra.mxu1 %v13498_v44  ;;  %v13564_v44 = vld [vmem:[%s18196_s5 + $0x19c0] ss:$24 sps:$4 sm:$0xff]  }
 0x5e1   : > { %9602 = vmatpush1.bf16.msra.mxu0 %v13501_v5  ;;  %9562 = vmatprep.subr.bf16.mxu1 %v13506_v0  ;;  %v13567_v5 = vld [vmem:[%s18196_s5 + $0x1cc0] ss:$24 sps:$4 sm:$0xff]   ;;  %v13572_v0 = vld [vmem:[%s18196_s5 + $0x1994] ss:$24 sps:$4 sm:$0xff]  }
 0x5e2   : > { %9603 = vmatprep.subr.bf16.mxu0 %v13509_v8  ;;  %v13575_v8 = vld [vmem:[%s18196_s5 + $0x1c94] ss:$24 sps:$4 sm:$0xff]  }
 0x5e4   : > { %9563 = vmatpush1.bf16.msra.mxu1 %v13504_v28  ;;  %v13570_v28 = vld [vmem:[%s18196_s5 + $0x1990] ss:$24 sps:$4 sm:$0xff]  }
 0x5e5   : > { %9604 = vmatpush1.bf16.msra.mxu0 %v13507_v11  ;;  %9564 = vmatprep.subr.bf16.mxu1 %v13512_v23  ;;  %v13573_v11 = vld [vmem:[%s18196_s5 + $0x1c90] ss:$24 sps:$4 sm:$0xff]   ;;  %v13578_v23 = vld [vmem:[%s18196_s5 + $0x1f64] ss:$24 sps:$4 sm:$0xff]  }
 0x5e6   : > { %9605 = vmatprep.subr.bf16.mxu0 %v13515_v53  ;;  %v13581_v53 = vld [vmem:[%s18196_s5 + $0x2264] ss:$24 sps:$4 sm:$0xff]  }
 0x5e8   : > { %9565 = vmatpush1.bf16.msra.mxu1 %v13510_v26  ;;  %v13576_v26 = vld [vmem:[%s18196_s5 + $0x1f60] ss:$24 sps:$4 sm:$0xff]  }
 0x5e9   : > { %9606 = vmatpush1.bf16.msra.mxu0 %v13513_v14  ;;  %9566 = vmatprep.subr.bf16.mxu1 %v13518_v30  ;;  %v13579_v14 = vld [vmem:[%s18196_s5 + $0x2260] ss:$24 sps:$4 sm:$0xff]   ;;  %v13584_v30 = vld [vmem:[%s18196_s5 + $0x1f34] ss:$24 sps:$4 sm:$0xff]  }
 0x5ea   : > { %9607 = vmatprep.subr.bf16.mxu0 %v13521_v36 }
 0x5ec   : > { %9567 = vmatpush1.bf16.msra.mxu1 %v13516_v31  ;;  %v13587_v31 = vld [vmem:[%s18196_s5 + $0x2234] ss:$24 sps:$4 sm:$0xff]  }
 0x5ed   : > { %9608 = vmatpush1.bf16.msra.mxu0 %v13519_v29  ;;  %9568 = vmatprep.subr.bf16.mxu1 %v13524_v1 }
 0x5ee   : > { %9609 = vmatprep.subr.bf16.mxu0 %v13527_v13  ;;  %v13582_v13 = vld [vmem:[%s18196_s5 + $0x1f30] ss:$24 sps:$4 sm:$0xff]  }
 0x5f0   : > { %9569 = vmatpush1.bf16.msra.mxu1 %v13522_v22 }
 0x5f1   : > { %9610 = vmatpush1.bf16.msra.mxu0 %v13525_v58  ;;  %9570 = vmatprep.subr.bf16.mxu1 %v13530_v46 }
 0x5f2   : > { %9611 = vmatprep.subr.bf16.mxu0 %v13533_v42 }
 0x5f4   : > { %9571 = vmatpush2.bf16.msra.mxu1 %v13528_v48 }
 0x5f5   : > { %9612 = vmatpush2.bf16.msra.mxu0 %v13531_v50  ;;  %9572 = vmatprep.subr.bf16.mxu1 %v13536_v2  ;;  %v13588_v2 = vld [vmem:[%s18196_s5 + $0x1f00] ss:$24 sps:$4 sm:$0xff]  }
 0x5f6   : > { %9613 = vmatprep.subr.bf16.mxu0 %v13539_v54  ;;  %v13596_v54 = vld [vmem:[%s18196_s5 + $0x1ed4] ss:$24 sps:$4 sm:$0xff]  }
 0x5f8   : > { %9573 = vmatpush2.bf16.msra.mxu1 %v13534_v9 }
 0x5f9   : > { %9614 = vmatpush2.bf16.msra.mxu0 %v13537_v3  ;;  %9574 = vmatprep.subr.bf16.mxu1 %v13542_v60  ;;  %v13599_v3 = vld [vmem:[%s18196_s5 + $0x21d4] ss:$24 sps:$4 sm:$0xff]   ;;  %v13594_v60 = vld [vmem:[%s18196_s5 + $0x1ed0] ss:$24 sps:$4 sm:$0xff]  }
 0x5fa   : > { %9615 = vmatprep.subr.bf16.mxu0 %v13545_v17  ;;  %v13597_v17 = vld [vmem:[%s18196_s5 + $0x21d0] ss:$24 sps:$4 sm:$0xff]  }
 0x5fc   : > { %9575 = vmatpush2.bf16.msra.mxu1 %v13540_v63  ;;  %v13602_v63 = vld [vmem:[%s18196_s5 + $0x1ea4] ss:$24 sps:$4 sm:$0xff]  }
 0x5fd   : > { %9616 = vmatpush2.bf16.msra.mxu0 %v13543_v4  ;;  %9576 = vmatprep.subr.bf16.mxu1 %v13548_v62  ;;  %v13605_v4 = vld [vmem:[%s18196_s5 + $0x21a4] ss:$24 sps:$4 sm:$0xff]   ;;  %v13600_v62 = vld [vmem:[%s18196_s5 + $0x1ea0] ss:$24 sps:$4 sm:$0xff]  }
 0x5fe   : > { %9617 = vmatprep.subr.bf16.mxu0 %v13551_v21  ;;  %v13603_v21 = vld [vmem:[%s18196_s5 + $0x21a0] ss:$24 sps:$4 sm:$0xff]  }
 0x600   : > { %9577 = vmatpush2.bf16.msra.mxu1 %v13546_v49  ;;  %v13608_v49 = vld [vmem:[%s18196_s5 + $0x1e74] ss:$24 sps:$4 sm:$0xff]  }
 0x601   : > { %9618 = vmatpush2.bf16.msra.mxu0 %v13549_v47  ;;  %9578 = vmatprep.subr.bf16.mxu1 %v13554_v51  ;;  %v13611_v47 = vld [vmem:[%s18196_s5 + $0x2174] ss:$24 sps:$4 sm:$0xff]   ;;  %v13606_v51 = vld [vmem:[%s18196_s5 + $0x1e70] ss:$24 sps:$4 sm:$0xff]  }
 0x602   : > { %9619 = vmatprep.subr.bf16.mxu0 %v13557_v56  ;;  %v13609_v56 = vld [vmem:[%s18196_s5 + $0x2170] ss:$24 sps:$4 sm:$0xff]  }
 0x604   : > { %9579 = vmatpush2.bf16.msra.mxu1 %v13552_v61  ;;  %v13614_v61 = vld [vmem:[%s18196_s5 + $0x1e44] ss:$24 sps:$4 sm:$0xff]  }
 0x605   : > { %9620 = vmatpush2.bf16.msra.mxu0 %v13555_v24  ;;  %9580 = vmatprep.subr.bf16.mxu1 %v13560_v25  ;;  %v13617_v24 = vld [vmem:[%s18196_s5 + $0x2144] ss:$24 sps:$4 sm:$0xff]   ;;  %v13612_v25 = vld [vmem:[%s18196_s5 + $0x1e40] ss:$24 sps:$4 sm:$0xff]  }
 0x606   : > { %9621 = vmatprep.subr.bf16.mxu0 %v13563_v16  ;;  %v13615_v16 = vld [vmem:[%s18196_s5 + $0x2140] ss:$24 sps:$4 sm:$0xff]  }
 0x608   : > { %9581 = vmatpush2.bf16.msra.mxu1 %v13558_v7  ;;  %v13620_v7 = vld [vmem:[%s18196_s5 + $0x1e14] ss:$24 sps:$4 sm:$0xff]  }
 0x609   : > { %9622 = vmatpush2.bf16.msra.mxu0 %v13561_v59  ;;  %9582 = vmatprep.subr.bf16.mxu1 %v13566_v15  ;;  %v13623_v59 = vld [vmem:[%s18196_s5 + $0x2114] ss:$24 sps:$4 sm:$0xff]   ;;  %v13618_v15 = vld [vmem:[%s18196_s5 + $0x1e10] ss:$24 sps:$4 sm:$0xff]  }
 0x60a   : > { %9623 = vmatprep.subr.bf16.mxu0 %v13569_v57  ;;  %v13621_v57 = vld [vmem:[%s18196_s5 + $0x2110] ss:$24 sps:$4 sm:$0xff]  }
 0x60c   : > { %9583 = vmatpush2.bf16.msra.mxu1 %v13564_v44  ;;  %v13626_v44 = vld [vmem:[%s18196_s5 + $0x20e4] ss:$24 sps:$4 sm:$0xff]  }
 0x60d   : > { %9624 = vmatpush2.bf16.msra.mxu0 %v13567_v5  ;;  %9584 = vmatprep.subr.bf16.mxu1 %v13572_v0  ;;  %v13629_v5 = vld [vmem:[%s18196_s5 + $0x23e4] ss:$24 sps:$4 sm:$0xff]   ;;  %v13624_v0 = vld [vmem:[%s18196_s5 + $0x20e0] ss:$24 sps:$4 sm:$0xff]  }
 0x60e   : > { %9625 = vmatprep.subr.bf16.mxu0 %v13575_v8  ;;  %v13627_v8 = vld [vmem:[%s18196_s5 + $0x23e0] ss:$24 sps:$4 sm:$0xff]  }
 0x610   : > { %9585 = vmatpush2.bf16.msra.mxu1 %v13570_v28  ;;  %v13632_v28 = vld [vmem:[%s18196_s5 + $0x20b4] ss:$24 sps:$4 sm:$0xff]  }
 0x611   : > { %9626 = vmatpush2.bf16.msra.mxu0 %v13573_v11  ;;  %9636 = vmatprep.subr.bf16.mxu1 %v13578_v23  ;;  %v13635_v11 = vld [vmem:[%s18196_s5 + $0x23b4] ss:$24 sps:$4 sm:$0xff]   ;;  %v13630_v23 = vld [vmem:[%s18196_s5 + $0x20b0] ss:$24 sps:$4 sm:$0xff]  }
 0x612   : > { %9677 = vmatprep.subr.bf16.mxu0 %v13581_v53  ;;  %v13633_v53 = vld [vmem:[%s18196_s5 + $0x23b0] ss:$24 sps:$4 sm:$0xff]  }
 0x613   : > { %v9342_v36 = vpop.f32.mrf.mxu1  ;;  %9587 = vmatmul.mubr.bf16.vlgmr.msra.gmra.mxu1 %v15131_v6  ;;  %v13585_v6 = vld [vmem:[%s18196_s5 + $0x2230] ss:$24 sps:$4 sm:$0xff]  }
 0x614   : > { %v9343_v29 = vadd.f32 %v9342_v36, %v17527_v55  ;;  %v9383_v1 = vpop.f32.mrf.mxu0  ;;  %9628 = vmatmul.mubr.bf16.vlgmr.msra.gmra.mxu0 %v15136_v12  ;;  %9637 = vmatpush1.bf16.msra.mxu1 %v13576_v26  ;;  %v13590_v55 = vld [vmem:[%s18196_s5 + $0x1f04] ss:$24 sps:$4 sm:$0xff]   ;;  %v13639_v36 = vld [vmem:[%s18196_s5 + $0x2380] ss:$24 sps:$4 sm:$0xff]  }
 0x615   : > { %9668 = vmatprep.mubr.bf16.mxu1 %v15142_v19  ;;  %9678 = vmatpush1.bf16.msra.mxu0 %v13579_v14  ;;  %v9344_v22 = vpop.f32.mrf.mxu1  ;;  %v13593_v19 = vld [vmem:[%s18196_s5 + $0x2204] ss:$24 sps:$4 sm:$0xff]  }
 0x616   : > { %v17735_v58 = vadd.f32 %v9383_v1, %v9343_v29  ;;  %9709 = vmatprep.mubr.bf16.mxu0 %v15151_v37  ;;  %v9345_v12 = vadd.f32 %v9344_v22, %v17540_v33  ;;  %v9385_v46 = vpop.f32.mrf.mxu0  ;;  %9638 = vmatprep.subr.bf16.mxu1 %v13584_v30  ;;  %v13591_v33 = vld [vmem:[%s18196_s5 + $0x2200] ss:$24 sps:$4 sm:$0xff]   ;;  %v13638_v26 = vld [vmem:[%s18196_s5 + $0x2084] ss:$24 sps:$4 sm:$0xff]   ;;  %v13647_v29 = vld [vmem:[%s18196_s5 + $0x2354] ss:$24 sps:$4 sm:$0xff]  }
 0x617   : > { %v9346_v42 = vpop.f32.mrf.mxu1  ;;  %9679 = vmatprep.subr.bf16.mxu0 %v13587_v31  ;;  %v13641_v14 = vld [vmem:[%s18196_s5 + $0x2384] ss:$24 sps:$4 sm:$0xff]   ;;  %v13636_v30 = vld [vmem:[%s18196_s5 + $0x2080] ss:$24 sps:$4 sm:$0xff]   ;;  %v13644_v31 = vld [vmem:[%s18196_s5 + $0x2054] ss:$24 sps:$4 sm:$0xff]  }
 0x618   : > { %v17742_v48 = vadd.f32 %v9385_v46, %v9345_v12  ;;  %v9387_v50 = vpop.f32.mrf.mxu0  ;;  %9639 = vmatpush1.bf16.msra.mxu1 %v13582_v13  ;;  %v13642_v1 = vld [vmem:[%s18196_s5 + $0x2050] ss:$24 sps:$4 sm:$0xff]   ;;  %v13650_v22 = vld [vmem:[%s18196_s5 + $0x2024] ss:$24 sps:$4 sm:$0xff]   ;;  %v13651_v12 = vld [vmem:[%s18196_s5 + $0x2320] ss:$24 sps:$4 sm:$0xff]  }
 0x619   : > { %9680 = vmatpush1.bf16.msra.mxu0 %v13585_v6  ;;  %v9347_v37 = vpop.f32.mrf.mxu1  ;;  %9640 = vmatprep.subr.bf16.mxu1 %v13590_v55  ;;  %v13645_v13 = vld [vmem:[%s18196_s5 + $0x2350] ss:$24 sps:$4 sm:$0xff]   ;;  %v13653_v6 = vld [vmem:[%s18196_s5 + $0x2324] ss:$24 sps:$4 sm:$0xff]   ;;  %v13648_v55 = vld [vmem:[%s18196_s5 + $0x2020] ss:$24 sps:$4 sm:$0xff]  }
 0x61a   : > { %v9388_v9 = vpop.f32.mrf.mxu0  ;;  %9681 = vmatprep.subr.bf16.mxu0 %v13593_v19  ;;  %v13656_v46 = vld [vmem:[%s18196_s5 + $0x1ff4] ss:$24 sps:$4 sm:$0xff]   ;;  %v17876_v19 = vld [vmem:[%s18197_s6] sm:$0x3f]  ;;  %v13657_v37 = vld [vmem:[%s18196_s5 + $0x22f0] ss:$24 sps:$4 sm:$0xff]  }
 0x61b   : > { %v13659_v42 = vld [vmem:[%s18196_s5 + $0x22f4] ss:$24 sps:$4 sm:$0xff]   ;;  %v9768_v50 = vrot.slane %v17876_v19, %v14224_v38  ;;  %v13665_v9 = vld [vmem:[%s18196_s5 + $0x22c4] ss:$24 sps:$4 sm:$0xff]  }
 0x61c   : > { %9641 = vmatpush1.bf16.msra.mxu1 %v13588_v2  ;;  %v13654_v2 = vld [vmem:[%s18196_s5 + $0x1ff0] ss:$24 sps:$4 sm:$0xff]  }
 0x61d   : > { %9682 = vmatpush1.bf16.msra.mxu0 %v13591_v33  ;;  %9642 = vmatprep.subr.bf16.mxu1 %v13596_v54  ;;  %v13662_v33 = vld [vmem:[%s18196_s5 + $0x1fc4] ss:$24 sps:$4 sm:$0xff]  }
 0x61e   : > { %9683 = vmatprep.subr.bf16.mxu0 %v13599_v3  ;;  %v17895_v54 = vld [vmem:[%s18198_s7] sm:$0x3f]  ;;  %v9792_v3 = vmul.f32 %v9768_v50, %v16089_v20  ;;  %v13701_v50 = vld [vmem:[%s18199_s8 + $0x10] sm:$0xff]  }
 0x620   : > { %9643 = vmatpush1.bf16.msra.mxu1 %v13594_v60  ;;  %v9806_v60 = vrot.slane %v17895_v54, %v14224_v38  ;;  %v13671_v38 = vld [vmem:[%s18196_s5 + $0x2294] ss:$24 sps:$4 sm:$0xff]  }
 0x621   : > { %9684 = vmatpush1.bf16.msra.mxu0 %v13597_v17  ;;  %9644 = vmatprep.subr.bf16.mxu1 %v13602_v63  ;;  %v13660_v17 = vld [vmem:[%s18196_s5 + $0x1fc0] ss:$24 sps:$4 sm:$0xff]  }
 0x622   : > { %9685 = vmatprep.subr.bf16.mxu0 %v13605_v4  ;;  %v13663_v63 = vld [vmem:[%s18196_s5 + $0x22c0] ss:$24 sps:$4 sm:$0xff]   ;;  %v13668_v4 = vld [vmem:[%s18196_s5 + $0x1f94] ss:$24 sps:$4 sm:$0xff]   ;;  %v9830_v20 = vadd.f32 %v9806_v60, %v9792_v3  ;;  %v9814_v60 = vrot.slane %v17895_v54, %v14227_v39 }
 0x624   : > { %9645 = vmatpush1.bf16.msra.mxu1 %v13600_v62  ;;  %v13666_v62 = vld [vmem:[%s18196_s5 + $0x1f90] ss:$24 sps:$4 sm:$0xff]  }
 0x625   : > { %9686 = vmatpush1.bf16.msra.mxu0 %v13603_v21  ;;  %9646 = vmatprep.subr.bf16.mxu1 %v13608_v49  ;;  %v13669_v21 = vld [vmem:[%s18196_s5 + $0x2290] ss:$24 sps:$4 sm:$0xff]   ;;  %v13674_v49 = vld [vmem:[%s18196_s5 + $0x2564] ss:$24 sps:$4 sm:$0xff]  }
 0x626   : > { %9687 = vmatprep.subr.bf16.mxu0 %v13611_v47  ;;  %v13675_v47 = vld [vmem:[%s18199_s8 + $0x78] sm:$0xff]  }
 0x628   : > { %9647 = vmatpush1.bf16.msra.mxu1 %v13606_v51  ;;  %v9836_v51 = vmax.f32 %v9830_v20, 0.0  ;;  %v13712_v20 = vld [vmem:[%s18199_s8 + $0xf8] sm:$0xff]  }
 0x629   : > { %9688 = vmatpush1.bf16.msra.mxu0 %v13609_v56  ;;  %9648 = vmatprep.subr.bf16.mxu1 %v13614_v61  ;;  %v13672_v56 = vld [vmem:[%s18196_s5 + $0x2560] ss:$24 sps:$4 sm:$0xff]  }
 0x62a   : > { %9689 = vmatprep.subr.bf16.mxu0 %v13617_v24  ;;  %v13676_v61 = vld [vmem:[%s18199_s8 + $0x38] sm:$0xff]   ;;  %v13679_v24 = vld [vmem:[%s18196_s5 + $0x2534] ss:$24 sps:$4 sm:$0xff]  }
 0x62c   : > { %9649 = vmatpush1.bf16.msra.mxu1 %v13612_v25  ;;  %v13680_v25 = vld [vmem:[%s18199_s8 + $0x70] sm:$0xff]  }
 0x62d   : > { %9690 = vmatpush1.bf16.msra.mxu0 %v13615_v16  ;;  %9650 = vmatprep.subr.bf16.mxu1 %v13620_v7  ;;  %v9842_v7 = vpack.c.bf16 %v9836_v51, %v9836_v51 }
 0x62e   : > { %9691 = vmatprep.subr.bf16.mxu0 %v13623_v59 }
 0x630   : > { %9651 = vmatpush1.bf16.msra.mxu1 %v13618_v15 }
 0x631   : > { %9692 = vmatpush1.bf16.msra.mxu0 %v13621_v57  ;;  %9652 = vmatprep.subr.bf16.mxu1 %v13626_v44  ;;  %v13677_v57 = vld [vmem:[%s18196_s5 + $0x2530] ss:$24 sps:$4 sm:$0xff]  }
 0x632   : > { %9693 = vmatprep.subr.bf16.mxu0 %v13629_v5  ;;  %v13681_v5 = vld [vmem:[%s18199_s8 + $0x30] sm:$0xff]  }
 0x634   : > { %9653 = vmatpush2.bf16.msra.mxu1 %v13624_v0 }
 0x635   : > { %9694 = vmatpush2.bf16.msra.mxu0 %v13627_v8  ;;  %9654 = vmatprep.subr.bf16.mxu1 %v13632_v28  ;;  %v13685_v8 = vld [vmem:[%s18199_s8 + $0x68] sm:$0xff]  }
 0x636   : > { %9695 = vmatprep.subr.bf16.mxu0 %v13635_v11 }
 0x638   : > { %9655 = vmatpush2.bf16.msra.mxu1 %v13630_v23 }
 0x639   : > { %9696 = vmatpush2.bf16.msra.mxu0 %v13633_v53  ;;  %9656 = vmatprep.subr.bf16.mxu1 %v13638_v26  ;;  %v13682_v53 = vld [vmem:[%s18196_s5 + $0x2500] ss:$24 sps:$4 sm:$0xff]   ;;  %v13686_v26 = vld [vmem:[%s18199_s8 + $0x28] sm:$0xff]  }
 0x63a   : > { %9697 = vmatprep.subr.bf16.mxu0 %v13641_v14  ;;  %v13689_v14 = vld [vmem:[%s18196_s5 + $0x24d4] ss:$24 sps:$4 sm:$0xff]  }
 0x63c   : > { %9657 = vmatpush2.bf16.msra.mxu1 %v13636_v30  ;;  %v13690_v30 = vld [vmem:[%s18199_s8 + $0x60] sm:$0xff]  }
 0x63d   : > { %9698 = vmatpush2.bf16.msra.mxu0 %v13639_v36  ;;  %9658 = vmatprep.subr.bf16.mxu1 %v13644_v31  ;;  %v13687_v36 = vld [vmem:[%s18196_s5 + $0x24d0] ss:$24 sps:$4 sm:$0xff]   ;;  %v13691_v31 = vld [vmem:[%s18199_s8 + $0x20] sm:$0xff]  }
 0x63e   : > { %9699 = vmatprep.subr.bf16.mxu0 %v13647_v29  ;;  %v13694_v29 = vld [vmem:[%s18196_s5 + $0x24a4] ss:$24 sps:$4 sm:$0xff]  }
 0x640   : > { %9659 = vmatpush2.bf16.msra.mxu1 %v13642_v1  ;;  %v13695_v1 = vld [vmem:[%s18199_s8 + $0x58] sm:$0xff]  }
 0x641   : > { %9700 = vmatpush2.bf16.msra.mxu0 %v13645_v13  ;;  %9660 = vmatprep.subr.bf16.mxu1 %v13650_v22  ;;  %v13692_v13 = vld [vmem:[%s18196_s5 + $0x24a0] ss:$24 sps:$4 sm:$0xff]  }
 0x642   : > { %9701 = vmatprep.subr.bf16.mxu0 %v13653_v6  ;;  %v13696_v22 = vld [vmem:[%s18199_s8 + $0x18] sm:$0xff]   ;;  %v13699_v6 = vld [vmem:[%s18196_s5 + $0x2474] ss:$24 sps:$4 sm:$0xff]  }
 0x644   : > { %9661 = vmatpush2.bf16.msra.mxu1 %v13648_v55  ;;  %v9764_v55 = vrot.slane %v17876_v19, %v14230_v40 }
 0x645   : > { %9702 = vmatpush2.bf16.msra.mxu0 %v13651_v12  ;;  %9662 = vmatprep.subr.bf16.mxu1 %v13656_v46  ;;  %v13700_v12 = vld [vmem:[%s18199_s8 + $0x50] sm:$0xff]   ;;  %v9776_v46 = vrot.slane %v17876_v19, %v14227_v39  ;;  %v13710_v39 = vld [vmem:[%s18199_s8 + $0x40] sm:$0xff]  }
 0x646   : > { %9703 = vmatprep.subr.bf16.mxu0 %v13659_v42  ;;  %v13697_v42 = vld [vmem:[%s18196_s5 + $0x2470] ss:$24 sps:$4 sm:$0xff]  }
 0x647   : > { %v9794_v3 = vmul.f32 %v9776_v46, %v17340_v34  ;;  %v13733_v46 = vld [vmem:[%s18199_s8 + $0x128] sm:$0xff]  }
 0x648   : > { %9663 = vmatpush2.bf16.msra.mxu1 %v13654_v2  ;;  %v13704_v2 = vld [vmem:[%s18196_s5 + $0x2444] ss:$24 sps:$4 sm:$0xff]  }
 0x649   : > { %9704 = vmatpush2.bf16.msra.mxu0 %v13657_v37  ;;  %9664 = vmatprep.subr.bf16.mxu1 %v13662_v33  ;;  %v9791_v37 = vmul.f32 %v9764_v55, %v16076_v45  ;;  %v9802_v33 = vrot.slane %v17895_v54, %v14230_v40  ;;  %v13706_v40 = vld [vmem:[%s18199_s8 + $0x8] sm:$0xff]   ;;  %v9832_v34 = vadd.f32 %v9814_v60, %v9794_v3  ;;  %v13729_v55 = vld [vmem:[%s18199_s8 + $0x138] sm:$0xff]  }
 0x64a   : > { %9705 = vmatprep.subr.bf16.mxu0 %v13665_v9  ;;  %v13705_v9 = vld [vmem:[%s18199_s8 + $0x48] sm:$0xff]  }
 0x64b   : > { %v13709_v45 = vld [vmem:[%s18196_s5 + $0x2414] ss:$24 sps:$4 sm:$0xff]  }
 0x64c   : > { %9665 = vmatpush2.bf16.msra.mxu1 %v13660_v17  ;;  %v13702_v17 = vld [vmem:[%s18196_s5 + $0x2440] ss:$24 sps:$4 sm:$0xff]   ;;  %v13740_v3 = vld [vmem:[%s18199_s8 + $0x148] sm:$0xff]  }
 0x64d   : > { %9706 = vmatpush2.bf16.msra.mxu0 %v13663_v63  ;;  %9666 = vmatprep.subr.bf16.mxu1 %v13668_v4  ;;  %v9829_v63 = vadd.f32 %v9802_v33, %v9791_v37  ;;  %v13707_v4 = vld [vmem:[%s18196_s5 + $0x2410] ss:$24 sps:$4 sm:$0xff]   ;;  %v13737_v37 = vld [vmem:[%s18199_s8 + $0x118] sm:$0xff]  }
 0x64e   : > { %9707 = vmatprep.subr.bf16.mxu0 %v13671_v38  ;;  %v13711_v38 = vld [vmem:[%s18199_s8] sm:$0xff]   ;;  %v13738_v33 = vld [vmem:[%s18199_s8 + $0x150] sm:$0xff]   ;;  %v13741_v60 = vld [vmem:[%s18199_s8 + $0x108] sm:$0xff]  }
 0x650   : > { %9667 = vmatpush2.bf16.msra.mxu1 %v13666_v62  ;;  %v9835_v62 = vmax.f32 %v9829_v63, 0.0 }
 0x651   : > { %9708 = vmatpush2.bf16.msra.mxu0 %v13669_v21  ;;  %9718 = vmatprep.subr.bf16.mxu1 %v13674_v49  ;;  %v9838_v21 = vmax.f32 %v9832_v34, 0.0  ;;  %v13713_v49 = vld [vmem:[%s18199_s8 + $0xb8] sm:$0xff]  }
 0x652   : > { %11745 = vmatprep.subr.bf16.mxu0 %v13675_v47  ;;  %v13714_v47 = vld [vmem:[%s18199_s8 + $0xf0] sm:$0xff]   ;;  %v9841_v51 = vpack.c.bf16 %v9835_v62, %v9835_v62 }
 0x653   : > { %v9424_v16 = vpop.f32.mrf.mxu1  ;;  %9669 = vmatmul.mubr.bf16.vlgmr.msra.gmra.mxu1 %v15345_v27  ;;  %v13684_v27 = vld [vmem:[%s18196_s5 + $0x2504] ss:$24 sps:$4 sm:$0xff]  }
 0x654   : > { %v9425_v59 = vadd.f32 %v9424_v16, %v17735_v58  ;;  %v9465_v15 = vpop.f32.mrf.mxu0  ;;  %9710 = vmatmul.mubr.bf16.vlgmr.msra.gmra.mxu0 %v15352_v32  ;;  %9719 = vmatpush1.bf16.msra.mxu1 %v13672_v56  ;;  %v9844_v56 = vpack.c.bf16 %v9838_v21, %v9838_v21  ;;  %v13719_v16 = vld [vmem:[%s18199_s8 + $0xa0] sm:$0xff]  }
 0x655   : > { %11746 = vmatpush3.bf16.msra.mxu0 %v13676_v61  ;;  %10264 = vmatprep.mubr.bf16.mxu0 %v9842_v7  ;;  %v9426_v44 = vpop.f32.mrf.mxu1  ;;  %v13715_v61 = vld [vmem:[%s18199_s8 + $0xb0] sm:$0xff]   ;;  %v13720_v7 = vld [vmem:[%s18199_s8 + $0xd8] sm:$0xff]  }
 0x656   : > { %v17951_v58 = vadd.f32 %v9465_v15, %v9425_v59  ;;  %v9427_v32 = vadd.f32 %v9426_v44, %v17742_v48  ;;  %v9467_v0 = vpop.f32.mrf.mxu0  ;;  %9720 = vmatprep.subr.bf16.mxu1 %v13679_v24  ;;  %11747 = vmatprep.subr.bf16.mxu0 %v13680_v25  ;;  %v13716_v24 = vld [vmem:[%s18199_s8 + $0xe8] sm:$0xff]   ;;  %v13721_v59 = vld [vmem:[%s18199_s8 + $0x98] sm:$0xff]   ;;  %v9772_v15 = vrot.slane %v17876_v19, %v14233_v41  ;;  %v13723_v44 = vld [vmem:[%s18199_s8 + $0x90] sm:$0xff]  }
 0x657   : > { %v9428_v28 = vpop.f32.mrf.mxu1  ;;  %9750 = vmatprep.mubr.bf16.mxu1 %v13808_v10  ;;  %v13717_v25 = vld [vmem:[%s18199_s8 + $0xa8] sm:$0xff]  }
 0x658   : > { %v17958_v11 = vadd.f32 %v9467_v0, %v9427_v32  ;;  %v9469_v23 = vpop.f32.mrf.mxu0  ;;  %9721 = vmatpush1.bf16.msra.mxu1 %v13677_v57  ;;  %v13722_v57 = vld [vmem:[%s18199_s8 + $0xd0] sm:$0xff]   ;;  %v13724_v32 = vld [vmem:[%s18199_s8 + $0xc8] sm:$0xff]   ;;  %v13726_v28 = vld [vmem:[%s18199_s8 + $0xc0] sm:$0xff]  }
 0x659   : > { %11748 = vmatpush3.bf16.msra.mxu0 %v13681_v5  ;;  %v9429_v48 = vpop.f32.mrf.mxu1  ;;  %9722 = vmatprep.subr.bf16.mxu1 %v13684_v27  ;;  %v9793_v5 = vmul.f32 %v9772_v15, %v17333_v35  ;;  %v9810_v27 = vrot.slane %v17895_v54, %v14233_v41  ;;  %v13725_v0 = vld [vmem:[%s18199_s8 + $0x88] sm:$0xff]   ;;  %v13727_v41 = vld [vmem:[%s18199_s8 + $0x80] sm:$0xff]  }
 0x65a   : > { %v9470_v10 = vpop.f32.mrf.mxu0  ;;  %11749 = vmatprep.subr.bf16.mxu0 %v13685_v8 }
 0x65b   : > { %v9831_v8 = vadd.f32 %v9810_v27, %v9793_v5  ;;  %v9780_v5 = vrot.slane %v17876_v19, %v14467_v18 }
 0x65c   : > { %9723 = vmatpush1.bf16.msra.mxu1 %v13682_v53 }
 0x65d   : > { %11750 = vmatpush3.bf16.msra.mxu0 %v13686_v26  ;;  %9724 = vmatprep.subr.bf16.mxu1 %v13689_v14  ;;  %v9837_v35 = vmax.f32 %v9831_v8, 0.0  ;;  %v9818_v8 = vrot.slane %v17895_v54, %v14467_v18 }
 0x65e   : > { %11751 = vmatprep.subr.bf16.mxu0 %v13690_v30 }
 0x65f   : > { %v9843_v23 = vpack.c.bf16 %v9837_v35, %v9837_v35 }
 0x660   : > { %9725 = vmatpush1.bf16.msra.mxu1 %v13687_v36 }
 0x661   : > { %11752 = vmatpush3.bf16.msra.mxu0 %v13691_v31  ;;  %9726 = vmatprep.subr.bf16.mxu1 %v13694_v29 }
 0x662   : > { %11753 = vmatprep.subr.bf16.mxu0 %v13695_v1 }
 0x664   : > { %9727 = vmatpush1.bf16.msra.mxu1 %v13692_v13 }
 0x665   : > { %11754 = vmatpush3.bf16.msra.mxu0 %v13696_v22  ;;  %9728 = vmatprep.subr.bf16.mxu1 %v13699_v6  ;;  %v13728_v6 = vld [vmem:[%s18199_s8 + $0x178] sm:$0xff]  }
 0x666   : > { %11755 = vmatprep.subr.bf16.mxu0 %v13700_v12  ;;  %v13732_v12 = vld [vmem:[%s18199_s8 + $0x168] sm:$0xff]  }
 0x668   : > { %9729 = vmatpush1.bf16.msra.mxu1 %v13697_v42  ;;  %v13734_v42 = vld [vmem:[%s18199_s8 + $0x160] sm:$0xff]  }
 0x669   : > { %11756 = vmatpush3.bf16.msra.mxu0 %v13701_v50  ;;  %9730 = vmatprep.subr.bf16.mxu1 %v13704_v2  ;;  %v13735_v50 = vld [vmem:[%s18199_s8 + $0x120] sm:$0xff]   ;;  %v13736_v2 = vld [vmem:[%s18199_s8 + $0x158] sm:$0xff]  }
 0x66a   : > { %11757 = vmatprep.subr.bf16.mxu0 %v13705_v9  ;;  %v13739_v9 = vld [vmem:[%s18199_s8 + $0x110] sm:$0xff]  }
 0x66c   : > { %9731 = vmatpush1.bf16.msra.mxu1 %v13702_v17  ;;  %v13742_v17 = vld [vmem:[%s18199_s8 + $0x140] sm:$0xff]  }
 0x66d   : > { %11758 = vmatpush3.bf16.msra.mxu0 %v13706_v40  ;;  %9732 = vmatprep.subr.bf16.mxu1 %v13709_v45  ;;  %v13743_v40 = vld [vmem:[%s18199_s8 + $0x100] sm:$0xff]  }
 0x66e   : > { %11759 = vmatprep.subr.bf16.mxu0 %v13710_v39 }
 0x670   : > { %9733 = vmatpush1.bf16.msra.mxu1 %v13707_v4 }
 0x671   : > { %11760 = vmatpush3.bf16.msra.mxu0 %v13711_v38  ;;  %11767 = vmatprep.subr.bf16.mxu1 %v13712_v20 }
 0x672   : > { %11789 = vmatprep.subr.bf16.mxu0 %v13728_v6 }
 0x673   : > { %9751 = vmatmul.mubr.bf16.vlgmr.msra.gmra.mxu1 %v15457_v52  ;;  %v13718_v52 = vld [vmem:[%s18199_s8 + $0xe0] sm:$0xff]  }
 0x674   : > { %10265 = vmatmul.mubr.bf16.vlgmr.msra.gmra.mxu0 %v9841_v51  ;;  %11768 = vmatpush3.bf16.msra.mxu1 %v13713_v49 }
 0x675   : > { %10304 = vmatprep.mubr.bf16.mxu1 %v9844_v56  ;;  %11769 = vmatprep.subr.bf16.mxu1 %v13714_v47 }
 0x676   : > { %11790 = vmatpush3.bf16.msra.mxu0 %v13729_v55 }
 0x678   : > { %11770 = vmatpush3.bf16.msra.mxu1 %v13715_v61 }
 0x679   : > { %11771 = vmatprep.subr.bf16.mxu1 %v13716_v24 }
 0x67c   : > { %11772 = vmatpush3.bf16.msra.mxu1 %v13717_v25 }
 0x67d   : > { %11773 = vmatprep.subr.bf16.mxu1 %v13718_v52 }
 0x680   : > { %11774 = vmatpush3.bf16.msra.mxu1 %v13719_v16 }
 0x681   : > { %11775 = vmatprep.subr.bf16.mxu1 %v13720_v7 }
 0x684   : > { %11776 = vmatpush3.bf16.msra.mxu1 %v13721_v59 }
 0x685   : > { %11777 = vmatprep.subr.bf16.mxu1 %v13722_v57 }
 0x688   : > { %11778 = vmatpush3.bf16.msra.mxu1 %v13723_v44 }
 0x689   : > { %11779 = vmatprep.subr.bf16.mxu1 %v13724_v32 }
 0x68c   : > { %11780 = vmatpush3.bf16.msra.mxu1 %v13725_v0 }
 0x68d   : > { %11781 = vmatprep.subr.bf16.mxu1 %v13726_v28 }
 0x690   : > { %11782 = vmatpush3.bf16.msra.mxu1 %v13727_v41  ;;  %v9784_v41 = vrot.slane %v17876_v19, %v14238_v43 }
 0x693   : > { %v9506_v53 = vpop.f32.mrf.mxu1  ;;  %10305 = vmatmul.mubr.bf16.vlgmr.msra.gmra.mxu1 %v9843_v23 }
 0x694   : > { %v9507_v48 = vadd.f32 %v9506_v53, %v17951_v58  ;;  %v9547_v26 = vpop.f32.mrf.mxu0  ;;  %v13730_v58 = vld [vmem:[%s18199_s8 + $0x170] sm:$0xff]  }
 0x695   : > { %v9508_v14 = vpop.f32.mrf.mxu1  ;;  %11791 = vmatprep.subr.bf16.mxu0 %v13730_v58 }
 0x696   : > { %v9548_v10 = vadd.f32 %v9547_v26, %v9507_v48  ;;  %v9509_v30 = vadd.f32 %v9508_v14, %v17958_v11  ;;  %v9549_v36 = vpop.f32.mrf.mxu0  ;;  %v13731_v11 = vld [vmem:[%s18199_s8 + $0x130] sm:$0xff]   ;;  %v9822_v48 = vrot.slane %v17895_v54, %v14238_v43  ;;  %v9943_v43 = vld [vmem:[%s18200_s9] sm:$0x1] }
 0x697   : > { %v9510_v31 = vpop.f32.mrf.mxu1  ;;  %11792 = vmatpush3.bf16.msra.mxu0 %v13731_v11 }
 0x698   : > { %v9550_v29 = vadd.f32 %v9549_v36, %v9509_v30  ;;  %v9551_v1 = vpop.f32.mrf.mxu0  ;;  %11793 = vmatprep.subr.bf16.mxu0 %v13732_v12 }
 0x699   : > { %v9511_v13 = vpop.f32.mrf.mxu1 }
 0x69a   : > { %v9552_v22 = vpop.f32.mrf.mxu0 }
 0x69b   : > { %11794 = vmatpush3.bf16.msra.mxu0 %v13733_v46 }
 0x69c   : > { %11795 = vmatprep.subr.bf16.mxu0 %v13734_v42 }
 0x69f   : > { %11796 = vmatpush3.bf16.msra.mxu0 %v13735_v50 }
 0x6a0   : > { %11797 = vmatprep.subr.bf16.mxu0 %v13736_v2 }
 0x6a3   : > { %11798 = vmatpush3.bf16.msra.mxu0 %v13737_v37 }
 0x6a4   : > { %11799 = vmatprep.subr.bf16.mxu0 %v13738_v33 }
 0x6a7   : > { %11800 = vmatpush3.bf16.msra.mxu0 %v13739_v9 }
 0x6a8   : > { %11801 = vmatprep.subr.bf16.mxu0 %v13740_v3 }
 0x6ab   : > { %11802 = vmatpush3.bf16.msra.mxu0 %v13741_v60 }
 0x6ac   : > { %11803 = vmatprep.subr.bf16.mxu0 %v13742_v17 }
 0x6af   : > { %11804 = vmatpush3.bf16.msra.mxu0 %v13743_v40 }
 0x6d3   : > { %v9588_v45 = vpop.f32.mrf.mxu1 }
 0x6d4   : > { %v9589_v63 = vadd.f32 %v9588_v45, %v9548_v10  ;;  %v9629_v39 = vpop.f32.mrf.mxu0 }
 0x6d5   : > { %v9590_v34 = vpop.f32.mrf.mxu1 }
 0x6d6   : > { %v9630_v4 = vadd.f32 %v9629_v39, %v9589_v63  ;;  %v9591_v38 = vadd.f32 %v9590_v34, %v9550_v29  ;;  %v9631_v20 = vpop.f32.mrf.mxu0 }
 0x6d7   : > { %v9592_v62 = vpop.f32.mrf.mxu1 }
 0x6d8   : > { %v9632_v21 = vadd.f32 %v9631_v20, %v9591_v38  ;;  %v9633_v49 = vpop.f32.mrf.mxu0 }
 0x6d9   : > { %v9593_v47 = vpop.f32.mrf.mxu1 }
 0x6da   : > { %v9634_v51 = vpop.f32.mrf.mxu0 }
 0x713   : > { %v9670_v56 = vpop.f32.mrf.mxu1 }
 0x714   : > { %v9711_v61 = vpop.f32.mrf.mxu0  ;;  %v9671_v15 = vadd.f32 %v9670_v56, %v9630_v4 }
 0x715   : > { %v9672_v24 = vpop.f32.mrf.mxu1 }
 0x716   : > { %v9713_v25 = vpop.f32.mrf.mxu0  ;;  %v9673_v57 = vadd.f32 %v9672_v24, %v9632_v21  ;;  %v9712_v44 = vadd.f32 %v9711_v61, %v9671_v15 }
 0x717   : > { %v9674_v52 = vpop.f32.mrf.mxu1 }
 0x718   : > { %v9715_v16 = vpop.f32.mrf.mxu0  ;;  %v9714_v32 = vadd.f32 %v9713_v25, %v9673_v57 }
 0x719   : > { %v9675_v7 = vpop.f32.mrf.mxu1 }
 0x71a   : > { %v9716_v59 = vpop.f32.mrf.mxu0 }
 0x733   : > { %v9752_v27 = vpop.f32.mrf.mxu1 }
 0x734   : > { %v9753_v0 = vadd.f32 %v9752_v27, %v9712_v44  ;;  %v11761_v28 = vpop.f32.mrf.mxu0 }
 0x735   : > { %v9754_v35 = vpop.f32.mrf.mxu1 }
 0x736   : > { %v9795_v23 = vmul.f32 %v9780_v5, %v9753_v0  ;;  %v9755_v53 = vadd.f32 %v9754_v35, %v9714_v32  ;;  %v11762_v26 = vpop.f32.mrf.mxu0 }
 0x737   : > { %v11763_v14 = vadd.f32 %v11762_v26, %v11761_v28  ;;  %v9756_v10 = vpop.f32.mrf.mxu1 }
 0x738   : > { %v9833_v30 = vadd.f32 %v9818_v8, %v9795_v23  ;;  %v9796_v36 = vmul.f32 %v9784_v41, %v9755_v53  ;;  %v11764_v31 = vpop.f32.mrf.mxu0 }
 0x739   : > { %v9757_v29 = vpop.f32.mrf.mxu1  ;;  %v10267_v58 = vadd.f32 %v11763_v14, %v9943_v43 }
 0x73a   : > { %v9834_v1 = vadd.f32 %v9822_v48, %v9796_v36  ;;  %v11765_v18 = vpop.f32.mrf.mxu0  ;;  %v9839_v13 = vmax.f32 %v9833_v30, 0.0 }
 0x73c   : > { %v9840_v22 = vmax.f32 %v9834_v1, 0.0  ;;  %v9845_v6 = vpack.c.bf16 %v9839_v13, %v9839_v13 }
 0x73e   : > { %v9846_v19 = vpack.c.bf16 %v9840_v22, %v9840_v22 }
 0x740   : > { %10344 = vmatprep.mubr.bf16.mxu0 %v9846_v19 }
 0x741   : > { %10345 = vmatmul.mubr.bf16.vlgmr.msra.gmra.mxu0 %v9845_v6 }
 0x753   : > { %v11783_v54 = vpop.f32.mrf.mxu1 }
 0x755   : > { %v11784_v55 = vpop.f32.mrf.mxu1 }
 0x756   : > { %v11785_v11 = vadd.f32 %v11784_v55, %v11783_v54 }
 0x757   : > { %v11786_v12 = vpop.f32.mrf.mxu1 }
 0x758   : > { %v10307_v46 = vadd.f32 %v11785_v11, %v10267_v58 }
 0x759   : > { %v11787_v42 = vpop.f32.mrf.mxu1 }
 0x801   : > { %v11805_v50 = vpop.f32.mrf.mxu0 }
 0x803   : > { %v11806_v2 = vpop.f32.mrf.mxu0 }
 0x804   : > { %v11807_v37 = vadd.f32 %v11806_v2, %v11805_v50 }
 0x805   : > { %v11808_v33 = vpop.f32.mrf.mxu0 }
 0x806   : > { %v10347_v9 = vadd.f32 %v11807_v37, %v10307_v46 }
 0x807   : > { %v11809_v3 = vpop.f32.mrf.mxu0 }
 0x808   : > { %10352 = vst [vmem:[%s351_s18] sm:$0x1] %v10347_v9 }
 0x809   : > { %13759 = shalt.err (!%p13756_p3)
}
 0x80a   : > { %s13760_s12 = scalar_lea.hbm %s18156_s26, 16  ;;  %s13764_s21 = scalar_lea.hbm %s18201_s10, 32 }
 0x80b   : > { %p13761_p4 = scmp.ne.s32.totalorder %s18156_s26, %s13760_s12  ;;  %p13765_p9 = scmp.lt.s32.totalorder %s18156_s26, %s18201_s10 }
 0x80c   : > { %p13766_p10 = scmp.lt.s32.totalorder %s13764_s21, %s13760_s12 }
 0x80d   : > { %p13762_p7 = pnand %p13761_p4, %p13903_p5 }
 0x80e   : > { %p13767_p11 = por %p13766_p10, %p13765_p9 }
 0x80f   : > { %p13763_p8 = pneg %p13762_p7 }
 0x811   : > { %p13768_p12 = pnand %p13767_p11, %p13763_p8 }
 0x813   : > { %13771 = shalt.err (!%p13768_p12)
}
 0x814   : > { %11829 = dma.vmem_to_hbm [thread:$0]  (%p13903_p5), %s10367_s20, 16, %s18156_s26, %s10354_s27  }
 0x815 PF: > { %p11835_p13 = scmp.ge.s32.totalorder %s13806_s16, 2  ;;  %s10378_s28 = sand.u32 1, %s13794_s13  }
 0x816   : > { %s10379_s29 = scalar_lea.sflag [#allocation5], %s10378_s28 }
 0x817   : > { %p11832_p0 = pnand %p11835_p13, %p13907_p6 }
 0x819   : > { %p11833_p1 = pneg %p11832_p0 }
 0x81b   : > { %13789 = dma.done.wait (%p11833_p1), %s10379_s29, 16  }
 0x81c   : > { %13791 = vsyncadd (%p11833_p1), %s10379_s29, 4294967280  ;;  %p20_p2 = scmp.ge.s32.totalorder %s13890_s19, 4   ;;  %s18206_s13 = smov %s13798_s14 }
 0x81d   : > { %s18207_s14 = smov %s13802_s15  ;;  %s18208_s15 = smov %s13901_s22 }
 0x81e   : > { %s18209_s16 = smov %s13890_s19  ;;  %22 = sbr.rel (!%p20_p2) target bundleno = 3 (0x3), region = 95 }
 0x823   :  { %10383 = vsyncpa [#allocation5], 1 }
 0x824   :  { %10385 = vsyncpa [#allocation5 + $0x1], 1 }

</bundles_post_ra>
